<compile_context>
chip_gen: v7x
topology: tpu7x:2x2x1
jax: 0.10.0
libtpu: 0.0.40
codegen_flags: <defaults>
</compile_context>

<pallas_src>
import functools

import jax
import jax.numpy as jnp
from jax import lax
from jax.experimental import pallas as pl
from jax.experimental.pallas import tpu as pltpu

# ------------------------- model config (small, CCT-shaped) -------------------------
BATCH = 2
IN_CH = 3
IMG = 64           # cct_14 uses 384
PLANES = 16        # first conv filters (cct uses 64)
EMBED = 64         # embedding dim (cct_14 uses 384)
HEADS = 2          # cct_14 uses 6
LAYERS = 2         # cct_14 uses 14
MLP_RATIO = 3
N_OUT = 17         # Flower-17 classes
SEQ = 16           # 64 ->conv-> 32 ->pool-> 16 ->conv-> 8 ->pool-> 4  => 4*4 tokens
LN_EPS = 1e-5

# Flip to True on v6e / v7x to feed the 256x256 MXU with bf16 operands (f32 accumulation,
# LN / softmax statistics stay f32). Default False keeps f32 forward semantics.
USE_BF16_MATMUL = False


# ------------------------------- small helpers --------------------------------------
def _mxu(x):
    return x.astype(jnp.bfloat16) if USE_BF16_MATMUL else x


def _mm(a, b):
    return jnp.dot(_mxu(a), _mxu(b), preferred_element_type=jnp.float32)


def _mm_nt(a, b):
    # a @ b.T without materializing a transpose (contract last dims).
    return lax.dot_general(_mxu(a), _mxu(b), (((1,), (1,)), ((), ())),
                           preferred_element_type=jnp.float32)


def _gelu(x):
    # TODO(synk): PyTorch F.gelu defaults to exact erf-GELU; tanh approximation used here
    # (EUP-friendly, max abs deviation ~1e-3).
    c = jnp.float32(0.7978845608028654)  # sqrt(2/pi)
    return 0.5 * x * (1.0 + jnp.tanh(c * (x + 0.044715 * x * x * x)))


def _ln(x, g, b, eps):
    mu = jnp.mean(x, axis=-1, keepdims=True)
    xc = x - mu
    var = jnp.mean(xc * xc, axis=-1, keepdims=True)
    return xc * lax.rsqrt(var + eps) * g + b


def _rep0(ndim):
    return lambda b: (0,) * ndim


# --------------------- tokenizer stage: conv + ReLU + maxpool (fused) ----------------
def _tokenizer_body(x_ref, w_ref, pos_ref, o_ref, sbuf, *, Qo):
    """x_ref: [1, 4, M4, K] parity-split im2col patches (ee, eo, oe, oo) of the conv-output grid,
    pooled-output row index r = p*Qo + q.  Computes relu(patch @ w) for each parity grid and
    reduces the overlapping 3x3 stride-2 pad-1 max-pool window entirely in VMEM."""
    w = w_ref[...]
    c_ee = jnp.maximum(_mm(x_ref[0, 0], w), 0.0)   # conv(2p,   2q  )
    c_eo = jnp.maximum(_mm(x_ref[0, 1], w), 0.0)   # conv(2p,   2q+1)
    c_oe = jnp.maximum(_mm(x_ref[0, 2], w), 0.0)   # conv(2p+1, 2q  )
    c_oo = jnp.maximum(_mm(x_ref[0, 3], w), 0.0)   # conv(2p+1, 2q+1)
    M4, C = c_ee.shape

    pooled = jnp.maximum(jnp.maximum(c_ee, c_eo), jnp.maximum(c_oe, c_oo))

    # mask for window columns at 2q-1 (only valid when q >= 1, i.e. r % Qo != 0)
    r = lax.broadcasted_iota(jnp.int32, (M4, 1), 0)
    qcol = jnp.bitwise_and(r, Qo - 1) if (Qo & (Qo - 1)) == 0 else r % Qo
    qmask = qcol != 0

    # Remaining 5 window members, obtained by shifting a parity grid by k rows in the flat
    # (p,q) row order. Boundary rows are zero-filled: neutral for the max because every
    # window already contains c_ee >= 0 (post-ReLU).
    for arr, k, need_qmask in ((c_eo, 1, True),        # conv(2p,   2q-1)
                               (c_oo, 1, True),        # conv(2p+1, 2q-1)
                               (c_oe, Qo, False),      # conv(2p-1, 2q  )
                               (c_oo, Qo, False),      # conv(2p-1, 2q+1)
                               (c_oo, Qo + 1, True)):  # conv(2p-1, 2q-1)
        sbuf[0:k, :] = jnp.zeros((k, C), jnp.float32)
        sbuf[k:, :] = arr[0:M4 - k, :]
        sh = sbuf[...]
        if need_qmask:
            sh = jnp.where(qmask, sh, 0.0)
        pooled = jnp.maximum(pooled, sh)

    if pos_ref is not None:
        pooled = pooled + pos_ref[...]      # learnable positional embedding (stage 2 only)
    o_ref[0] = pooled


def _make_tokenizer_kernel(Qo, with_pos):
    if with_pos:
        def kernel(x_ref, w_ref, pos_ref, o_ref, sbuf):
            _tokenizer_body(x_ref, w_ref, pos_ref, o_ref, sbuf, Qo=Qo)
    else:
        def kernel(x_ref, w_ref, o_ref, sbuf):
            _tokenizer_body(x_ref, w_ref, None, o_ref, sbuf, Qo=Qo)
    return kernel


def extract_patches(x, k, stride, pad):
    """NHWC sliding-window im2col -> [B, Ho, Wo, k*k*C] (window row-major, channel fastest)."""
    B, H, W, C = x.shape
    xp = jnp.pad(x, ((0, 0), (pad, pad), (pad, pad), (0, 0)))
    Ho = (H + 2 * pad - k) // stride + 1
    Wo = (W + 2 * pad - k) // stride + 1
    cols = []
    for i in range(k):
        for j in range(k):
            cols.append(lax.slice(
                xp, (0, i, j, 0),
                (B, i + (Ho - 1) * stride + 1, j + (Wo - 1) * stride + 1, C),
                (1, stride, stride, 1)))
    pat = jnp.stack(cols, axis=3)                       # [B, Ho, Wo, k*k, C]
    return pat.reshape(B, Ho, Wo, k * k * C), Ho, Wo


def tokenizer_stage(x_nhwc, w, pos=None):
    """conv 7x7 s2 p3 (no bias) -> ReLU -> maxpool 3x3 s2 p1, one fused kernel, grid over batch."""
    B = x_nhwc.shape[0]
    pat, Ho, Wo = extract_patches(x_nhwc, 7, 2, 3)      # [B, Ho, Wo, K]
    K = pat.shape[-1]
    Po, Qo = Ho // 2, Wo // 2
    M4 = Po * Qo
    # Parity split of the conv-output grid so the pooled grid is a pure row-shift problem.
    par = jnp.stack([pat[:, 0::2, 0::2], pat[:, 0::2, 1::2],
                     pat[:, 1::2, 0::2], pat[:, 1::2, 1::2]], axis=1)   # [B, 4, Po, Qo, K]
    par = par.reshape(B, 4, M4, K)
    C = w.shape[1]

    in_specs = [pl.BlockSpec((1, 4, M4, K), lambda b: (b, 0, 0, 0)),
                pl.BlockSpec((K, C), _rep0(2))]
    args = [par, w]
    if pos is not None:
        in_specs.append(pl.BlockSpec((M4, C), _rep0(2)))
        args.append(pos)

    out = pl.pallas_call(
        _make_tokenizer_kernel(Qo, pos is not None),
        out_shape=jax.ShapeDtypeStruct((B, M4, C), jnp.float32),
        grid=(B,),
        in_specs=in_specs,
        out_specs=pl.BlockSpec((1, M4, C), lambda b: (b, 0, 0)),
        scratch_shapes=[pltpu.VMEM((M4, C), jnp.float32)],
        compiler_params=pltpu.CompilerParams(dimension_semantics=("parallel",)),
    )(*args)
    return out.reshape(B, Po, Qo, C)


# --------------------------- fused transformer encoder layer ------------------------
def _encoder_layer_kernel(x_ref, g0, b0, qkvw, projw, projb, g1, b1,
                          f1w, f1b, f2w, f2b, o_ref, *, heads, scale, eps):
    x = x_ref[0]                                        # [N, D]
    N, D = x.shape
    dh = D // heads

    h = _ln(x, g0[...], b0[...], eps)                   # pre-norm
    qkv = _mm(h, qkvw[...])                             # [N, 3D], (q|k|v) blocks of D
    pw = projw[...]

    # attention out-proj + residual, accumulated per head:
    #   concat_h(o_h) @ W == sum_h o_h @ W[h*dh:(h+1)*dh, :]
    y = projb[...] + x
    for hd in range(heads):
        q = qkv[:, hd * dh:(hd + 1) * dh]
        k = qkv[:, D + hd * dh:D + (hd + 1) * dh]
        v = qkv[:, 2 * D + hd * dh:2 * D + (hd + 1) * dh]
        s = _mm_nt(q, k) * scale                        # [N, N]
        s = s - jnp.max(s, axis=-1, keepdims=True)
        p = jnp.exp(s)
        p = p * pl.reciprocal(jnp.sum(p, axis=-1, keepdims=True), approx=True)
        o_h = _mm(p, v)                                 # [N, dh]
        y = y + _mm(o_h, pw[hd * dh:(hd + 1) * dh, :])

    src = _ln(y, g1[...], b1[...], eps)                 # norm1
    hmid = _gelu(_mm(src, f1w[...]) + f1b[...])
    o_ref[0] = _mm(hmid, f2w[...]) + f2b[...] + src     # MLP + residual


def encoder_layer(x, lp, heads=HEADS, eps=LN_EPS):
    B, N, D = x.shape
    scale = (D // heads) ** -0.5
    vec = lambda v: v.reshape(1, -1)
    args = [x,
            vec(lp["pre_ln_g"]), vec(lp["pre_ln_b"]),
            lp["qkv_w"], lp["proj_w"], vec(lp["proj_b"]),
            vec(lp["ln1_g"]), vec(lp["ln1_b"]),
            lp["fc1_w"], vec(lp["fc1_b"]),
            lp["fc2_w"], vec(lp["fc2_b"])]
    in_specs = [pl.BlockSpec((1, N, D), lambda b: (b, 0, 0))]
    in_specs += [pl.BlockSpec(a.shape, _rep0(a.ndim)) for a in args[1:]]
    return pl.pallas_call(
        functools.partial(_encoder_layer_kernel, heads=heads, scale=scale, eps=eps),
        out_shape=jax.ShapeDtypeStruct((B, N, D), jnp.float32),
        grid=(B,),
        in_specs=in_specs,
        out_specs=pl.BlockSpec((1, N, D), lambda b: (b, 0, 0)),
        compiler_params=pltpu.CompilerParams(dimension_semantics=("parallel",)),
    )(*args)


# -------------------- fused tail: LN + seq-pool + classifier ------------------------
def _tail_kernel(x_ref, g, b, poolw, poolb, fcw, fcb, o_ref, *, eps):
    x = x_ref[0]                                                    # [N, D]
    xf = _ln(x, g[...], b[...], eps)
    logit = jnp.sum(xf * poolw[...], axis=-1, keepdims=True) + poolb[...]   # [N, 1]
    logit = logit - jnp.max(logit, axis=0, keepdims=True)
    wgt = jnp.exp(logit)
    wgt = wgt * pl.reciprocal(jnp.sum(wgt, axis=0, keepdims=True), approx=True)
    pooled = jnp.sum(wgt * xf, axis=0, keepdims=True)               # [1, D]
    o_ref[0] = _mm(pooled, fcw[...]) + fcb[...]                     # [1, n_out]


def classifier_tail(x, params, eps=LN_EPS):
    B, N, D = x.shape
    n_out = params["fc_w"].shape[1]
    args = [x,
            params["norm_g"].reshape(1, D), params["norm_b"].reshape(1, D),
            params["pool_w"].reshape(1, D),          # row view of the [D, 1] pooling weight
            params["pool_b"].reshape(1, 1),
            params["fc_w"], params["fc_b"].reshape(1, n_out)]
    in_specs = [pl.BlockSpec((1, N, D), lambda b: (b, 0, 0))]
    in_specs += [pl.BlockSpec(a.shape, _rep0(a.ndim)) for a in args[1:]]
    out = pl.pallas_call(
        functools.partial(_tail_kernel, eps=eps),
        out_shape=jax.ShapeDtypeStruct((B, 1, n_out), jnp.float32),
        grid=(B,),
        in_specs=in_specs,
        out_specs=pl.BlockSpec((1, 1, n_out), lambda b: (b, 0, 0)),
        compiler_params=pltpu.CompilerParams(dimension_semantics=("parallel",)),
    )(*args)
    return out.reshape(B, n_out)


# ------------------------------- full forward ---------------------------------------
def cct_forward(params, x_nchw):
    x = jnp.transpose(x_nchw, (0, 2, 3, 1)).astype(jnp.float32)     # NCHW -> NHWC
    B = x.shape[0]

    # conv tokenizer: 2 x (conv7x7 s2 p3 -> ReLU -> maxpool3x3 s2 p1); stage 2 adds pos-emb.
    x = tokenizer_stage(x, params["conv0_w"])                                   # [B,16,16,PLANES]
    x = tokenizer_stage(x, params["conv1_w"], pos=params["pos_emb"][0])         # [B, 4, 4, EMBED]
    x = x.reshape(B, SEQ, EMBED)                                                # tokens [B, N, D]

    # transformer encoder layers (pre-norm, CCT style), one fused kernel per layer.
    for lp in params["layers"]:
        x = encoder_layer(x, lp)

    # final LN + sequence (attention) pooling + classifier, fused.
    return classifier_tail(x, params)                                           # [B, N_OUT]


# ------------------------------- deterministic params -------------------------------
def init_params(key):
    keys = iter(jax.random.split(key, 8 + 8 * LAYERS))

    def nrm(shape, std=0.02):
        return std * jax.random.normal(next(keys), shape, jnp.float32)

    p = {
        "conv0_w": nrm((7 * 7 * IN_CH, PLANES), 0.05),
        "conv1_w": nrm((7 * 7 * PLANES, EMBED), 0.05),
        "pos_emb": nrm((1, SEQ, EMBED), 0.2),
        "norm_g": jnp.ones((EMBED,), jnp.float32),
        "norm_b": jnp.zeros((EMBED,), jnp.float32),
        "pool_w": nrm((EMBED, 1)),
        "pool_b": jnp.zeros((1,), jnp.float32),
        "fc_w": nrm((EMBED, N_OUT)),
        "fc_b": jnp.zeros((N_OUT,), jnp.float32),
    }
    layers = []
    for _ in range(LAYERS):
        layers.append({
            "pre_ln_g": jnp.ones((EMBED,), jnp.float32),
            "pre_ln_b": jnp.zeros((EMBED,), jnp.float32),
            "qkv_w": nrm((EMBED, 3 * EMBED)),
            "proj_w": nrm((EMBED, EMBED)),
            "proj_b": jnp.zeros((EMBED,), jnp.float32),
            "ln1_g": jnp.ones((EMBED,), jnp.float32),
            "ln1_b": jnp.zeros((EMBED,), jnp.float32),
            "fc1_w": nrm((EMBED, MLP_RATIO * EMBED)),
            "fc1_b": jnp.zeros((MLP_RATIO * EMBED,), jnp.float32),
            "fc2_w": nrm((MLP_RATIO * EMBED, EMBED)),
            "fc2_b": jnp.zeros((EMBED,), jnp.float32),
        })
    p["layers"] = layers
    return p


if __name__ == "__main__":
    root = jax.random.PRNGKey(0)
    pkey, xkey = jax.random.split(root)
    params = init_params(pkey)
    x = jax.random.normal(xkey, (BATCH, IN_CH, IMG, IMG), jnp.float32)   # NCHW, like PyTorch

    fwd = jax.jit(cct_forward)
    out = fwd(params, x)
    jax.block_until_ready(out)

    assert out.shape == (BATCH, N_OUT), out.shape
    assert bool(jnp.all(jnp.isfinite(out)))
    print("KERNEL_OK")
</pallas_src>

<mosaic_0001>
module attributes {stable_mosaic.version = 11 : i64} {
  func.func @kernel(%arg0: i32, %arg1: memref<1x4x256x147xf32, #tpu.memory_space<vmem>>, %arg2: memref<147x16xf32, #tpu.memory_space<vmem>>, %arg3: memref<1x256x16xf32, #tpu.memory_space<vmem>>, %arg4: memref<256x16xf32, #tpu.memory_space<vmem>>) attributes {dimension_semantics = [#tpu.dimension_semantics<parallel>], iteration_bounds = array<i64: 2>, scalar_prefetch = 0 : i64, scratch_operands = 1 : i64, tpu.core_type = #tpu.core_type<tc>, window_params = [{transform_indices = @transform_0, window_bounds = array<i64: 1, 4, 256, 147>}, {pipeline_mode = #tpu.pipeline_mode<synchronous>, transform_indices = @transform_1, window_bounds = array<i64: 147, 16>}, {transform_indices = @transform_2, window_bounds = array<i64: 1, 256, 16>}]} {
    %c0 = arith.constant 0 : index
    %c0_0 = arith.constant 0 : index
    %0 = vector.load %arg2[%c0, %c0_0] : memref<147x16xf32, #tpu.memory_space<vmem>>, vector<147x16xf32>
    %c0_1 = arith.constant 0 : index
    %c0_2 = arith.constant 0 : index
    %c0_3 = arith.constant 0 : index
    %c0_4 = arith.constant 0 : index
    %1 = vector.load %arg1[%c0_1, %c0_2, %c0_3, %c0_4] : memref<1x4x256x147xf32, #tpu.memory_space<vmem>>, vector<1x1x256x147xf32>
    %2 = vector.shape_cast %1 : vector<1x1x256x147xf32> to vector<256x147xf32>
    %cst = arith.constant dense<0.000000e+00> : vector<256x16xf32>
    %3 = tpu.matmul %2, %0, %cst {dimension_numbers = #tpu.dot_dimension_numbers<[1], [0], [0], [1], [0, 0, 1, 1], [], []>} : vector<256x147xf32>, vector<147x16xf32>, vector<256x16xf32> -> vector<256x16xf32>
    %cst_5 = arith.constant 0.000000e+00 : f32
    %4 = vector.broadcast %cst_5 : f32 to vector<256x16xf32>
    %5 = arith.maximumf %3, %4 : vector<256x16xf32>
    %c0_6 = arith.constant 0 : index
    %c1 = arith.constant 1 : index
    %c0_7 = arith.constant 0 : index
    %c0_8 = arith.constant 0 : index
    %6 = vector.load %arg1[%c0_6, %c1, %c0_7, %c0_8] : memref<1x4x256x147xf32, #tpu.memory_space<vmem>>, vector<1x1x256x147xf32>
    %7 = vector.shape_cast %6 : vector<1x1x256x147xf32> to vector<256x147xf32>
    %cst_9 = arith.constant dense<0.000000e+00> : vector<256x16xf32>
    %8 = tpu.matmul %7, %0, %cst_9 {dimension_numbers = #tpu.dot_dimension_numbers<[1], [0], [0], [1], [0, 0, 1, 1], [], []>} : vector<256x147xf32>, vector<147x16xf32>, vector<256x16xf32> -> vector<256x16xf32>
    %cst_10 = arith.constant 0.000000e+00 : f32
    %9 = vector.broadcast %cst_10 : f32 to vector<256x16xf32>
    %10 = arith.maximumf %8, %9 : vector<256x16xf32>
    %c0_11 = arith.constant 0 : index
    %c2 = arith.constant 2 : index
    %c0_12 = arith.constant 0 : index
    %c0_13 = arith.constant 0 : index
    %11 = vector.load %arg1[%c0_11, %c2, %c0_12, %c0_13] : memref<1x4x256x147xf32, #tpu.memory_space<vmem>>, vector<1x1x256x147xf32>
    %12 = vector.shape_cast %11 : vector<1x1x256x147xf32> to vector<256x147xf32>
    %cst_14 = arith.constant dense<0.000000e+00> : vector<256x16xf32>
    %13 = tpu.matmul %12, %0, %cst_14 {dimension_numbers = #tpu.dot_dimension_numbers<[1], [0], [0], [1], [0, 0, 1, 1], [], []>} : vector<256x147xf32>, vector<147x16xf32>, vector<256x16xf32> -> vector<256x16xf32>
    %cst_15 = arith.constant 0.000000e+00 : f32
    %14 = vector.broadcast %cst_15 : f32 to vector<256x16xf32>
    %15 = arith.maximumf %13, %14 : vector<256x16xf32>
    %c0_16 = arith.constant 0 : index
    %c3 = arith.constant 3 : index
    %c0_17 = arith.constant 0 : index
    %c0_18 = arith.constant 0 : index
    %16 = vector.load %arg1[%c0_16, %c3, %c0_17, %c0_18] : memref<1x4x256x147xf32, #tpu.memory_space<vmem>>, vector<1x1x256x147xf32>
    %17 = vector.shape_cast %16 : vector<1x1x256x147xf32> to vector<256x147xf32>
    %cst_19 = arith.constant dense<0.000000e+00> : vector<256x16xf32>
    %18 = tpu.matmul %17, %0, %cst_19 {dimension_numbers = #tpu.dot_dimension_numbers<[1], [0], [0], [1], [0, 0, 1, 1], [], []>} : vector<256x147xf32>, vector<147x16xf32>, vector<256x16xf32> -> vector<256x16xf32>
    %cst_20 = arith.constant 0.000000e+00 : f32
    %19 = vector.broadcast %cst_20 : f32 to vector<256x16xf32>
    %20 = arith.maximumf %18, %19 : vector<256x16xf32>
    %21 = arith.maximumf %5, %10 : vector<256x16xf32>
    %22 = arith.maximumf %15, %20 : vector<256x16xf32>
    %23 = arith.maximumf %21, %22 : vector<256x16xf32>
    %24 = tpu.iota {dimensions = array<i32: 0>} : vector<256x1xi32>
    %c15_i32 = arith.constant 15 : i32
    %25 = vector.broadcast %c15_i32 : i32 to vector<256x1xi32>
    %26 = arith.andi %24, %25 : vector<256x1xi32>
    %c0_i32 = arith.constant 0 : i32
    %27 = vector.broadcast %c0_i32 : i32 to vector<256x1xi32>
    %28 = arith.cmpi ne, %26, %27 : vector<256x1xi32>
    %cst_21 = arith.constant 0.000000e+00 : f32
    %29 = vector.broadcast %cst_21 : f32 to vector<1x16xf32>
    %c0_22 = arith.constant 0 : index
    %c0_23 = arith.constant 0 : index
    %30 = vector.load %arg4[%c0_22, %c0_23] : memref<256x16xf32, #tpu.memory_space<vmem>>, vector<1x16xf32>
    tpu.vector_store %arg4[%c0_22, %c0_23], %29 {strides = array<i32>} : memref<256x16xf32, #tpu.memory_space<vmem>>, vector<1x16xf32>,
    %31 = vector.extract_strided_slice %10 {offsets = [0, 0], sizes = [255, 16], strides = [1, 1]} : vector<256x16xf32> to vector<255x16xf32>
    %c1_24 = arith.constant 1 : index
    %c0_25 = arith.constant 0 : index
    %32 = vector.load %arg4[%c1_24, %c0_25] : memref<256x16xf32, #tpu.memory_space<vmem>>, vector<255x16xf32>
    tpu.vector_store %arg4[%c1_24, %c0_25], %31 {strides = array<i32>} : memref<256x16xf32, #tpu.memory_space<vmem>>, vector<255x16xf32>,
    %c0_26 = arith.constant 0 : index
    %c0_27 = arith.constant 0 : index
    %33 = vector.load %arg4[%c0_26, %c0_27] : memref<256x16xf32, #tpu.memory_space<vmem>>, vector<256x16xf32>
    %cst_28 = arith.constant 0.000000e+00 : f32
    %34 = vector.shape_cast %28 : vector<256x1xi1> to vector<256x1xi1>
    %35 = vector.broadcast %34 : vector<256x1xi1> to vector<256x16xi1>
    %36 = vector.broadcast %cst_28 : f32 to vector<256x16xf32>
    %37 = arith.select %35, %33, %36 : vector<256x16xi1>, vector<256x16xf32>
    %38 = arith.maximumf %23, %37 : vector<256x16xf32>
    %cst_29 = arith.constant 0.000000e+00 : f32
    %39 = vector.broadcast %cst_29 : f32 to vector<1x16xf32>
    %c0_30 = arith.constant 0 : index
    %c0_31 = arith.constant 0 : index
    %40 = vector.load %arg4[%c0_30, %c0_31] : memref<256x16xf32, #tpu.memory_space<vmem>>, vector<1x16xf32>
    tpu.vector_store %arg4[%c0_30, %c0_31], %39 {strides = array<i32>} : memref<256x16xf32, #tpu.memory_space<vmem>>, vector<1x16xf32>,
    %41 = vector.extract_strided_slice %20 {offsets = [0, 0], sizes = [255, 16], strides = [1, 1]} : vector<256x16xf32> to vector<255x16xf32>
    %c1_32 = arith.constant 1 : index
    %c0_33 = arith.constant 0 : index
    %42 = vector.load %arg4[%c1_32, %c0_33] : memref<256x16xf32, #tpu.memory_space<vmem>>, vector<255x16xf32>
    tpu.vector_store %arg4[%c1_32, %c0_33], %41 {strides = array<i32>} : memref<256x16xf32, #tpu.memory_space<vmem>>, vector<255x16xf32>,
    %c0_34 = arith.constant 0 : index
    %c0_35 = arith.constant 0 : index
    %43 = vector.load %arg4[%c0_34, %c0_35] : memref<256x16xf32, #tpu.memory_space<vmem>>, vector<256x16xf32>
    %cst_36 = arith.constant 0.000000e+00 : f32
    %44 = vector.shape_cast %28 : vector<256x1xi1> to vector<256x1xi1>
    %45 = vector.broadcast %44 : vector<256x1xi1> to vector<256x16xi1>
    %46 = vector.broadcast %cst_36 : f32 to vector<256x16xf32>
    %47 = arith.select %45, %43, %46 : vector<256x16xi1>, vector<256x16xf32>
    %48 = arith.maximumf %38, %47 : vector<256x16xf32>
    %cst_37 = arith.constant 0.000000e+00 : f32
    %49 = vector.broadcast %cst_37 : f32 to vector<16x16xf32>
    %c0_38 = arith.constant 0 : index
    %c0_39 = arith.constant 0 : index
    %50 = vector.load %arg4[%c0_38, %c0_39] : memref<256x16xf32, #tpu.memory_space<vmem>>, vector<16x16xf32>
    tpu.vector_store %arg4[%c0_38, %c0_39], %49 {strides = array<i32>} : memref<256x16xf32, #tpu.memory_space<vmem>>, vector<16x16xf32>,
    %51 = vector.extract_strided_slice %15 {offsets = [0, 0], sizes = [240, 16], strides = [1, 1]} : vector<256x16xf32> to vector<240x16xf32>
    %c16 = arith.constant 16 : index
    %c0_40 = arith.constant 0 : index
    %52 = vector.load %arg4[%c16, %c0_40] : memref<256x16xf32, #tpu.memory_space<vmem>>, vector<240x16xf32>
    tpu.vector_store %arg4[%c16, %c0_40], %51 {strides = array<i32>} : memref<256x16xf32, #tpu.memory_space<vmem>>, vector<240x16xf32>,
    %c0_41 = arith.constant 0 : index
    %c0_42 = arith.constant 0 : index
    %53 = vector.load %arg4[%c0_41, %c0_42] : memref<256x16xf32, #tpu.memory_space<vmem>>, vector<256x16xf32>
    %54 = arith.maximumf %48, %53 : vector<256x16xf32>
    %cst_43 = arith.constant 0.000000e+00 : f32
    %55 = vector.broadcast %cst_43 : f32 to vector<16x16xf32>
    %c0_44 = arith.constant 0 : index
    %c0_45 = arith.constant 0 : index
    %56 = vector.load %arg4[%c0_44, %c0_45] : memref<256x16xf32, #tpu.memory_space<vmem>>, vector<16x16xf32>
    tpu.vector_store %arg4[%c0_44, %c0_45], %55 {strides = array<i32>} : memref<256x16xf32, #tpu.memory_space<vmem>>, vector<16x16xf32>,
    %57 = vector.extract_strided_slice %20 {offsets = [0, 0], sizes = [240, 16], strides = [1, 1]} : vector<256x16xf32> to vector<240x16xf32>
    %c16_46 = arith.constant 16 : index
    %c0_47 = arith.constant 0 : index
    %58 = vector.load %arg4[%c16_46, %c0_47] : memref<256x16xf32, #tpu.memory_space<vmem>>, vector<240x16xf32>
    tpu.vector_store %arg4[%c16_46, %c0_47], %57 {strides = array<i32>} : memref<256x16xf32, #tpu.memory_space<vmem>>, vector<240x16xf32>,
    %c0_48 = arith.constant 0 : index
    %c0_49 = arith.constant 0 : index
    %59 = vector.load %arg4[%c0_48, %c0_49] : memref<256x16xf32, #tpu.memory_space<vmem>>, vector<256x16xf32>
    %60 = arith.maximumf %54, %59 : vector<256x16xf32>
    %cst_50 = arith.constant 0.000000e+00 : f32
    %61 = vector.broadcast %cst_50 : f32 to vector<17x16xf32>
    %c0_51 = arith.constant 0 : index
    %c0_52 = arith.constant 0 : index
    %62 = vector.load %arg4[%c0_51, %c0_52] : memref<256x16xf32, #tpu.memory_space<vmem>>, vector<17x16xf32>
    tpu.vector_store %arg4[%c0_51, %c0_52], %61 {strides = array<i32>} : memref<256x16xf32, #tpu.memory_space<vmem>>, vector<17x16xf32>,
    %63 = vector.extract_strided_slice %20 {offsets = [0, 0], sizes = [239, 16], strides = [1, 1]} : vector<256x16xf32> to vector<239x16xf32>
    %c17 = arith.constant 17 : index
    %c0_53 = arith.constant 0 : index
    %64 = vector.load %arg4[%c17, %c0_53] : memref<256x16xf32, #tpu.memory_space<vmem>>, vector<239x16xf32>
    tpu.vector_store %arg4[%c17, %c0_53], %63 {strides = array<i32>} : memref<256x16xf32, #tpu.memory_space<vmem>>, vector<239x16xf32>,
    %c0_54 = arith.constant 0 : index
    %c0_55 = arith.constant 0 : index
    %65 = vector.load %arg4[%c0_54, %c0_55] : memref<256x16xf32, #tpu.memory_space<vmem>>, vector<256x16xf32>
    %cst_56 = arith.constant 0.000000e+00 : f32
    %66 = vector.shape_cast %28 : vector<256x1xi1> to vector<256x1xi1>
    %67 = vector.broadcast %66 : vector<256x1xi1> to vector<256x16xi1>
    %68 = vector.broadcast %cst_56 : f32 to vector<256x16xf32>
    %69 = arith.select %67, %65, %68 : vector<256x16xi1>, vector<256x16xf32>
    %70 = arith.maximumf %60, %69 : vector<256x16xf32>
    %c0_57 = arith.constant 0 : index
    %c0_58 = arith.constant 0 : index
    %c0_59 = arith.constant 0 : index
    %71 = vector.load %arg3[%c0_57, %c0_58, %c0_59] : memref<1x256x16xf32, #tpu.memory_space<vmem>>, vector<1x256x16xf32>
    %72 = vector.shape_cast %71 : vector<1x256x16xf32> to vector<256x16xf32>
    %73 = vector.shape_cast %70 : vector<256x16xf32> to vector<1x256x16xf32>
    tpu.vector_store %arg3[%c0_57, %c0_58, %c0_59], %73 {strides = array<i32>} : memref<1x256x16xf32, #tpu.memory_space<vmem>>, vector<1x256x16xf32>,
    return
  }
  func.func @transform_0(%arg0: i32) -> (i32, i32, i32, i32) {
    %c0_i32 = arith.constant 0 : i32
    %c0_i32_0 = arith.constant 0 : i32
    %c0_i32_1 = arith.constant 0 : i32
    %c0_i32_2 = arith.constant 0 : i32
    return %arg0, %c0_i32, %c0_i32_0, %c0_i32_1 : i32, i32, i32, i32
  }
  func.func @transform_1(%arg0: i32) -> (i32, i32) {
    %c0_i32 = arith.constant 0 : i32
    %c0_i32_0 = arith.constant 0 : i32
    %c0_i32_1 = arith.constant 0 : i32
    return %c0_i32, %c0_i32_0 : i32, i32
  }
  func.func @transform_2(%arg0: i32) -> (i32, i32, i32) {
    %c0_i32 = arith.constant 0 : i32
    %c0_i32_0 = arith.constant 0 : i32
    %c0_i32_1 = arith.constant 0 : i32
    return %arg0, %c0_i32, %c0_i32_0 : i32, i32, i32
  }
}

module attributes {stable_mosaic.version = 11 : i64} {
  func.func @kernel(%arg0: i32, %arg1: memref<1x4x16x784xf32, #tpu.memory_space<vmem>>, %arg2: memref<784x64xf32, #tpu.memory_space<vmem>>, %arg3: memref<16x64xf32, #tpu.memory_space<vmem>>, %arg4: memref<1x16x64xf32, #tpu.memory_space<vmem>>, %arg5: memref<16x64xf32, #tpu.memory_space<vmem>>) attributes {dimension_semantics = [#tpu.dimension_semantics<parallel>], iteration_bounds = array<i64: 2>, scalar_prefetch = 0 : i64, scratch_operands = 1 : i64, tpu.core_type = #tpu.core_type<tc>, window_params = [{transform_indices = @transform_0, window_bounds = array<i64: 1, 4, 16, 784>}, {pipeline_mode = #tpu.pipeline_mode<synchronous>, transform_indices = @transform_1, window_bounds = array<i64: 784, 64>}, {pipeline_mode = #tpu.pipeline_mode<synchronous>, transform_indices = @transform_2, window_bounds = array<i64: 16, 64>}, {transform_indices = @transform_3, window_bounds = array<i64: 1, 16, 64>}]} {
    %c0 = arith.constant 0 : index
    %c0_0 = arith.constant 0 : index
    %0 = vector.load %arg2[%c0, %c0_0] : memref<784x64xf32, #tpu.memory_space<vmem>>, vector<784x64xf32>
    %c0_1 = arith.constant 0 : index
    %c0_2 = arith.constant 0 : index
    %c0_3 = arith.constant 0 : index
    %c0_4 = arith.constant 0 : index
    %1 = vector.load %arg1[%c0_1, %c0_2, %c0_3, %c0_4] : memref<1x4x16x784xf32, #tpu.memory_space<vmem>>, vector<1x1x16x784xf32>
    %2 = vector.shape_cast %1 : vector<1x1x16x784xf32> to vector<16x784xf32>
    %cst = arith.constant dense<0.000000e+00> : vector<16x64xf32>
    %3 = tpu.matmul %2, %0, %cst {dimension_numbers = #tpu.dot_dimension_numbers<[1], [0], [0], [1], [0, 0, 1, 1], [], []>} : vector<16x784xf32>, vector<784x64xf32>, vector<16x64xf32> -> vector<16x64xf32>
    %cst_5 = arith.constant 0.000000e+00 : f32
    %4 = vector.broadcast %cst_5 : f32 to vector<16x64xf32>
    %5 = arith.maximumf %3, %4 : vector<16x64xf32>
    %c0_6 = arith.constant 0 : index
    %c1 = arith.constant 1 : index
    %c0_7 = arith.constant 0 : index
    %c0_8 = arith.constant 0 : index
    %6 = vector.load %arg1[%c0_6, %c1, %c0_7, %c0_8] : memref<1x4x16x784xf32, #tpu.memory_space<vmem>>, vector<1x1x16x784xf32>
    %7 = vector.shape_cast %6 : vector<1x1x16x784xf32> to vector<16x784xf32>
    %cst_9 = arith.constant dense<0.000000e+00> : vector<16x64xf32>
    %8 = tpu.matmul %7, %0, %cst_9 {dimension_numbers = #tpu.dot_dimension_numbers<[1], [0], [0], [1], [0, 0, 1, 1], [], []>} : vector<16x784xf32>, vector<784x64xf32>, vector<16x64xf32> -> vector<16x64xf32>
    %cst_10 = arith.constant 0.000000e+00 : f32
    %9 = vector.broadcast %cst_10 : f32 to vector<16x64xf32>
    %10 = arith.maximumf %8, %9 : vector<16x64xf32>
    %c0_11 = arith.constant 0 : index
    %c2 = arith.constant 2 : index
    %c0_12 = arith.constant 0 : index
    %c0_13 = arith.constant 0 : index
    %11 = vector.load %arg1[%c0_11, %c2, %c0_12, %c0_13] : memref<1x4x16x784xf32, #tpu.memory_space<vmem>>, vector<1x1x16x784xf32>
    %12 = vector.shape_cast %11 : vector<1x1x16x784xf32> to vector<16x784xf32>
    %cst_14 = arith.constant dense<0.000000e+00> : vector<16x64xf32>
    %13 = tpu.matmul %12, %0, %cst_14 {dimension_numbers = #tpu.dot_dimension_numbers<[1], [0], [0], [1], [0, 0, 1, 1], [], []>} : vector<16x784xf32>, vector<784x64xf32>, vector<16x64xf32> -> vector<16x64xf32>
    %cst_15 = arith.constant 0.000000e+00 : f32
    %14 = vector.broadcast %cst_15 : f32 to vector<16x64xf32>
    %15 = arith.maximumf %13, %14 : vector<16x64xf32>
    %c0_16 = arith.constant 0 : index
    %c3 = arith.constant 3 : index
    %c0_17 = arith.constant 0 : index
    %c0_18 = arith.constant 0 : index
    %16 = vector.load %arg1[%c0_16, %c3, %c0_17, %c0_18] : memref<1x4x16x784xf32, #tpu.memory_space<vmem>>, vector<1x1x16x784xf32>
    %17 = vector.shape_cast %16 : vector<1x1x16x784xf32> to vector<16x784xf32>
    %cst_19 = arith.constant dense<0.000000e+00> : vector<16x64xf32>
    %18 = tpu.matmul %17, %0, %cst_19 {dimension_numbers = #tpu.dot_dimension_numbers<[1], [0], [0], [1], [0, 0, 1, 1], [], []>} : vector<16x784xf32>, vector<784x64xf32>, vector<16x64xf32> -> vector<16x64xf32>
    %cst_20 = arith.constant 0.000000e+00 : f32
    %19 = vector.broadcast %cst_20 : f32 to vector<16x64xf32>
    %20 = arith.maximumf %18, %19 : vector<16x64xf32>
    %21 = arith.maximumf %5, %10 : vector<16x64xf32>
    %22 = arith.maximumf %15, %20 : vector<16x64xf32>
    %23 = arith.maximumf %21, %22 : vector<16x64xf32>
    %24 = tpu.iota {dimensions = array<i32: 0>} : vector<16x1xi32>
    %c3_i32 = arith.constant 3 : i32
    %25 = vector.broadcast %c3_i32 : i32 to vector<16x1xi32>
    %26 = arith.andi %24, %25 : vector<16x1xi32>
    %c0_i32 = arith.constant 0 : i32
    %27 = vector.broadcast %c0_i32 : i32 to vector<16x1xi32>
    %28 = arith.cmpi ne, %26, %27 : vector<16x1xi32>
    %cst_21 = arith.constant 0.000000e+00 : f32
    %29 = vector.broadcast %cst_21 : f32 to vector<1x64xf32>
    %c0_22 = arith.constant 0 : index
    %c0_23 = arith.constant 0 : index
    %30 = vector.load %arg5[%c0_22, %c0_23] : memref<16x64xf32, #tpu.memory_space<vmem>>, vector<1x64xf32>
    tpu.vector_store %arg5[%c0_22, %c0_23], %29 {strides = array<i32>} : memref<16x64xf32, #tpu.memory_space<vmem>>, vector<1x64xf32>,
    %31 = vector.extract_strided_slice %10 {offsets = [0, 0], sizes = [15, 64], strides = [1, 1]} : vector<16x64xf32> to vector<15x64xf32>
    %c1_24 = arith.constant 1 : index
    %c0_25 = arith.constant 0 : index
    %32 = vector.load %arg5[%c1_24, %c0_25] : memref<16x64xf32, #tpu.memory_space<vmem>>, vector<15x64xf32>
    tpu.vector_store %arg5[%c1_24, %c0_25], %31 {strides = array<i32>} : memref<16x64xf32, #tpu.memory_space<vmem>>, vector<15x64xf32>,
    %c0_26 = arith.constant 0 : index
    %c0_27 = arith.constant 0 : index
    %33 = vector.load %arg5[%c0_26, %c0_27] : memref<16x64xf32, #tpu.memory_space<vmem>>, vector<16x64xf32>
    %cst_28 = arith.constant 0.000000e+00 : f32
    %34 = vector.shape_cast %28 : vector<16x1xi1> to vector<16x1xi1>
    %35 = vector.broadcast %34 : vector<16x1xi1> to vector<16x64xi1>
    %36 = vector.broadcast %cst_28 : f32 to vector<16x64xf32>
    %37 = arith.select %35, %33, %36 : vector<16x64xi1>, vector<16x64xf32>
    %38 = arith.maximumf %23, %37 : vector<16x64xf32>
    %cst_29 = arith.constant 0.000000e+00 : f32
    %39 = vector.broadcast %cst_29 : f32 to vector<1x64xf32>
    %c0_30 = arith.constant 0 : index
    %c0_31 = arith.constant 0 : index
    %40 = vector.load %arg5[%c0_30, %c0_31] : memref<16x64xf32, #tpu.memory_space<vmem>>, vector<1x64xf32>
    tpu.vector_store %arg5[%c0_30, %c0_31], %39 {strides = array<i32>} : memref<16x64xf32, #tpu.memory_space<vmem>>, vector<1x64xf32>,
    %41 = vector.extract_strided_slice %20 {offsets = [0, 0], sizes = [15, 64], strides = [1, 1]} : vector<16x64xf32> to vector<15x64xf32>
    %c1_32 = arith.constant 1 : index
    %c0_33 = arith.constant 0 : index
    %42 = vector.load %arg5[%c1_32, %c0_33] : memref<16x64xf32, #tpu.memory_space<vmem>>, vector<15x64xf32>
    tpu.vector_store %arg5[%c1_32, %c0_33], %41 {strides = array<i32>} : memref<16x64xf32, #tpu.memory_space<vmem>>, vector<15x64xf32>,
    %c0_34 = arith.constant 0 : index
    %c0_35 = arith.constant 0 : index
    %43 = vector.load %arg5[%c0_34, %c0_35] : memref<16x64xf32, #tpu.memory_space<vmem>>, vector<16x64xf32>
    %cst_36 = arith.constant 0.000000e+00 : f32
    %44 = vector.shape_cast %28 : vector<16x1xi1> to vector<16x1xi1>
    %45 = vector.broadcast %44 : vector<16x1xi1> to vector<16x64xi1>
    %46 = vector.broadcast %cst_36 : f32 to vector<16x64xf32>
    %47 = arith.select %45, %43, %46 : vector<16x64xi1>, vector<16x64xf32>
    %48 = arith.maximumf %38, %47 : vector<16x64xf32>
    %cst_37 = arith.constant 0.000000e+00 : f32
    %49 = vector.broadcast %cst_37 : f32 to vector<4x64xf32>
    %c0_38 = arith.constant 0 : index
    %c0_39 = arith.constant 0 : index
    %50 = vector.load %arg5[%c0_38, %c0_39] : memref<16x64xf32, #tpu.memory_space<vmem>>, vector<4x64xf32>
    tpu.vector_store %arg5[%c0_38, %c0_39], %49 {strides = array<i32>} : memref<16x64xf32, #tpu.memory_space<vmem>>, vector<4x64xf32>,
    %51 = vector.extract_strided_slice %15 {offsets = [0, 0], sizes = [12, 64], strides = [1, 1]} : vector<16x64xf32> to vector<12x64xf32>
    %c4 = arith.constant 4 : index
    %c0_40 = arith.constant 0 : index
    %52 = vector.load %arg5[%c4, %c0_40] : memref<16x64xf32, #tpu.memory_space<vmem>>, vector<12x64xf32>
    tpu.vector_store %arg5[%c4, %c0_40], %51 {strides = array<i32>} : memref<16x64xf32, #tpu.memory_space<vmem>>, vector<12x64xf32>,
    %c0_41 = arith.constant 0 : index
    %c0_42 = arith.constant 0 : index
    %53 = vector.load %arg5[%c0_41, %c0_42] : memref<16x64xf32, #tpu.memory_space<vmem>>, vector<16x64xf32>
    %54 = arith.maximumf %48, %53 : vector<16x64xf32>
    %cst_43 = arith.constant 0.000000e+00 : f32
    %55 = vector.broadcast %cst_43 : f32 to vector<4x64xf32>
    %c0_44 = arith.constant 0 : index
    %c0_45 = arith.constant 0 : index
    %56 = vector.load %arg5[%c0_44, %c0_45] : memref<16x64xf32, #tpu.memory_space<vmem>>, vector<4x64xf32>
    tpu.vector_store %arg5[%c0_44, %c0_45], %55 {strides = array<i32>} : memref<16x64xf32, #tpu.memory_space<vmem>>, vector<4x64xf32>,
    %57 = vector.extract_strided_slice %20 {offsets = [0, 0], sizes = [12, 64], strides = [1, 1]} : vector<16x64xf32> to vector<12x64xf32>
    %c4_46 = arith.constant 4 : index
    %c0_47 = arith.constant 0 : index
    %58 = vector.load %arg5[%c4_46, %c0_47] : memref<16x64xf32, #tpu.memory_space<vmem>>, vector<12x64xf32>
    tpu.vector_store %arg5[%c4_46, %c0_47], %57 {strides = array<i32>} : memref<16x64xf32, #tpu.memory_space<vmem>>, vector<12x64xf32>,
    %c0_48 = arith.constant 0 : index
    %c0_49 = arith.constant 0 : index
    %59 = vector.load %arg5[%c0_48, %c0_49] : memref<16x64xf32, #tpu.memory_space<vmem>>, vector<16x64xf32>
    %60 = arith.maximumf %54, %59 : vector<16x64xf32>
    %cst_50 = arith.constant 0.000000e+00 : f32
    %61 = vector.broadcast %cst_50 : f32 to vector<5x64xf32>
    %c0_51 = arith.constant 0 : index
    %c0_52 = arith.constant 0 : index
    %62 = vector.load %arg5[%c0_51, %c0_52] : memref<16x64xf32, #tpu.memory_space<vmem>>, vector<5x64xf32>
    tpu.vector_store %arg5[%c0_51, %c0_52], %61 {strides = array<i32>} : memref<16x64xf32, #tpu.memory_space<vmem>>, vector<5x64xf32>,
    %63 = vector.extract_strided_slice %20 {offsets = [0, 0], sizes = [11, 64], strides = [1, 1]} : vector<16x64xf32> to vector<11x64xf32>
    %c5 = arith.constant 5 : index
    %c0_53 = arith.constant 0 : index
    %64 = vector.load %arg5[%c5, %c0_53] : memref<16x64xf32, #tpu.memory_space<vmem>>, vector<11x64xf32>
    tpu.vector_store %arg5[%c5, %c0_53], %63 {strides = array<i32>} : memref<16x64xf32, #tpu.memory_space<vmem>>, vector<11x64xf32>,
    %c0_54 = arith.constant 0 : index
    %c0_55 = arith.constant 0 : index
    %65 = vector.load %arg5[%c0_54, %c0_55] : memref<16x64xf32, #tpu.memory_space<vmem>>, vector<16x64xf32>
    %cst_56 = arith.constant 0.000000e+00 : f32
    %66 = vector.shape_cast %28 : vector<16x1xi1> to vector<16x1xi1>
    %67 = vector.broadcast %66 : vector<16x1xi1> to vector<16x64xi1>
    %68 = vector.broadcast %cst_56 : f32 to vector<16x64xf32>
    %69 = arith.select %67, %65, %68 : vector<16x64xi1>, vector<16x64xf32>
    %70 = arith.maximumf %60, %69 : vector<16x64xf32>
    %c0_57 = arith.constant 0 : index
    %c0_58 = arith.constant 0 : index
    %71 = vector.load %arg3[%c0_57, %c0_58] : memref<16x64xf32, #tpu.memory_space<vmem>>, vector<16x64xf32>
    %72 = arith.addf %70, %71 : vector<16x64xf32>
    %c0_59 = arith.constant 0 : index
    %c0_60 = arith.constant 0 : index
    %c0_61 = arith.constant 0 : index
    %73 = vector.load %arg4[%c0_59, %c0_60, %c0_61] : memref<1x16x64xf32, #tpu.memory_space<vmem>>, vector<1x16x64xf32>
    %74 = vector.shape_cast %73 : vector<1x16x64xf32> to vector<16x64xf32>
    %75 = vector.shape_cast %72 : vector<16x64xf32> to vector<1x16x64xf32>
    tpu.vector_store %arg4[%c0_59, %c0_60, %c0_61], %75 {strides = array<i32>} : memref<1x16x64xf32, #tpu.memory_space<vmem>>, vector<1x16x64xf32>,
    return
  }
  func.func @transform_0(%arg0: i32) -> (i32, i32, i32, i32) {
    %c0_i32 = arith.constant 0 : i32
    %c0_i32_0 = arith.constant 0 : i32
    %c0_i32_1 = arith.constant 0 : i32
    %c0_i32_2 = arith.constant 0 : i32
    return %arg0, %c0_i32, %c0_i32_0, %c0_i32_1 : i32, i32, i32, i32
  }
  func.func @transform_1(%arg0: i32) -> (i32, i32) {
    %c0_i32 = arith.constant 0 : i32
    %c0_i32_0 = arith.constant 0 : i32
    %c0_i32_1 = arith.constant 0 : i32
    return %c0_i32, %c0_i32_0 : i32, i32
  }
  func.func @transform_2(%arg0: i32) -> (i32, i32) {
    %c0_i32 = arith.constant 0 : i32
    %c0_i32_0 = arith.constant 0 : i32
    %c0_i32_1 = arith.constant 0 : i32
    return %c0_i32, %c0_i32_0 : i32, i32
  }
  func.func @transform_3(%arg0: i32) -> (i32, i32, i32) {
    %c0_i32 = arith.constant 0 : i32
    %c0_i32_0 = arith.constant 0 : i32
    %c0_i32_1 = arith.constant 0 : i32
    return %arg0, %c0_i32, %c0_i32_0 : i32, i32, i32
  }
}

module attributes {stable_mosaic.version = 11 : i64} {
  func.func @_encoder_layer_kernel(%arg0: i32, %arg1: memref<1x16x64xf32, #tpu.memory_space<vmem>>, %arg2: memref<1x64xf32, #tpu.memory_space<vmem>>, %arg3: memref<1x64xf32, #tpu.memory_space<vmem>>, %arg4: memref<64x192xf32, #tpu.memory_space<vmem>>, %arg5: memref<64x64xf32, #tpu.memory_space<vmem>>, %arg6: memref<1x64xf32, #tpu.memory_space<vmem>>, %arg7: memref<1x64xf32, #tpu.memory_space<vmem>>, %arg8: memref<1x64xf32, #tpu.memory_space<vmem>>, %arg9: memref<64x192xf32, #tpu.memory_space<vmem>>, %arg10: memref<1x192xf32, #tpu.memory_space<vmem>>, %arg11: memref<192x64xf32, #tpu.memory_space<vmem>>, %arg12: memref<1x64xf32, #tpu.memory_space<vmem>>, %arg13: memref<1x16x64xf32, #tpu.memory_space<vmem>>) attributes {dimension_semantics = [#tpu.dimension_semantics<parallel>], iteration_bounds = array<i64: 2>, scalar_prefetch = 0 : i64, scratch_operands = 0 : i64, tpu.core_type = #tpu.core_type<tc>, window_params = [{transform_indices = @transform_0, window_bounds = array<i64: 1, 16, 64>}, {pipeline_mode = #tpu.pipeline_mode<synchronous>, transform_indices = @transform_1, window_bounds = array<i64: 1, 64>}, {pipeline_mode = #tpu.pipeline_mode<synchronous>, transform_indices = @transform_2, window_bounds = array<i64: 1, 64>}, {pipeline_mode = #tpu.pipeline_mode<synchronous>, transform_indices = @transform_3, window_bounds = array<i64: 64, 192>}, {pipeline_mode = #tpu.pipeline_mode<synchronous>, transform_indices = @transform_4, window_bounds = array<i64: 64, 64>}, {pipeline_mode = #tpu.pipeline_mode<synchronous>, transform_indices = @transform_5, window_bounds = array<i64: 1, 64>}, {pipeline_mode = #tpu.pipeline_mode<synchronous>, transform_indices = @transform_6, window_bounds = array<i64: 1, 64>}, {pipeline_mode = #tpu.pipeline_mode<synchronous>, transform_indices = @transform_7, window_bounds = array<i64: 1, 64>}, {pipeline_mode = #tpu.pipeline_mode<synchronous>, transform_indices = @transform_8, window_bounds = array<i64: 64, 192>}, {pipeline_mode = #tpu.pipeline_mode<synchronous>, transform_indices = @transform_9, window_bounds = array<i64: 1, 192>}, {pipeline_mode = #tpu.pipeline_mode<synchronous>, transform_indices = @transform_10, window_bounds = array<i64: 192, 64>}, {pipeline_mode = #tpu.pipeline_mode<synchronous>, transform_indices = @transform_11, window_bounds = array<i64: 1, 64>}, {transform_indices = @transform_12, window_bounds = array<i64: 1, 16, 64>}]} {
    %c0 = arith.constant 0 : index
    %c0_0 = arith.constant 0 : index
    %c0_1 = arith.constant 0 : index
    %0 = vector.load %arg1[%c0, %c0_0, %c0_1] : memref<1x16x64xf32, #tpu.memory_space<vmem>>, vector<1x16x64xf32>
    %1 = vector.shape_cast %0 : vector<1x16x64xf32> to vector<16x64xf32>
    %c0_2 = arith.constant 0 : index
    %c0_3 = arith.constant 0 : index
    %2 = vector.load %arg2[%c0_2, %c0_3] : memref<1x64xf32, #tpu.memory_space<vmem>>, vector<1x64xf32>
    %c0_4 = arith.constant 0 : index
    %c0_5 = arith.constant 0 : index
    %3 = vector.load %arg3[%c0_4, %c0_5] : memref<1x64xf32, #tpu.memory_space<vmem>>, vector<1x64xf32>
    %cst = arith.constant dense<0.000000e+00> : vector<16xf32>
    %4 = vector.multi_reduction <add>, %1, %cst [1] : vector<16x64xf32> to vector<16xf32>
    %5 = vector.shape_cast %4 : vector<16xf32> to vector<16x1xf32>
    %cst_6 = arith.constant 6.400000e+01 : f32
    %6 = vector.broadcast %cst_6 : f32 to vector<16x1xf32>
    %7 = arith.divf %5, %6 : vector<16x1xf32>
    %8 = vector.broadcast %7 : vector<16x1xf32> to vector<16x64xf32>
    %9 = arith.subf %1, %8 : vector<16x64xf32>
    %10 = arith.mulf %9, %9 : vector<16x64xf32>
    %cst_7 = arith.constant dense<0.000000e+00> : vector<16xf32>
    %11 = vector.multi_reduction <add>, %10, %cst_7 [1] : vector<16x64xf32> to vector<16xf32>
    %12 = vector.shape_cast %11 : vector<16xf32> to vector<16x1xf32>
    %cst_8 = arith.constant 6.400000e+01 : f32
    %13 = vector.broadcast %cst_8 : f32 to vector<16x1xf32>
    %14 = arith.divf %12, %13 : vector<16x1xf32>
    %cst_9 = arith.constant 9.99999974E-6 : f32
    %15 = vector.broadcast %cst_9 : f32 to vector<16x1xf32>
    %16 = arith.addf %14, %15 : vector<16x1xf32>
    %17 = math.rsqrt %16 : vector<16x1xf32>
    %18 = vector.broadcast %17 : vector<16x1xf32> to vector<16x64xf32>
    %19 = arith.mulf %9, %18 : vector<16x64xf32>
    %20 = vector.broadcast %2 : vector<1x64xf32> to vector<16x64xf32>
    %21 = arith.mulf %19, %20 : vector<16x64xf32>
    %22 = vector.broadcast %3 : vector<1x64xf32> to vector<16x64xf32>
    %23 = arith.addf %21, %22 : vector<16x64xf32>
    %c0_10 = arith.constant 0 : index
    %c0_11 = arith.constant 0 : index
    %24 = vector.load %arg4[%c0_10, %c0_11] : memref<64x192xf32, #tpu.memory_space<vmem>>, vector<64x192xf32>
    %cst_12 = arith.constant dense<0.000000e+00> : vector<16x192xf32>
    %25 = tpu.matmul %23, %24, %cst_12 {dimension_numbers = #tpu.dot_dimension_numbers<[1], [0], [0], [1], [0, 0, 1, 1], [], []>} : vector<16x64xf32>, vector<64x192xf32>, vector<16x192xf32> -> vector<16x192xf32>
    %c0_13 = arith.constant 0 : index
    %c0_14 = arith.constant 0 : index
    %26 = vector.load %arg5[%c0_13, %c0_14] : memref<64x64xf32, #tpu.memory_space<vmem>>, vector<64x64xf32>
    %c0_15 = arith.constant 0 : index
    %c0_16 = arith.constant 0 : index
    %27 = vector.load %arg6[%c0_15, %c0_16] : memref<1x64xf32, #tpu.memory_space<vmem>>, vector<1x64xf32>
    %28 = vector.broadcast %27 : vector<1x64xf32> to vector<16x64xf32>
    %29 = arith.addf %28, %1 : vector<16x64xf32>
    %30 = vector.extract_strided_slice %25 {offsets = [0, 0], sizes = [16, 32], strides = [1, 1]} : vector<16x192xf32> to vector<16x32xf32>
    %31 = vector.extract_strided_slice %25 {offsets = [0, 64], sizes = [16, 32], strides = [1, 1]} : vector<16x192xf32> to vector<16x32xf32>
    %32 = vector.extract_strided_slice %25 {offsets = [0, 128], sizes = [16, 32], strides = [1, 1]} : vector<16x192xf32> to vector<16x32xf32>
    %cst_17 = arith.constant dense<0.000000e+00> : vector<16x16xf32>
    %33 = tpu.matmul %30, %31, %cst_17 {dimension_numbers = #tpu.dot_dimension_numbers<[1], [1], [0], [0], [0, 0, 1, 0], [], []>} : vector<16x32xf32>, vector<16x32xf32>, vector<16x16xf32> -> vector<16x16xf32>
    %cst_18 = arith.constant 0.176776692 : f32
    %34 = vector.broadcast %cst_18 : f32 to vector<16x16xf32>
    %35 = arith.mulf %33, %34 : vector<16x16xf32>
    %cst_19 = arith.constant dense<0xFF800000> : vector<16xf32>
    %36 = vector.multi_reduction <maximumf>, %35, %cst_19 [1] : vector<16x16xf32> to vector<16xf32>
    %37 = vector.shape_cast %36 : vector<16xf32> to vector<16x1xf32>
    %38 = vector.broadcast %37 : vector<16x1xf32> to vector<16x16xf32>
    %39 = arith.subf %35, %38 : vector<16x16xf32>
    %40 = math.exp %39 : vector<16x16xf32>
    %cst_20 = arith.constant dense<0.000000e+00> : vector<16xf32>
    %41 = vector.multi_reduction <add>, %40, %cst_20 [1] : vector<16x16xf32> to vector<16xf32>
    %42 = vector.shape_cast %41 : vector<16xf32> to vector<16x1xf32>
    %43 = tpu.reciprocal %42 {approx = true} : vector<16x1xf32> -> vector<16x1xf32>
    %44 = vector.broadcast %43 : vector<16x1xf32> to vector<16x16xf32>
    %45 = arith.mulf %40, %44 : vector<16x16xf32>
    %cst_21 = arith.constant dense<0.000000e+00> : vector<16x32xf32>
    %46 = tpu.matmul %45, %32, %cst_21 {dimension_numbers = #tpu.dot_dimension_numbers<[1], [0], [0], [1], [0, 0, 1, 1], [], []>} : vector<16x16xf32>, vector<16x32xf32>, vector<16x32xf32> -> vector<16x32xf32>
    %47 = vector.extract_strided_slice %26 {offsets = [0, 0], sizes = [32, 64], strides = [1, 1]} : vector<64x64xf32> to vector<32x64xf32>
    %cst_22 = arith.constant dense<0.000000e+00> : vector<16x64xf32>
    %48 = tpu.matmul %46, %47, %cst_22 {dimension_numbers = #tpu.dot_dimension_numbers<[1], [0], [0], [1], [0, 0, 1, 1], [], []>} : vector<16x32xf32>, vector<32x64xf32>, vector<16x64xf32> -> vector<16x64xf32>
    %49 = arith.addf %29, %48 : vector<16x64xf32>
    %50 = vector.extract_strided_slice %25 {offsets = [0, 32], sizes = [16, 32], strides = [1, 1]} : vector<16x192xf32> to vector<16x32xf32>
    %51 = vector.extract_strided_slice %25 {offsets = [0, 96], sizes = [16, 32], strides = [1, 1]} : vector<16x192xf32> to vector<16x32xf32>
    %52 = vector.extract_strided_slice %25 {offsets = [0, 160], sizes = [16, 32], strides = [1, 1]} : vector<16x192xf32> to vector<16x32xf32>
    %cst_23 = arith.constant dense<0.000000e+00> : vector<16x16xf32>
    %53 = tpu.matmul %50, %51, %cst_23 {dimension_numbers = #tpu.dot_dimension_numbers<[1], [1], [0], [0], [0, 0, 1, 0], [], []>} : vector<16x32xf32>, vector<16x32xf32>, vector<16x16xf32> -> vector<16x16xf32>
    %cst_24 = arith.constant 0.176776692 : f32
    %54 = vector.broadcast %cst_24 : f32 to vector<16x16xf32>
    %55 = arith.mulf %53, %54 : vector<16x16xf32>
    %cst_25 = arith.constant dense<0xFF800000> : vector<16xf32>
    %56 = vector.multi_reduction <maximumf>, %55, %cst_25 [1] : vector<16x16xf32> to vector<16xf32>
    %57 = vector.shape_cast %56 : vector<16xf32> to vector<16x1xf32>
    %58 = vector.broadcast %57 : vector<16x1xf32> to vector<16x16xf32>
    %59 = arith.subf %55, %58 : vector<16x16xf32>
    %60 = math.exp %59 : vector<16x16xf32>
    %cst_26 = arith.constant dense<0.000000e+00> : vector<16xf32>
    %61 = vector.multi_reduction <add>, %60, %cst_26 [1] : vector<16x16xf32> to vector<16xf32>
    %62 = vector.shape_cast %61 : vector<16xf32> to vector<16x1xf32>
    %63 = tpu.reciprocal %62 {approx = true} : vector<16x1xf32> -> vector<16x1xf32>
    %64 = vector.broadcast %63 : vector<16x1xf32> to vector<16x16xf32>
    %65 = arith.mulf %60, %64 : vector<16x16xf32>
    %cst_27 = arith.constant dense<0.000000e+00> : vector<16x32xf32>
    %66 = tpu.matmul %65, %52, %cst_27 {dimension_numbers = #tpu.dot_dimension_numbers<[1], [0], [0], [1], [0, 0, 1, 1], [], []>} : vector<16x16xf32>, vector<16x32xf32>, vector<16x32xf32> -> vector<16x32xf32>
    %67 = vector.extract_strided_slice %26 {offsets = [32, 0], sizes = [32, 64], strides = [1, 1]} : vector<64x64xf32> to vector<32x64xf32>
    %cst_28 = arith.constant dense<0.000000e+00> : vector<16x64xf32>
    %68 = tpu.matmul %66, %67, %cst_28 {dimension_numbers = #tpu.dot_dimension_numbers<[1], [0], [0], [1], [0, 0, 1, 1], [], []>} : vector<16x32xf32>, vector<32x64xf32>, vector<16x64xf32> -> vector<16x64xf32>
    %69 = arith.addf %49, %68 : vector<16x64xf32>
    %c0_29 = arith.constant 0 : index
    %c0_30 = arith.constant 0 : index
    %70 = vector.load %arg7[%c0_29, %c0_30] : memref<1x64xf32, #tpu.memory_space<vmem>>, vector<1x64xf32>
    %c0_31 = arith.constant 0 : index
    %c0_32 = arith.constant 0 : index
    %71 = vector.load %arg8[%c0_31, %c0_32] : memref<1x64xf32, #tpu.memory_space<vmem>>, vector<1x64xf32>
    %cst_33 = arith.constant dense<0.000000e+00> : vector<16xf32>
    %72 = vector.multi_reduction <add>, %69, %cst_33 [1] : vector<16x64xf32> to vector<16xf32>
    %73 = vector.shape_cast %72 : vector<16xf32> to vector<16x1xf32>
    %cst_34 = arith.constant 6.400000e+01 : f32
    %74 = vector.broadcast %cst_34 : f32 to vector<16x1xf32>
    %75 = arith.divf %73, %74 : vector<16x1xf32>
    %76 = vector.broadcast %75 : vector<16x1xf32> to vector<16x64xf32>
    %77 = arith.subf %69, %76 : vector<16x64xf32>
    %78 = arith.mulf %77, %77 : vector<16x64xf32>
    %cst_35 = arith.constant dense<0.000000e+00> : vector<16xf32>
    %79 = vector.multi_reduction <add>, %78, %cst_35 [1] : vector<16x64xf32> to vector<16xf32>
    %80 = vector.shape_cast %79 : vector<16xf32> to vector<16x1xf32>
    %cst_36 = arith.constant 6.400000e+01 : f32
    %81 = vector.broadcast %cst_36 : f32 to vector<16x1xf32>
    %82 = arith.divf %80, %81 : vector<16x1xf32>
    %cst_37 = arith.constant 9.99999974E-6 : f32
    %83 = vector.broadcast %cst_37 : f32 to vector<16x1xf32>
    %84 = arith.addf %82, %83 : vector<16x1xf32>
    %85 = math.rsqrt %84 : vector<16x1xf32>
    %86 = vector.broadcast %85 : vector<16x1xf32> to vector<16x64xf32>
    %87 = arith.mulf %77, %86 : vector<16x64xf32>
    %88 = vector.broadcast %70 : vector<1x64xf32> to vector<16x64xf32>
    %89 = arith.mulf %87, %88 : vector<16x64xf32>
    %90 = vector.broadcast %71 : vector<1x64xf32> to vector<16x64xf32>
    %91 = arith.addf %89, %90 : vector<16x64xf32>
    %c0_38 = arith.constant 0 : index
    %c0_39 = arith.constant 0 : index
    %92 = vector.load %arg9[%c0_38, %c0_39] : memref<64x192xf32, #tpu.memory_space<vmem>>, vector<64x192xf32>
    %cst_40 = arith.constant dense<0.000000e+00> : vector<16x192xf32>
    %93 = tpu.matmul %91, %92, %cst_40 {dimension_numbers = #tpu.dot_dimension_numbers<[1], [0], [0], [1], [0, 0, 1, 1], [], []>} : vector<16x64xf32>, vector<64x192xf32>, vector<16x192xf32> -> vector<16x192xf32>
    %c0_41 = arith.constant 0 : index
    %c0_42 = arith.constant 0 : index
    %94 = vector.load %arg10[%c0_41, %c0_42] : memref<1x192xf32, #tpu.memory_space<vmem>>, vector<1x192xf32>
    %95 = vector.broadcast %94 : vector<1x192xf32> to vector<16x192xf32>
    %96 = arith.addf %93, %95 : vector<16x192xf32>
    %cst_43 = arith.constant 5.000000e-01 : f32
    %97 = vector.broadcast %cst_43 : f32 to vector<16x192xf32>
    %98 = arith.mulf %97, %96 : vector<16x192xf32>
    %cst_44 = arith.constant 4.471500e-02 : f32
    %99 = vector.broadcast %cst_44 : f32 to vector<16x192xf32>
    %100 = arith.mulf %99, %96 : vector<16x192xf32>
    %101 = arith.mulf %100, %96 : vector<16x192xf32>
    %102 = arith.mulf %101, %96 : vector<16x192xf32>
    %103 = arith.addf %96, %102 : vector<16x192xf32>
    %cst_45 = arith.constant 0.797884583 : f32
    %104 = vector.broadcast %cst_45 : f32 to vector<16x192xf32>
    %105 = arith.mulf %104, %103 : vector<16x192xf32>
    %106 = math.tanh %105 : vector<16x192xf32>
    %cst_46 = arith.constant 1.000000e+00 : f32
    %107 = vector.broadcast %cst_46 : f32 to vector<16x192xf32>
    %108 = arith.addf %107, %106 : vector<16x192xf32>
    %109 = arith.mulf %98, %108 : vector<16x192xf32>
    %c0_47 = arith.constant 0 : index
    %c0_48 = arith.constant 0 : index
    %110 = vector.load %arg11[%c0_47, %c0_48] : memref<192x64xf32, #tpu.memory_space<vmem>>, vector<192x64xf32>
    %cst_49 = arith.constant dense<0.000000e+00> : vector<16x64xf32>
    %111 = tpu.matmul %109, %110, %cst_49 {dimension_numbers = #tpu.dot_dimension_numbers<[1], [0], [0], [1], [0, 0, 1, 1], [], []>} : vector<16x192xf32>, vector<192x64xf32>, vector<16x64xf32> -> vector<16x64xf32>
    %c0_50 = arith.constant 0 : index
    %c0_51 = arith.constant 0 : index
    %112 = vector.load %arg12[%c0_50, %c0_51] : memref<1x64xf32, #tpu.memory_space<vmem>>, vector<1x64xf32>
    %113 = vector.broadcast %112 : vector<1x64xf32> to vector<16x64xf32>
    %114 = arith.addf %111, %113 : vector<16x64xf32>
    %115 = arith.addf %114, %91 : vector<16x64xf32>
    %c0_52 = arith.constant 0 : index
    %c0_53 = arith.constant 0 : index
    %c0_54 = arith.constant 0 : index
    %116 = vector.load %arg13[%c0_52, %c0_53, %c0_54] : memref<1x16x64xf32, #tpu.memory_space<vmem>>, vector<1x16x64xf32>
    %117 = vector.shape_cast %116 : vector<1x16x64xf32> to vector<16x64xf32>
    %118 = vector.shape_cast %115 : vector<16x64xf32> to vector<1x16x64xf32>
    tpu.vector_store %arg13[%c0_52, %c0_53, %c0_54], %118 {strides = array<i32>} : memref<1x16x64xf32, #tpu.memory_space<vmem>>, vector<1x16x64xf32>,
    return
  }
  func.func @transform_0(%arg0: i32) -> (i32, i32, i32) {
    %c0_i32 = arith.constant 0 : i32
    %c0_i32_0 = arith.constant 0 : i32
    %c0_i32_1 = arith.constant 0 : i32
    return %arg0, %c0_i32, %c0_i32_0 : i32, i32, i32
  }
  func.func @transform_1(%arg0: i32) -> (i32, i32) {
    %c0_i32 = arith.constant 0 : i32
    %c0_i32_0 = arith.constant 0 : i32
    %c0_i32_1 = arith.constant 0 : i32
    return %c0_i32, %c0_i32_0 : i32, i32
  }
  func.func @transform_2(%arg0: i32) -> (i32, i32) {
    %c0_i32 = arith.constant 0 : i32
    %c0_i32_0 = arith.constant 0 : i32
    %c0_i32_1 = arith.constant 0 : i32
    return %c0_i32, %c0_i32_0 : i32, i32
  }
  func.func @transform_3(%arg0: i32) -> (i32, i32) {
    %c0_i32 = arith.constant 0 : i32
    %c0_i32_0 = arith.constant 0 : i32
    %c0_i32_1 = arith.constant 0 : i32
    return %c0_i32, %c0_i32_0 : i32, i32
  }
  func.func @transform_4(%arg0: i32) -> (i32, i32) {
    %c0_i32 = arith.constant 0 : i32
    %c0_i32_0 = arith.constant 0 : i32
    %c0_i32_1 = arith.constant 0 : i32
    return %c0_i32, %c0_i32_0 : i32, i32
  }
  func.func @transform_5(%arg0: i32) -> (i32, i32) {
    %c0_i32 = arith.constant 0 : i32
    %c0_i32_0 = arith.constant 0 : i32
    %c0_i32_1 = arith.constant 0 : i32
    return %c0_i32, %c0_i32_0 : i32, i32
  }
  func.func @transform_6(%arg0: i32) -> (i32, i32) {
    %c0_i32 = arith.constant 0 : i32
    %c0_i32_0 = arith.constant 0 : i32
    %c0_i32_1 = arith.constant 0 : i32
    return %c0_i32, %c0_i32_0 : i32, i32
  }
  func.func @transform_7(%arg0: i32) -> (i32, i32) {
    %c0_i32 = arith.constant 0 : i32
    %c0_i32_0 = arith.constant 0 : i32
    %c0_i32_1 = arith.constant 0 : i32
    return %c0_i32, %c0_i32_0 : i32, i32
  }
  func.func @transform_8(%arg0: i32) -> (i32, i32) {
    %c0_i32 = arith.constant 0 : i32
    %c0_i32_0 = arith.constant 0 : i32
    %c0_i32_1 = arith.constant 0 : i32
    return %c0_i32, %c0_i32_0 : i32, i32
  }
  func.func @transform_9(%arg0: i32) -> (i32, i32) {
    %c0_i32 = arith.constant 0 : i32
    %c0_i32_0 = arith.constant 0 : i32
    %c0_i32_1 = arith.constant 0 : i32
    return %c0_i32, %c0_i32_0 : i32, i32
  }
  func.func @transform_10(%arg0: i32) -> (i32, i32) {
    %c0_i32 = arith.constant 0 : i32
    %c0_i32_0 = arith.constant 0 : i32
    %c0_i32_1 = arith.constant 0 : i32
    return %c0_i32, %c0_i32_0 : i32, i32
  }
  func.func @transform_11(%arg0: i32) -> (i32, i32) {
    %c0_i32 = arith.constant 0 : i32
    %c0_i32_0 = arith.constant 0 : i32
    %c0_i32_1 = arith.constant 0 : i32
    return %c0_i32, %c0_i32_0 : i32, i32
  }
  func.func @transform_12(%arg0: i32) -> (i32, i32, i32) {
    %c0_i32 = arith.constant 0 : i32
    %c0_i32_0 = arith.constant 0 : i32
    %c0_i32_1 = arith.constant 0 : i32
    return %arg0, %c0_i32, %c0_i32_0 : i32, i32, i32
  }
}

module attributes {stable_mosaic.version = 11 : i64} {
  func.func @_tail_kernel(%arg0: i32, %arg1: memref<1x16x64xf32, #tpu.memory_space<vmem>>, %arg2: memref<1x64xf32, #tpu.memory_space<vmem>>, %arg3: memref<1x64xf32, #tpu.memory_space<vmem>>, %arg4: memref<1x64xf32, #tpu.memory_space<vmem>>, %arg5: memref<1x1xf32, #tpu.memory_space<vmem>>, %arg6: memref<64x17xf32, #tpu.memory_space<vmem>>, %arg7: memref<1x17xf32, #tpu.memory_space<vmem>>, %arg8: memref<1x1x17xf32, #tpu.memory_space<vmem>>) attributes {dimension_semantics = [#tpu.dimension_semantics<parallel>], iteration_bounds = array<i64: 2>, scalar_prefetch = 0 : i64, scratch_operands = 0 : i64, tpu.core_type = #tpu.core_type<tc>, window_params = [{transform_indices = @transform_0, window_bounds = array<i64: 1, 16, 64>}, {pipeline_mode = #tpu.pipeline_mode<synchronous>, transform_indices = @transform_1, window_bounds = array<i64: 1, 64>}, {pipeline_mode = #tpu.pipeline_mode<synchronous>, transform_indices = @transform_2, window_bounds = array<i64: 1, 64>}, {pipeline_mode = #tpu.pipeline_mode<synchronous>, transform_indices = @transform_3, window_bounds = array<i64: 1, 64>}, {pipeline_mode = #tpu.pipeline_mode<synchronous>, transform_indices = @transform_4, window_bounds = array<i64: 1, 1>}, {pipeline_mode = #tpu.pipeline_mode<synchronous>, transform_indices = @transform_5, window_bounds = array<i64: 64, 17>}, {pipeline_mode = #tpu.pipeline_mode<synchronous>, transform_indices = @transform_6, window_bounds = array<i64: 1, 17>}, {transform_indices = @transform_7, window_bounds = array<i64: 1, 1, 17>}]} {
    %c0 = arith.constant 0 : index
    %c0_0 = arith.constant 0 : index
    %c0_1 = arith.constant 0 : index
    %0 = vector.load %arg1[%c0, %c0_0, %c0_1] : memref<1x16x64xf32, #tpu.memory_space<vmem>>, vector<1x16x64xf32>
    %1 = vector.shape_cast %0 : vector<1x16x64xf32> to vector<16x64xf32>
    %c0_2 = arith.constant 0 : index
    %c0_3 = arith.constant 0 : index
    %2 = vector.load %arg2[%c0_2, %c0_3] : memref<1x64xf32, #tpu.memory_space<vmem>>, vector<1x64xf32>
    %c0_4 = arith.constant 0 : index
    %c0_5 = arith.constant 0 : index
    %3 = vector.load %arg3[%c0_4, %c0_5] : memref<1x64xf32, #tpu.memory_space<vmem>>, vector<1x64xf32>
    %cst = arith.constant dense<0.000000e+00> : vector<16xf32>
    %4 = vector.multi_reduction <add>, %1, %cst [1] : vector<16x64xf32> to vector<16xf32>
    %5 = vector.shape_cast %4 : vector<16xf32> to vector<16x1xf32>
    %cst_6 = arith.constant 6.400000e+01 : f32
    %6 = vector.broadcast %cst_6 : f32 to vector<16x1xf32>
    %7 = arith.divf %5, %6 : vector<16x1xf32>
    %8 = vector.broadcast %7 : vector<16x1xf32> to vector<16x64xf32>
    %9 = arith.subf %1, %8 : vector<16x64xf32>
    %10 = arith.mulf %9, %9 : vector<16x64xf32>
    %cst_7 = arith.constant dense<0.000000e+00> : vector<16xf32>
    %11 = vector.multi_reduction <add>, %10, %cst_7 [1] : vector<16x64xf32> to vector<16xf32>
    %12 = vector.shape_cast %11 : vector<16xf32> to vector<16x1xf32>
    %cst_8 = arith.constant 6.400000e+01 : f32
    %13 = vector.broadcast %cst_8 : f32 to vector<16x1xf32>
    %14 = arith.divf %12, %13 : vector<16x1xf32>
    %cst_9 = arith.constant 9.99999974E-6 : f32
    %15 = vector.broadcast %cst_9 : f32 to vector<16x1xf32>
    %16 = arith.addf %14, %15 : vector<16x1xf32>
    %17 = math.rsqrt %16 : vector<16x1xf32>
    %18 = vector.broadcast %17 : vector<16x1xf32> to vector<16x64xf32>
    %19 = arith.mulf %9, %18 : vector<16x64xf32>
    %20 = vector.broadcast %2 : vector<1x64xf32> to vector<16x64xf32>
    %21 = arith.mulf %19, %20 : vector<16x64xf32>
    %22 = vector.broadcast %3 : vector<1x64xf32> to vector<16x64xf32>
    %23 = arith.addf %21, %22 : vector<16x64xf32>
    %c0_10 = arith.constant 0 : index
    %c0_11 = arith.constant 0 : index
    %24 = vector.load %arg4[%c0_10, %c0_11] : memref<1x64xf32, #tpu.memory_space<vmem>>, vector<1x64xf32>
    %25 = vector.broadcast %24 : vector<1x64xf32> to vector<16x64xf32>
    %26 = arith.mulf %23, %25 : vector<16x64xf32>
    %cst_12 = arith.constant dense<0.000000e+00> : vector<16xf32>
    %27 = vector.multi_reduction <add>, %26, %cst_12 [1] : vector<16x64xf32> to vector<16xf32>
    %28 = vector.shape_cast %27 : vector<16xf32> to vector<16x1xf32>
    %c0_13 = arith.constant 0 : index
    %c0_14 = arith.constant 0 : index
    %29 = vector.load %arg5[%c0_13, %c0_14] : memref<1x1xf32, #tpu.memory_space<vmem>>, vector<1x1xf32>
    %30 = vector.broadcast %29 : vector<1x1xf32> to vector<16x1xf32>
    %31 = arith.addf %28, %30 : vector<16x1xf32>
    %cst_15 = arith.constant dense<0xFF800000> : vector<1xf32>
    %32 = vector.multi_reduction <maximumf>, %31, %cst_15 [0] : vector<16x1xf32> to vector<1xf32>
    %33 = vector.shape_cast %32 : vector<1xf32> to vector<1x1xf32>
    %34 = vector.broadcast %33 : vector<1x1xf32> to vector<16x1xf32>
    %35 = arith.subf %31, %34 : vector<16x1xf32>
    %36 = math.exp %35 : vector<16x1xf32>
    %cst_16 = arith.constant dense<0.000000e+00> : vector<1xf32>
    %37 = vector.multi_reduction <add>, %36, %cst_16 [0] : vector<16x1xf32> to vector<1xf32>
    %38 = vector.shape_cast %37 : vector<1xf32> to vector<1x1xf32>
    %39 = tpu.reciprocal %38 {approx = true} : vector<1x1xf32> -> vector<1x1xf32>
    %40 = vector.broadcast %39 : vector<1x1xf32> to vector<16x1xf32>
    %41 = arith.mulf %36, %40 : vector<16x1xf32>
    %42 = vector.broadcast %41 : vector<16x1xf32> to vector<16x64xf32>
    %43 = arith.mulf %42, %23 : vector<16x64xf32>
    %cst_17 = arith.constant dense<0.000000e+00> : vector<64xf32>
    %44 = vector.multi_reduction <add>, %43, %cst_17 [0] : vector<16x64xf32> to vector<64xf32>
    %45 = vector.shape_cast %44 : vector<64xf32> to vector<1x64xf32>
    %c0_18 = arith.constant 0 : index
    %c0_19 = arith.constant 0 : index
    %46 = vector.load %arg6[%c0_18, %c0_19] : memref<64x17xf32, #tpu.memory_space<vmem>>, vector<64x17xf32>
    %cst_20 = arith.constant dense<0.000000e+00> : vector<1x17xf32>
    %47 = tpu.matmul %45, %46, %cst_20 {dimension_numbers = #tpu.dot_dimension_numbers<[1], [0], [0], [1], [0, 0, 1, 1], [], []>} : vector<1x64xf32>, vector<64x17xf32>, vector<1x17xf32> -> vector<1x17xf32>
    %c0_21 = arith.constant 0 : index
    %c0_22 = arith.constant 0 : index
    %48 = vector.load %arg7[%c0_21, %c0_22] : memref<1x17xf32, #tpu.memory_space<vmem>>, vector<1x17xf32>
    %49 = arith.addf %47, %48 : vector<1x17xf32>
    %c0_23 = arith.constant 0 : index
    %c0_24 = arith.constant 0 : index
    %c0_25 = arith.constant 0 : index
    %50 = vector.load %arg8[%c0_23, %c0_24, %c0_25] : memref<1x1x17xf32, #tpu.memory_space<vmem>>, vector<1x1x17xf32>
    %51 = vector.shape_cast %50 : vector<1x1x17xf32> to vector<1x17xf32>
    %52 = vector.shape_cast %49 : vector<1x17xf32> to vector<1x1x17xf32>
    tpu.vector_store %arg8[%c0_23, %c0_24, %c0_25], %52 {strides = array<i32>} : memref<1x1x17xf32, #tpu.memory_space<vmem>>, vector<1x1x17xf32>,
    return
  }
  func.func @transform_0(%arg0: i32) -> (i32, i32, i32) {
    %c0_i32 = arith.constant 0 : i32
    %c0_i32_0 = arith.constant 0 : i32
    %c0_i32_1 = arith.constant 0 : i32
    return %arg0, %c0_i32, %c0_i32_0 : i32, i32, i32
  }
  func.func @transform_1(%arg0: i32) -> (i32, i32) {
    %c0_i32 = arith.constant 0 : i32
    %c0_i32_0 = arith.constant 0 : i32
    %c0_i32_1 = arith.constant 0 : i32
    return %c0_i32, %c0_i32_0 : i32, i32
  }
  func.func @transform_2(%arg0: i32) -> (i32, i32) {
    %c0_i32 = arith.constant 0 : i32
    %c0_i32_0 = arith.constant 0 : i32
    %c0_i32_1 = arith.constant 0 : i32
    return %c0_i32, %c0_i32_0 : i32, i32
  }
  func.func @transform_3(%arg0: i32) -> (i32, i32) {
    %c0_i32 = arith.constant 0 : i32
    %c0_i32_0 = arith.constant 0 : i32
    %c0_i32_1 = arith.constant 0 : i32
    return %c0_i32, %c0_i32_0 : i32, i32
  }
  func.func @transform_4(%arg0: i32) -> (i32, i32) {
    %c0_i32 = arith.constant 0 : i32
    %c0_i32_0 = arith.constant 0 : i32
    %c0_i32_1 = arith.constant 0 : i32
    return %c0_i32, %c0_i32_0 : i32, i32
  }
  func.func @transform_5(%arg0: i32) -> (i32, i32) {
    %c0_i32 = arith.constant 0 : i32
    %c0_i32_0 = arith.constant 0 : i32
    %c0_i32_1 = arith.constant 0 : i32
    return %c0_i32, %c0_i32_0 : i32, i32
  }
  func.func @transform_6(%arg0: i32) -> (i32, i32) {
    %c0_i32 = arith.constant 0 : i32
    %c0_i32_0 = arith.constant 0 : i32
    %c0_i32_1 = arith.constant 0 : i32
    return %c0_i32, %c0_i32_0 : i32, i32
  }
  func.func @transform_7(%arg0: i32) -> (i32, i32, i32) {
    %c0_i32 = arith.constant 0 : i32
    %c0_i32_0 = arith.constant 0 : i32
    %c0_i32_1 = arith.constant 0 : i32
    return %arg0, %c0_i32, %c0_i32_0 : i32, i32, i32
  }
}

</mosaic_0001>

<bundles_post_ra>
// kernel: cct_forward.5
= control target key start
LH: loop header
LB: loop body
LE: loop exit
PB: predicated region body
PF: predicated region fallthrough
CT: control target
= control target key end

     0   :  { %s3245_s9 = smov 0   ;;  %s5241_s0 = inlined_call_operand.vmem [shape: f32[2,4,256,147], index: 0, kind: input, shape index: {}]   ;;  %s5242_s1 = inlined_call_operand.vmem [shape: f32[147,16], index: 1, kind: input, shape index: {}]   ;;  %s5243_s2 = inlined_call_operand.vmem [shape: f32[2,256,16], index: 2, kind: output, shape index: {}]  }
   0x1 LB: > { %s2765_s10 = sadd.s32 4294967295, %s3226_s9   ;;  %p2769_p0 = scmp.ge.s32.totalorder %s3226_s9, 1  ;;  %s3226_s9 = sphi %s3245_s9, %s12_s9  }
   0x2   : > { %p112_p1 = scmp.lt.s32.totalorder %s3226_s9, 3 }
   0x4   : > { %p113_p2 = pnand %p2769_p0, %p112_p1 }
   0x6   : > { %116 = sbr.rel (%p113_p2) target bundleno = 560 (0x230), region = 28 }
   0xd   : > { %v144_v0 = vld [vmem:[%s5242_s1] sm:$0xff]  ;;  %v145_v1 = vld [vmem:[%s5242_s1 + $0x8] sm:$0xff]  ;;  %v146_v2 = vld [vmem:[%s5242_s1 + $0x10] sm:$0xff]  ;;  %v3228_v3 = vmov 0.0|0.0   ;;  %p134_p3 = scmp.lt.s32.totalorder %s2765_s10, 1  ;;  %vm227_vm0 = vcmask 154624  }
   0xe   : > { %3102 = vmatprep.subr.bf16.mxu0 %v3228_v3  ;;  %3129 = vmatprep.subr.bf16.mxu1 %v3228_v3  ;;  %v3264_v4 = vpack.c.bf16 %v145_v1, %v144_v0  ;;  %v147_v5 = vld [vmem:[%s5242_s1 + $0x18] sm:$0xff]  ;;  %v148_v7 = vld [vmem:[%s5242_s1 + $0x20] sm:$0xff]  ;;  %v149_v8 = vld [vmem:[%s5242_s1 + $0x28] sm:$0xff]  ;;  %v5246_v30 = vmov 0.0   ;;  %vm324_vm1 = vcmask 1042432   ;;  %vm2032_vm2 = vcmask 122880  }
   0xf   : > { %v3271_v6 = vpack.c.bf16 %v147_v5, %v146_v2  ;;  %s5458_s10 = smov (!%p134_p3, %s2765_s10), 1  ;;  %v3291_v9 = vpack.c.bf16 %v149_v8, %v148_v7  ;;  %v150_v12 = vld [vmem:[%s5242_s1 + $0x30] sm:$0xff]  ;;  %v151_v13 = vld [vmem:[%s5242_s1 + $0x38] sm:$0xff]  ;;  %v152_v15 = vld [vmem:[%s5242_s1 + $0x40] sm:$0xff]  ;;  %2033 = vst.msk [vmem:[#allocation2] sm:$0x1] %vm2032_vm2, %v5246_v30 }
  0x10   : > { %3104 = vmatpush1.bf16.msra.mxu0 %v3264_v4  ;;  %3131 = vmatpush1.bf16.msra.mxu1 %v3264_v4  ;;  %s3100_s23 = sshll.u32 %s5458_s10, 11  ;;  %v3307_v14 = vpack.c.bf16 %v151_v13, %v150_v12  ;;  %v153_v16 = vld [vmem:[%s5242_s1 + $0x48] sm:$0xff]  ;;  %v154_v18 = vld [vmem:[%s5242_s1 + $0x50] sm:$0xff]  ;;  %v155_v19 = vld [vmem:[%s5242_s1 + $0x58] sm:$0xff]  ;;  %vm2034_vm3 = vcmask 130048   ;;  %vm2066_vm4 = vcmask 129024  }
  0x11   : > { %3105 = vmatprep.subr.bf16.mxu0 %v3228_v3  ;;  %3132 = vmatprep.subr.bf16.mxu1 %v3228_v3  ;;  %s3287_s26 = scalar_lea.vmem %s5241_s0, %s3100_s23  ;;  %v3319_v17 = vpack.c.bf16 %v153_v16, %v152_v15  ;;  %v3331_v20 = vpack.c.bf16 %v155_v19, %v154_v18  ;;  %v156_v21 = vld [vmem:[%s5242_s1 + $0x60] sm:$0xff]  ;;  %v157_v22 = vld [vmem:[%s5242_s1 + $0x68] sm:$0xff]  ;;  %v158_v24 = vld [vmem:[%s5242_s1 + $0x70] sm:$0xff] }
  0x12   : > { %v164_v10 = vld [vmem:[%s3287_s26 + $0x8] sm:$0xff]  ;;  %v3343_v23 = vpack.c.bf16 %v157_v22, %v156_v21  ;;  %v159_v25 = vld [vmem:[%s5242_s1 + $0x78] sm:$0xff]  ;;  %v160_v27 = vld [vmem:[%s5242_s1 + $0x80] sm:$0xff] }
  0x13   : > { %v2808_v11 = vld [vmem:[%s3287_s26 + $0x208] sm:$0xff]  ;;  %2775 = vmatprep.mubr.msk.f32.mxu0 %vm227_vm0, %v164_v10  ;;  %v3355_v26 = vpack.c.bf16 %v159_v25, %v158_v24  ;;  %v3378_v31 = vld [vmem:[%s5242_s1 + $0x90] sm:$0x7]  ;;  %v163_v32 = vld [vmem:[%s3287_s26] sm:$0xff] }
  0x14   : > { %3107 = vmatpush1.bf16.msra.mxu0 %v3271_v6  ;;  %3134 = vmatpush1.bf16.msra.mxu1 %v3271_v6  ;;  %v161_v28 = vld [vmem:[%s5242_s1 + $0x88] sm:$0xff]  ;;  %v2807_v33 = vld [vmem:[%s3287_s26 + $0x200] sm:$0xff]  ;;  %v166_v34 = vld [vmem:[%s3287_s26 + $0x18] sm:$0xff] }
  0x15   : > { %3108 = vmatprep.subr.bf16.mxu0 %v3228_v3  ;;  %3135 = vmatprep.subr.bf16.mxu1 %v3228_v3  ;;  %v3367_v29 = vpack.c.bf16 %v161_v28, %v160_v27  ;;  %v2810_v35 = vld [vmem:[%s3287_s26 + $0x218] sm:$0xff]  ;;  %v165_v36 = vld [vmem:[%s3287_s26 + $0x10] sm:$0xff]  ;;  %v168_v38 = vld [vmem:[%s3287_s26 + $0x28] sm:$0xff] }
  0x16   : > { %2872 = vmatprep.mubr.msk.f32.mxu1 %vm227_vm0, %v2808_v11  ;;  %v2809_v37 = vld [vmem:[%s3287_s26 + $0x210] sm:$0xff]  ;;  %v2812_v39 = vld [vmem:[%s3287_s26 + $0x228] sm:$0xff]  ;;  %v167_v40 = vld [vmem:[%s3287_s26 + $0x20] sm:$0xff] }
  0x17   : > { %v2811_v41 = vld [vmem:[%s3287_s26 + $0x220] sm:$0xff]  ;;  %v170_v42 = vld [vmem:[%s3287_s26 + $0x38] sm:$0xff]  ;;  %v169_v44 = vld [vmem:[%s3287_s26 + $0x30] sm:$0xff] }
  0x18   : > { %3110 = vmatpush1.bf16.msra.mxu0 %v3291_v9  ;;  %3137 = vmatpush1.bf16.msra.mxu1 %v3291_v9  ;;  %v2814_v43 = vld [vmem:[%s3287_s26 + $0x238] sm:$0xff]  ;;  %v2813_v45 = vld [vmem:[%s3287_s26 + $0x230] sm:$0xff]  ;;  %v172_v46 = vld [vmem:[%s3287_s26 + $0x48] sm:$0xff] }
  0x19   : > { %3111 = vmatprep.subr.bf16.mxu0 %v3228_v3  ;;  %3138 = vmatprep.subr.bf16.mxu1 %v3228_v3  ;;  %v2816_v47 = vld [vmem:[%s3287_s26 + $0x248] sm:$0xff]  ;;  %v171_v48 = vld [vmem:[%s3287_s26 + $0x40] sm:$0xff]  ;;  %v174_v50 = vld [vmem:[%s3287_s26 + $0x58] sm:$0xff] }
  0x1a   : > { %v2815_v49 = vld [vmem:[%s3287_s26 + $0x240] sm:$0xff]  ;;  %v2818_v51 = vld [vmem:[%s3287_s26 + $0x258] sm:$0xff]  ;;  %v173_v52 = vld [vmem:[%s3287_s26 + $0x50] sm:$0xff] }
  0x1b   : > { %v2817_v53 = vld [vmem:[%s3287_s26 + $0x250] sm:$0xff]  ;;  %v176_v54 = vld [vmem:[%s3287_s26 + $0x68] sm:$0xff]  ;;  %v175_v56 = vld [vmem:[%s3287_s26 + $0x60] sm:$0xff] }
  0x1c   : > { %3113 = vmatpush1.bf16.msra.mxu0 %v3307_v14  ;;  %3140 = vmatpush1.bf16.msra.mxu1 %v3307_v14  ;;  %v2820_v55 = vld [vmem:[%s3287_s26 + $0x268] sm:$0xff]  ;;  %v2819_v57 = vld [vmem:[%s3287_s26 + $0x260] sm:$0xff]  ;;  %v178_v58 = vld [vmem:[%s3287_s26 + $0x78] sm:$0xff] }
  0x1d   : > { %3114 = vmatprep.subr.bf16.mxu0 %v3228_v3  ;;  %3141 = vmatprep.subr.bf16.mxu1 %v3228_v3  ;;  %v2822_v59 = vld [vmem:[%s3287_s26 + $0x278] sm:$0xff]  ;;  %v177_v60 = vld [vmem:[%s3287_s26 + $0x70] sm:$0xff]  ;;  %v180_v62 = vld [vmem:[%s3287_s26 + $0x88] sm:$0xff] }
  0x1e   : > { %v2821_v61 = vld [vmem:[%s3287_s26 + $0x270] sm:$0xff]  ;;  %v2824_v63 = vld [vmem:[%s3287_s26 + $0x288] sm:$0xff]  ;;  %v179_v0 = vld [vmem:[%s3287_s26 + $0x80] sm:$0xff] }
  0x1f   : > { %v2823_v1 = vld [vmem:[%s3287_s26 + $0x280] sm:$0xff]  ;;  %v182_v2 = vld [vmem:[%s3287_s26 + $0x98] sm:$0xff]  ;;  %v181_v5 = vld [vmem:[%s3287_s26 + $0x90] sm:$0xff] }
  0x20   : > { %3116 = vmatpush1.bf16.msra.mxu0 %v3319_v17  ;;  %3143 = vmatpush1.bf16.msra.mxu1 %v3319_v17  ;;  %v184_v7 = vld [vmem:[%s3287_s26 + $0xa8] sm:$0xff]  ;;  %v2827_v10 = vld [vmem:[%s3287_s26 + $0x2a0] sm:$0xff]  ;;  %v186_v11 = vld [vmem:[%s3287_s26 + $0xb8] sm:$0xff] }
  0x21   : > { %3117 = vmatprep.subr.bf16.mxu0 %v3228_v3  ;;  %3144 = vmatprep.subr.bf16.mxu1 %v3228_v3  ;;  %v2828_v8 = vld [vmem:[%s3287_s26 + $0x2a8] sm:$0xff]  ;;  %v2830_v12 = vld [vmem:[%s3287_s26 + $0x2b8] sm:$0xff]  ;;  %v2829_v13 = vld [vmem:[%s3287_s26 + $0x2b0] sm:$0xff] }
  0x22   : > { %v2832_v15 = vld [vmem:[%s3287_s26 + $0x2c8] sm:$0xff]  ;;  %v187_v16 = vld [vmem:[%s3287_s26 + $0xc0] sm:$0xff]  ;;  %v190_v18 = vld [vmem:[%s3287_s26 + $0xd8] sm:$0xff] }
  0x23   : > { %v2834_v19 = vld [vmem:[%s3287_s26 + $0x2d8] sm:$0xff]  ;;  %v2833_v21 = vld [vmem:[%s3287_s26 + $0x2d0] sm:$0xff]  ;;  %v192_v22 = vld [vmem:[%s3287_s26 + $0xe8] sm:$0xff] }
  0x24   : > { %3119 = vmatpush1.bf16.msra.mxu0 %v3331_v20  ;;  %3146 = vmatpush1.bf16.msra.mxu1 %v3331_v20  ;;  %v191_v24 = vld [vmem:[%s3287_s26 + $0xe0] sm:$0xff]  ;;  %v2838_v27 = vld [vmem:[%s3287_s26 + $0x2f8] sm:$0xff]  ;;  %v193_v28 = vld [vmem:[%s3287_s26 + $0xf0] sm:$0xff] }
  0x25   : > { %3120 = vmatprep.subr.bf16.mxu0 %v3228_v3  ;;  %3147 = vmatprep.subr.bf16.mxu1 %v3228_v3  ;;  %v2835_v25 = vld [vmem:[%s3287_s26 + $0x2e0] sm:$0xff] }
  0x28   : > { %3122 = vmatpush1.bf16.msra.mxu0 %v3343_v23  ;;  %3149 = vmatpush1.bf16.msra.mxu1 %v3343_v23 }
  0x29   : > { %3123 = vmatprep.subr.bf16.mxu0 %v3228_v3  ;;  %3150 = vmatprep.subr.bf16.mxu1 %v3228_v3 }
  0x2c   : > { %3125 = vmatpush1.bf16.msra.mxu0 %v3355_v26  ;;  %3152 = vmatpush1.bf16.msra.mxu1 %v3355_v26 }
  0x2d   : > { %3126 = vmatprep.subr.bf16.mxu0 %v3228_v3  ;;  %3153 = vmatprep.subr.bf16.mxu1 %v3228_v3 }
  0x30   : > { %3128 = vmatpush1.bf16.msra.mxu0 %v3367_v29  ;;  %3155 = vmatpush1.bf16.msra.mxu1 %v3367_v29 }
  0x31   : > { %364 = vmatprep.subr.mxu0 %v5246_v30  ;;  %782 = vmatprep.subr.mxu1 %v5246_v30 }
  0x34   : > { %2774 = vmatpush1.msk.msra.mxu0 %vm324_vm1, %v3378_v31  ;;  %2871 = vmatpush1.msk.msra.mxu1 %vm324_vm1, %v3378_v31 }
  0x35   : > { %393 = vmatmul.mubr.f32.vlgmr.msra.gmra.mrb[0].mxu0 %v163_v32  ;;  %811 = vmatmul.mubr.f32.vlgmr.msra.gmra.mrb[0].mxu1 %v2807_v33  ;;  %v2840_v32 = vld [vmem:[%s3287_s26 + $0x308] sm:$0xff]  ;;  %v195_v33 = vld [vmem:[%s3287_s26 + $0x100] sm:$0xff] }
  0x36   : > { %3183 = vmatprep.subr.bf16.mxu1 %v3228_v3  ;;  %2776 = vmatprep.mubr.msk.f32.mxu0 %vm227_vm0, %v166_v34  ;;  %v2839_v34 = vld [vmem:[%s3287_s26 + $0x300] sm:$0xff] }
  0x37   : > { %3185 = vmatpush1.bf16.msra.mxu1 %v3264_v4  ;;  %2873 = vmatprep.mubr.msk.f32.mxu1 %vm227_vm0, %v2810_v35  ;;  %v198_v35 = vld [vmem:[%s3287_s26 + $0x118] sm:$0xff] }
  0x38   : > { %3186 = vmatprep.subr.bf16.mxu1 %v3228_v3  ;;  %3156 = vmatprep.subr.bf16.mxu0 %v3228_v3 }
  0x39   : > { %398 = vmatmul.mubr.f32.gmra.mrb[2].mxu0 %v165_v36  ;;  %816 = vmatmul.mubr.f32.gmra.mrb[2].mxu1 %v2809_v37  ;;  %v2842_v36 = vld [vmem:[%s3287_s26 + $0x318] sm:$0xff]  ;;  %v197_v37 = vld [vmem:[%s3287_s26 + $0x110] sm:$0xff] }
  0x3a   : > { %2777 = vmatprep.mubr.msk.f32.mxu0 %vm227_vm0, %v168_v38  ;;  %2874 = vmatprep.mubr.msk.f32.mxu1 %vm227_vm0, %v2812_v39  ;;  %v2841_v38 = vld [vmem:[%s3287_s26 + $0x310] sm:$0xff]  ;;  %v200_v39 = vld [vmem:[%s3287_s26 + $0x128] sm:$0xff] }
  0x3b   : > { %3188 = vmatpush1.bf16.msra.mxu1 %v3271_v6  ;;  %3158 = vmatpush1.bf16.msra.mxu0 %v3264_v4  ;;  %v2826_v4 = vld [vmem:[%s3287_s26 + $0x298] sm:$0xff] }
  0x3c   : > { %3189 = vmatprep.subr.bf16.mxu1 %v3228_v3  ;;  %3159 = vmatprep.subr.bf16.mxu0 %v3228_v3 }
  0x3d   : > { %403 = vmatmul.mubr.f32.gmra.mrb[4].mxu0 %v167_v40  ;;  %821 = vmatmul.mubr.f32.gmra.mrb[4].mxu1 %v2811_v41  ;;  %v2844_v40 = vld [vmem:[%s3287_s26 + $0x328] sm:$0xff]  ;;  %v199_v41 = vld [vmem:[%s3287_s26 + $0x120] sm:$0xff] }
  0x3e   : > { %2778 = vmatprep.mubr.msk.f32.mxu0 %vm227_vm0, %v170_v42  ;;  %2875 = vmatprep.mubr.msk.f32.mxu1 %vm227_vm0, %v2814_v43  ;;  %v2843_v42 = vld [vmem:[%s3287_s26 + $0x320] sm:$0xff]  ;;  %v202_v43 = vld [vmem:[%s3287_s26 + $0x138] sm:$0xff] }
  0x3f   : > { %3191 = vmatpush1.bf16.msra.mxu1 %v3291_v9  ;;  %3161 = vmatpush1.bf16.msra.mxu0 %v3271_v6  ;;  %v2825_v6 = vld [vmem:[%s3287_s26 + $0x290] sm:$0xff] }
  0x40   : > { %3192 = vmatprep.subr.bf16.mxu1 %v3228_v3  ;;  %3162 = vmatprep.subr.bf16.mxu0 %v3228_v3 }
  0x41   : > { %408 = vmatmul.mubr.f32.gmra.mrb[6].mxu0 %v169_v44  ;;  %826 = vmatmul.mubr.f32.gmra.mrb[6].mxu1 %v2813_v45  ;;  %v2846_v44 = vld [vmem:[%s3287_s26 + $0x338] sm:$0xff]  ;;  %v201_v45 = vld [vmem:[%s3287_s26 + $0x130] sm:$0xff] }
  0x42   : > { %2779 = vmatprep.mubr.msk.f32.mxu0 %vm227_vm0, %v172_v46  ;;  %2876 = vmatprep.mubr.msk.f32.mxu1 %vm227_vm0, %v2816_v47  ;;  %v2845_v46 = vld [vmem:[%s3287_s26 + $0x330] sm:$0xff]  ;;  %v204_v47 = vld [vmem:[%s3287_s26 + $0x148] sm:$0xff] }
  0x43   : > { %3194 = vmatpush1.bf16.msra.mxu1 %v3307_v14  ;;  %3164 = vmatpush1.bf16.msra.mxu0 %v3291_v9  ;;  %v183_v9 = vld [vmem:[%s3287_s26 + $0xa0] sm:$0xff] }
  0x44   : > { %3195 = vmatprep.subr.bf16.mxu1 %v3228_v3  ;;  %3165 = vmatprep.subr.bf16.mxu0 %v3228_v3 }
  0x45   : > { %413 = vmatmul.mubr.f32.gmra.mrb[8].mxu0 %v171_v48  ;;  %831 = vmatmul.mubr.f32.gmra.mrb[8].mxu1 %v2815_v49  ;;  %v2848_v48 = vld [vmem:[%s3287_s26 + $0x348] sm:$0xff]  ;;  %v203_v49 = vld [vmem:[%s3287_s26 + $0x140] sm:$0xff] }
  0x46   : > { %2780 = vmatprep.mubr.msk.f32.mxu0 %vm227_vm0, %v174_v50  ;;  %2877 = vmatprep.mubr.msk.f32.mxu1 %vm227_vm0, %v2818_v51  ;;  %v2847_v50 = vld [vmem:[%s3287_s26 + $0x340] sm:$0xff]  ;;  %v206_v51 = vld [vmem:[%s3287_s26 + $0x158] sm:$0xff] }
  0x47   : > { %3197 = vmatpush1.bf16.msra.mxu1 %v3319_v17  ;;  %3167 = vmatpush1.bf16.msra.mxu0 %v3307_v14  ;;  %v188_v14 = vld [vmem:[%s3287_s26 + $0xc8] sm:$0xff] }
  0x48   : > { %3198 = vmatprep.subr.bf16.mxu1 %v3228_v3  ;;  %3168 = vmatprep.subr.bf16.mxu0 %v3228_v3 }
  0x49   : > { %418 = vmatmul.mubr.f32.gmra.mrb[10].mxu0 %v173_v52  ;;  %836 = vmatmul.mubr.f32.gmra.mrb[10].mxu1 %v2817_v53  ;;  %v2850_v52 = vld [vmem:[%s3287_s26 + $0x358] sm:$0xff]  ;;  %v205_v53 = vld [vmem:[%s3287_s26 + $0x150] sm:$0xff] }
  0x4a   : > { %2781 = vmatprep.mubr.msk.f32.mxu0 %vm227_vm0, %v176_v54  ;;  %2878 = vmatprep.mubr.msk.f32.mxu1 %vm227_vm0, %v2820_v55  ;;  %v2849_v54 = vld [vmem:[%s3287_s26 + $0x350] sm:$0xff]  ;;  %v208_v55 = vld [vmem:[%s3287_s26 + $0x168] sm:$0xff] }
  0x4b   : > { %3200 = vmatpush1.bf16.msra.mxu1 %v3331_v20  ;;  %3170 = vmatpush1.bf16.msra.mxu0 %v3319_v17  ;;  %v2831_v17 = vld [vmem:[%s3287_s26 + $0x2c0] sm:$0xff] }
  0x4c   : > { %3201 = vmatprep.subr.bf16.mxu1 %v3228_v3  ;;  %3171 = vmatprep.subr.bf16.mxu0 %v3228_v3 }
  0x4d   : > { %423 = vmatmul.mubr.f32.gmra.mrb[12].mxu0 %v175_v56  ;;  %841 = vmatmul.mubr.f32.gmra.mrb[12].mxu1 %v2819_v57  ;;  %v2852_v56 = vld [vmem:[%s3287_s26 + $0x368] sm:$0xff]  ;;  %v207_v57 = vld [vmem:[%s3287_s26 + $0x160] sm:$0xff] }
  0x4e   : > { %2782 = vmatprep.mubr.msk.f32.mxu0 %vm227_vm0, %v178_v58  ;;  %2879 = vmatprep.mubr.msk.f32.mxu1 %vm227_vm0, %v2822_v59  ;;  %v2851_v58 = vld [vmem:[%s3287_s26 + $0x360] sm:$0xff]  ;;  %v210_v59 = vld [vmem:[%s3287_s26 + $0x178] sm:$0xff] }
  0x4f   : > { %3203 = vmatpush1.bf16.msra.mxu1 %v3343_v23  ;;  %3173 = vmatpush1.bf16.msra.mxu0 %v3331_v20  ;;  %v189_v20 = vld [vmem:[%s3287_s26 + $0xd0] sm:$0xff] }
  0x50   : > { %3204 = vmatprep.subr.bf16.mxu1 %v3228_v3  ;;  %3174 = vmatprep.subr.bf16.mxu0 %v3228_v3 }
  0x51   : > { %428 = vmatmul.mubr.f32.gmra.mrb[14].mxu0 %v177_v60  ;;  %846 = vmatmul.mubr.f32.gmra.mrb[14].mxu1 %v2821_v61  ;;  %v2854_v60 = vld [vmem:[%s3287_s26 + $0x378] sm:$0xff]  ;;  %v209_v61 = vld [vmem:[%s3287_s26 + $0x170] sm:$0xff] }
  0x52   : > { %2783 = vmatprep.mubr.msk.f32.mxu0 %vm227_vm0, %v180_v62  ;;  %2880 = vmatprep.mubr.msk.f32.mxu1 %vm227_vm0, %v2824_v63  ;;  %v2853_v62 = vld [vmem:[%s3287_s26 + $0x370] sm:$0xff]  ;;  %v212_v63 = vld [vmem:[%s3287_s26 + $0x188] sm:$0xff] }
  0x53   : > { %3206 = vmatpush1.bf16.msra.mxu1 %v3355_v26  ;;  %3176 = vmatpush1.bf16.msra.mxu0 %v3343_v23  ;;  %v2836_v23 = vld [vmem:[%s3287_s26 + $0x2e8] sm:$0xff] }
  0x54   : > { %3207 = vmatprep.subr.bf16.mxu1 %v3228_v3  ;;  %3177 = vmatprep.subr.bf16.mxu0 %v3228_v3 }
  0x55   : > { %433 = vmatmul.mubr.f32.gmra.mrb[16].mxu0 %v179_v0  ;;  %851 = vmatmul.mubr.f32.gmra.mrb[16].mxu1 %v2823_v1  ;;  %v2856_v0 = vld [vmem:[%s3287_s26 + $0x388] sm:$0xff]  ;;  %v211_v1 = vld [vmem:[%s3287_s26 + $0x180] sm:$0xff] }
  0x56   : > { %2784 = vmatprep.mubr.msk.f32.mxu0 %vm227_vm0, %v182_v2  ;;  %2881 = vmatprep.mubr.msk.f32.mxu1 %vm227_vm0, %v2826_v4  ;;  %v2855_v2 = vld [vmem:[%s3287_s26 + $0x380] sm:$0xff]  ;;  %v214_v4 = vld [vmem:[%s3287_s26 + $0x198] sm:$0xff] }
  0x57   : > { %3209 = vmatpush1.bf16.msra.mxu1 %v3367_v29  ;;  %3179 = vmatpush1.bf16.msra.mxu0 %v3355_v26  ;;  %v194_v26 = vld [vmem:[%s3287_s26 + $0xf8] sm:$0xff] }
  0x58   : > { %1618 = vmatprep.subr.mxu1 %v5246_v30  ;;  %3180 = vmatprep.subr.bf16.mxu0 %v3228_v3  ;;  %v185_v3 = vld [vmem:[%s3287_s26 + $0xb0] sm:$0xff] }
  0x59   : > { %438 = vmatmul.mubr.f32.gmra.mrb[18].mxu0 %v181_v5  ;;  %856 = vmatmul.mubr.f32.gmra.mrb[18].mxu1 %v2825_v6  ;;  %v2858_v5 = vld [vmem:[%s3287_s26 + $0x398] sm:$0xff]  ;;  %v213_v6 = vld [vmem:[%s3287_s26 + $0x190] sm:$0xff] }
  0x5a   : > { %2785 = vmatprep.mubr.msk.f32.mxu0 %vm227_vm0, %v184_v7  ;;  %2882 = vmatprep.mubr.msk.f32.mxu1 %vm227_vm0, %v2828_v8  ;;  %v2857_v7 = vld [vmem:[%s3287_s26 + $0x390] sm:$0xff]  ;;  %v216_v8 = vld [vmem:[%s3287_s26 + $0x1a8] sm:$0xff] }
  0x5b   : > { %3065 = vmatpush1.msk.msra.mxu1 %vm324_vm1, %v3378_v31  ;;  %3182 = vmatpush1.bf16.msra.mxu0 %v3367_v29  ;;  %v2837_v29 = vld [vmem:[%s3287_s26 + $0x2f0] sm:$0xff] }
  0x5c   : > { %1200 = vmatprep.subr.mxu0 %v5246_v30 }
  0x5d   : > { %443 = vmatmul.mubr.f32.gmra.mrb[20].mxu0 %v183_v9  ;;  %861 = vmatmul.mubr.f32.gmra.mrb[20].mxu1 %v2827_v10  ;;  %v2860_v9 = vld [vmem:[%s3287_s26 + $0x3a8] sm:$0xff]  ;;  %v215_v10 = vld [vmem:[%s3287_s26 + $0x1a0] sm:$0xff] }
  0x5e   : > { %2786 = vmatprep.mubr.msk.f32.mxu0 %vm227_vm0, %v186_v11  ;;  %2883 = vmatprep.mubr.msk.f32.mxu1 %vm227_vm0, %v2830_v12  ;;  %v2859_v11 = vld [vmem:[%s3287_s26 + $0x3a0] sm:$0xff]  ;;  %v218_v12 = vld [vmem:[%s3287_s26 + $0x1b8] sm:$0xff] }
  0x5f   : > { %2968 = vmatpush1.msk.msra.mxu0 %vm324_vm1, %v3378_v31  ;;  %v196_v31 = vld [vmem:[%s3287_s26 + $0x108] sm:$0xff] }
  0x61   : > { %448 = vmatmul.mubr.f32.gmra.mrb[22].mxu0 %v185_v3  ;;  %866 = vmatmul.mubr.f32.gmra.mrb[22].mxu1 %v2829_v13  ;;  %v2862_v3 = vld [vmem:[%s3287_s26 + $0x3b8] sm:$0xff]  ;;  %v217_v13 = vld [vmem:[%s3287_s26 + $0x1b0] sm:$0xff] }
  0x62   : > { %2787 = vmatprep.mubr.msk.f32.mxu0 %vm227_vm0, %v188_v14  ;;  %2884 = vmatprep.mubr.msk.f32.mxu1 %vm227_vm0, %v2832_v15  ;;  %v2861_v14 = vld [vmem:[%s3287_s26 + $0x3b0] sm:$0xff]  ;;  %v220_v15 = vld [vmem:[%s3287_s26 + $0x1c8] sm:$0xff] }
  0x65   : > { %453 = vmatmul.mubr.f32.gmra.mrb[24].mxu0 %v187_v16  ;;  %871 = vmatmul.mubr.f32.gmra.mrb[24].mxu1 %v2831_v17  ;;  %v2864_v16 = vld [vmem:[%s3287_s26 + $0x3c8] sm:$0xff]  ;;  %v219_v17 = vld [vmem:[%s3287_s26 + $0x1c0] sm:$0xff] }
  0x66   : > { %2788 = vmatprep.mubr.msk.f32.mxu0 %vm227_vm0, %v190_v18  ;;  %2885 = vmatprep.mubr.msk.f32.mxu1 %vm227_vm0, %v2834_v19  ;;  %v2863_v18 = vld [vmem:[%s3287_s26 + $0x3c0] sm:$0xff]  ;;  %v222_v19 = vld [vmem:[%s3287_s26 + $0x1d8] sm:$0xff] }
  0x69   : > { %458 = vmatmul.mubr.f32.gmra.mrb[26].mxu0 %v189_v20  ;;  %876 = vmatmul.mubr.f32.gmra.mrb[26].mxu1 %v2833_v21  ;;  %v2866_v20 = vld [vmem:[%s3287_s26 + $0x3d8] sm:$0xff]  ;;  %v221_v21 = vld [vmem:[%s3287_s26 + $0x1d0] sm:$0xff] }
  0x6a   : > { %2789 = vmatprep.mubr.msk.f32.mxu0 %vm227_vm0, %v192_v22  ;;  %2886 = vmatprep.mubr.msk.f32.mxu1 %vm227_vm0, %v2836_v23  ;;  %v2865_v22 = vld [vmem:[%s3287_s26 + $0x3d0] sm:$0xff]  ;;  %v224_v23 = vld [vmem:[%s3287_s26 + $0x1e8] sm:$0xff] }
  0x6d   : > { %463 = vmatmul.mubr.f32.gmra.mrb[28].mxu0 %v191_v24  ;;  %881 = vmatmul.mubr.f32.gmra.mrb[28].mxu1 %v2835_v25  ;;  %v2868_v24 = vld [vmem:[%s3287_s26 + $0x3e8] sm:$0xff]  ;;  %v223_v25 = vld [vmem:[%s3287_s26 + $0x1e0] sm:$0xff] }
  0x6e   : > { %2790 = vmatprep.mubr.msk.f32.mxu0 %vm227_vm0, %v194_v26  ;;  %2887 = vmatprep.mubr.msk.f32.mxu1 %vm227_vm0, %v2838_v27  ;;  %v2867_v26 = vld [vmem:[%s3287_s26 + $0x3e0] sm:$0xff]  ;;  %v226_v27 = vld [vmem:[%s3287_s26 + $0x1f8] sm:$0xff] }
  0x71   : > { %468 = vmatmul.mubr.f32.gmra.mrb[30].mxu0 %v193_v28  ;;  %886 = vmatmul.mubr.f32.gmra.mrb[30].mxu1 %v2837_v29  ;;  %v2870_v28 = vld [vmem:[%s3287_s26 + $0x3f8] sm:$0xff]  ;;  %v225_v29 = vld [vmem:[%s3287_s26 + $0x1f0] sm:$0xff] }
  0x72   : > { %2791 = vmatprep.mubr.msk.f32.mxu0 %vm227_vm0, %v196_v31  ;;  %2888 = vmatprep.mubr.msk.f32.mxu1 %vm227_vm0, %v2840_v32  ;;  %v2869_v31 = vld [vmem:[%s3287_s26 + $0x3f0] sm:$0xff]  ;;  %v2905_v32 = vld [vmem:[%s3287_s26 + $0x408] sm:$0xff] }
  0x75   : > { %473 = vmatmul.mubr.f32.gmra.mrb[32].mxu0 %v195_v33  ;;  %891 = vmatmul.mubr.f32.gmra.mrb[32].mxu1 %v2839_v34  ;;  %v3002_v33 = vld [vmem:[%s3287_s26 + $0x608] sm:$0xff]  ;;  %v2904_v34 = vld [vmem:[%s3287_s26 + $0x400] sm:$0xff] }
  0x76   : > { %2792 = vmatprep.mubr.msk.f32.mxu0 %vm227_vm0, %v198_v35  ;;  %2889 = vmatprep.mubr.msk.f32.mxu1 %vm227_vm0, %v2842_v36  ;;  %v3001_v35 = vld [vmem:[%s3287_s26 + $0x600] sm:$0xff]  ;;  %v2907_v36 = vld [vmem:[%s3287_s26 + $0x418] sm:$0xff] }
  0x79   : > { %478 = vmatmul.mubr.f32.gmra.mrb[34].mxu0 %v197_v37  ;;  %896 = vmatmul.mubr.f32.gmra.mrb[34].mxu1 %v2841_v38  ;;  %v3004_v37 = vld [vmem:[%s3287_s26 + $0x618] sm:$0xff]  ;;  %v2906_v38 = vld [vmem:[%s3287_s26 + $0x410] sm:$0xff] }
  0x7a   : > { %2793 = vmatprep.mubr.msk.f32.mxu0 %vm227_vm0, %v200_v39  ;;  %2890 = vmatprep.mubr.msk.f32.mxu1 %vm227_vm0, %v2844_v40  ;;  %v3003_v39 = vld [vmem:[%s3287_s26 + $0x610] sm:$0xff]  ;;  %v2909_v40 = vld [vmem:[%s3287_s26 + $0x428] sm:$0xff] }
  0x7d   : > { %483 = vmatmul.mubr.f32.gmra.mrb[36].mxu0 %v199_v41  ;;  %901 = vmatmul.mubr.f32.gmra.mrb[36].mxu1 %v2843_v42  ;;  %v3006_v41 = vld [vmem:[%s3287_s26 + $0x628] sm:$0xff]  ;;  %v2908_v42 = vld [vmem:[%s3287_s26 + $0x420] sm:$0xff] }
  0x7e   : > { %2794 = vmatprep.mubr.msk.f32.mxu0 %vm227_vm0, %v202_v43  ;;  %2891 = vmatprep.mubr.msk.f32.mxu1 %vm227_vm0, %v2846_v44  ;;  %v3005_v43 = vld [vmem:[%s3287_s26 + $0x620] sm:$0xff]  ;;  %v2911_v44 = vld [vmem:[%s3287_s26 + $0x438] sm:$0xff] }
  0x81   : > { %488 = vmatmul.mubr.f32.gmra.mrb[38].mxu0 %v201_v45  ;;  %906 = vmatmul.mubr.f32.gmra.mrb[38].mxu1 %v2845_v46  ;;  %v3008_v45 = vld [vmem:[%s3287_s26 + $0x638] sm:$0xff]  ;;  %v2910_v46 = vld [vmem:[%s3287_s26 + $0x430] sm:$0xff] }
  0x82   : > { %2795 = vmatprep.mubr.msk.f32.mxu0 %vm227_vm0, %v204_v47  ;;  %2892 = vmatprep.mubr.msk.f32.mxu1 %vm227_vm0, %v2848_v48  ;;  %v3007_v47 = vld [vmem:[%s3287_s26 + $0x630] sm:$0xff]  ;;  %v2913_v48 = vld [vmem:[%s3287_s26 + $0x448] sm:$0xff] }
  0x85   : > { %493 = vmatmul.mubr.f32.gmra.mrb[40].mxu0 %v203_v49  ;;  %911 = vmatmul.mubr.f32.gmra.mrb[40].mxu1 %v2847_v50  ;;  %v3010_v49 = vld [vmem:[%s3287_s26 + $0x648] sm:$0xff]  ;;  %v2912_v50 = vld [vmem:[%s3287_s26 + $0x440] sm:$0xff] }
  0x86   : > { %2796 = vmatprep.mubr.msk.f32.mxu0 %vm227_vm0, %v206_v51  ;;  %2893 = vmatprep.mubr.msk.f32.mxu1 %vm227_vm0, %v2850_v52  ;;  %v3009_v51 = vld [vmem:[%s3287_s26 + $0x640] sm:$0xff]  ;;  %v2915_v52 = vld [vmem:[%s3287_s26 + $0x458] sm:$0xff] }
  0x89   : > { %498 = vmatmul.mubr.f32.gmra.mrb[42].mxu0 %v205_v53  ;;  %916 = vmatmul.mubr.f32.gmra.mrb[42].mxu1 %v2849_v54  ;;  %v3012_v53 = vld [vmem:[%s3287_s26 + $0x658] sm:$0xff]  ;;  %v2914_v54 = vld [vmem:[%s3287_s26 + $0x450] sm:$0xff] }
  0x8a   : > { %2797 = vmatprep.mubr.msk.f32.mxu0 %vm227_vm0, %v208_v55  ;;  %2894 = vmatprep.mubr.msk.f32.mxu1 %vm227_vm0, %v2852_v56  ;;  %v3011_v55 = vld [vmem:[%s3287_s26 + $0x650] sm:$0xff]  ;;  %v2917_v56 = vld [vmem:[%s3287_s26 + $0x468] sm:$0xff] }
  0x8d   : > { %503 = vmatmul.mubr.f32.gmra.mrb[44].mxu0 %v207_v57  ;;  %921 = vmatmul.mubr.f32.gmra.mrb[44].mxu1 %v2851_v58  ;;  %v3014_v57 = vld [vmem:[%s3287_s26 + $0x668] sm:$0xff]  ;;  %v2916_v58 = vld [vmem:[%s3287_s26 + $0x460] sm:$0xff] }
  0x8e   : > { %2798 = vmatprep.mubr.msk.f32.mxu0 %vm227_vm0, %v210_v59  ;;  %2895 = vmatprep.mubr.msk.f32.mxu1 %vm227_vm0, %v2854_v60  ;;  %v3013_v59 = vld [vmem:[%s3287_s26 + $0x660] sm:$0xff]  ;;  %v2919_v60 = vld [vmem:[%s3287_s26 + $0x478] sm:$0xff] }
  0x91   : > { %508 = vmatmul.mubr.f32.gmra.mrb[46].mxu0 %v209_v61  ;;  %926 = vmatmul.mubr.f32.gmra.mrb[46].mxu1 %v2853_v62  ;;  %v3016_v61 = vld [vmem:[%s3287_s26 + $0x678] sm:$0xff]  ;;  %v2918_v62 = vld [vmem:[%s3287_s26 + $0x470] sm:$0xff] }
  0x92   : > { %2799 = vmatprep.mubr.msk.f32.mxu0 %vm227_vm0, %v212_v63  ;;  %2896 = vmatprep.mubr.msk.f32.mxu1 %vm227_vm0, %v2856_v0  ;;  %v3015_v63 = vld [vmem:[%s3287_s26 + $0x670] sm:$0xff]  ;;  %v2921_v0 = vld [vmem:[%s3287_s26 + $0x488] sm:$0xff] }
  0x95   : > { %513 = vmatmul.mubr.f32.gmra.mrb[48].mxu0 %v211_v1  ;;  %931 = vmatmul.mubr.f32.gmra.mrb[48].mxu1 %v2855_v2  ;;  %v3018_v1 = vld [vmem:[%s3287_s26 + $0x688] sm:$0xff]  ;;  %v2920_v2 = vld [vmem:[%s3287_s26 + $0x480] sm:$0xff] }
  0x96   : > { %2800 = vmatprep.mubr.msk.f32.mxu0 %vm227_vm0, %v214_v4  ;;  %2897 = vmatprep.mubr.msk.f32.mxu1 %vm227_vm0, %v2858_v5  ;;  %v3017_v4 = vld [vmem:[%s3287_s26 + $0x680] sm:$0xff]  ;;  %v2923_v5 = vld [vmem:[%s3287_s26 + $0x498] sm:$0xff] }
  0x99   : > { %518 = vmatmul.mubr.f32.gmra.mrb[50].mxu0 %v213_v6  ;;  %936 = vmatmul.mubr.f32.gmra.mrb[50].mxu1 %v2857_v7  ;;  %v3020_v6 = vld [vmem:[%s3287_s26 + $0x698] sm:$0xff]  ;;  %v2922_v7 = vld [vmem:[%s3287_s26 + $0x490] sm:$0xff] }
  0x9a   : > { %2801 = vmatprep.mubr.msk.f32.mxu0 %vm227_vm0, %v216_v8  ;;  %2898 = vmatprep.mubr.msk.f32.mxu1 %vm227_vm0, %v2860_v9  ;;  %v3019_v8 = vld [vmem:[%s3287_s26 + $0x690] sm:$0xff]  ;;  %v2925_v9 = vld [vmem:[%s3287_s26 + $0x4a8] sm:$0xff] }
  0x9d   : > { %523 = vmatmul.mubr.f32.gmra.mrb[52].mxu0 %v215_v10  ;;  %941 = vmatmul.mubr.f32.gmra.mrb[52].mxu1 %v2859_v11  ;;  %v3022_v10 = vld [vmem:[%s3287_s26 + $0x6a8] sm:$0xff]  ;;  %v2924_v11 = vld [vmem:[%s3287_s26 + $0x4a0] sm:$0xff] }
  0x9e   : > { %2802 = vmatprep.mubr.msk.f32.mxu0 %vm227_vm0, %v218_v12  ;;  %2899 = vmatprep.mubr.msk.f32.mxu1 %vm227_vm0, %v2862_v3  ;;  %v3021_v12 = vld [vmem:[%s3287_s26 + $0x6a0] sm:$0xff]  ;;  %v2927_v3 = vld [vmem:[%s3287_s26 + $0x4b8] sm:$0xff] }
  0xa1   : > { %528 = vmatmul.mubr.f32.gmra.mrb[54].mxu0 %v217_v13  ;;  %946 = vmatmul.mubr.f32.gmra.mrb[54].mxu1 %v2861_v14  ;;  %v3024_v13 = vld [vmem:[%s3287_s26 + $0x6b8] sm:$0xff]  ;;  %v2926_v14 = vld [vmem:[%s3287_s26 + $0x4b0] sm:$0xff] }
  0xa2   : > { %2803 = vmatprep.mubr.msk.f32.mxu0 %vm227_vm0, %v220_v15  ;;  %2900 = vmatprep.mubr.msk.f32.mxu1 %vm227_vm0, %v2864_v16  ;;  %v3023_v15 = vld [vmem:[%s3287_s26 + $0x6b0] sm:$0xff]  ;;  %v2929_v16 = vld [vmem:[%s3287_s26 + $0x4c8] sm:$0xff] }
  0xa5   : > { %533 = vmatmul.mubr.f32.gmra.mrb[56].mxu0 %v219_v17  ;;  %951 = vmatmul.mubr.f32.gmra.mrb[56].mxu1 %v2863_v18  ;;  %v3026_v17 = vld [vmem:[%s3287_s26 + $0x6c8] sm:$0xff]  ;;  %v2928_v18 = vld [vmem:[%s3287_s26 + $0x4c0] sm:$0xff] }
  0xa6   : > { %2804 = vmatprep.mubr.msk.f32.mxu0 %vm227_vm0, %v222_v19  ;;  %2901 = vmatprep.mubr.msk.f32.mxu1 %vm227_vm0, %v2866_v20  ;;  %v3025_v19 = vld [vmem:[%s3287_s26 + $0x6c0] sm:$0xff]  ;;  %v2931_v20 = vld [vmem:[%s3287_s26 + $0x4d8] sm:$0xff] }
  0xa9   : > { %538 = vmatmul.mubr.f32.gmra.mrb[58].mxu0 %v221_v21  ;;  %956 = vmatmul.mubr.f32.gmra.mrb[58].mxu1 %v2865_v22  ;;  %v3028_v21 = vld [vmem:[%s3287_s26 + $0x6d8] sm:$0xff]  ;;  %v2930_v22 = vld [vmem:[%s3287_s26 + $0x4d0] sm:$0xff] }
  0xaa   : > { %2805 = vmatprep.mubr.msk.f32.mxu0 %vm227_vm0, %v224_v23  ;;  %2902 = vmatprep.mubr.msk.f32.mxu1 %vm227_vm0, %v2868_v24  ;;  %v3027_v23 = vld [vmem:[%s3287_s26 + $0x6d0] sm:$0xff]  ;;  %v2933_v24 = vld [vmem:[%s3287_s26 + $0x4e8] sm:$0xff] }
  0xad   : > { %543 = vmatmul.mubr.f32.gmra.mrb[60].mxu0 %v223_v25  ;;  %961 = vmatmul.mubr.f32.gmra.mrb[60].mxu1 %v2867_v26  ;;  %v3030_v25 = vld [vmem:[%s3287_s26 + $0x6e8] sm:$0xff]  ;;  %v2932_v26 = vld [vmem:[%s3287_s26 + $0x4e0] sm:$0xff] }
  0xae   : > { %2806 = vmatprep.mubr.msk.f32.mxu0 %vm227_vm0, %v226_v27  ;;  %2903 = vmatprep.mubr.msk.f32.mxu1 %vm227_vm0, %v2870_v28  ;;  %v3029_v27 = vld [vmem:[%s3287_s26 + $0x6e0] sm:$0xff]  ;;  %v2935_v28 = vld [vmem:[%s3287_s26 + $0x4f8] sm:$0xff] }
  0xb1   : > { %548 = vmatmul.mubr.f32.gmra.mrb[62].mxu0 %v225_v29  ;;  %966 = vmatmul.mubr.f32.gmra.mrb[62].mxu1 %v2869_v31  ;;  %v3032_v29 = vld [vmem:[%s3287_s26 + $0x6f8] sm:$0xff]  ;;  %v2934_v31 = vld [vmem:[%s3287_s26 + $0x4f0] sm:$0xff] }
  0xb2   : > { %2969 = vmatprep.mubr.msk.f32.mxu0 %vm227_vm0, %v2905_v32  ;;  %3066 = vmatprep.mubr.msk.f32.mxu1 %vm227_vm0, %v3002_v33  ;;  %v3031_v32 = vld [vmem:[%s3287_s26 + $0x6f0] sm:$0xff]  ;;  %v2937_v33 = vld [vmem:[%s3287_s26 + $0x508] sm:$0xff] }
  0xb5   : > { %1229 = vmatmul.mubr.f32.vlgmr.msra.gmra.mrb[64].mxu0 %v2904_v34  ;;  %1647 = vmatmul.mubr.f32.vlgmr.msra.gmra.mrb[64].mxu1 %v3001_v35  ;;  %v3034_v34 = vld [vmem:[%s3287_s26 + $0x708] sm:$0xff]  ;;  %v2936_v35 = vld [vmem:[%s3287_s26 + $0x500] sm:$0xff] }
  0xb6   : > { %2970 = vmatprep.mubr.msk.f32.mxu0 %vm227_vm0, %v2907_v36  ;;  %3067 = vmatprep.mubr.msk.f32.mxu1 %vm227_vm0, %v3004_v37  ;;  %v3033_v36 = vld [vmem:[%s3287_s26 + $0x700] sm:$0xff]  ;;  %v2939_v37 = vld [vmem:[%s3287_s26 + $0x518] sm:$0xff] }
  0xb9   : > { %1234 = vmatmul.mubr.f32.gmra.mrb[66].mxu0 %v2906_v38  ;;  %1652 = vmatmul.mubr.f32.gmra.mrb[66].mxu1 %v3003_v39  ;;  %v3036_v38 = vld [vmem:[%s3287_s26 + $0x718] sm:$0xff]  ;;  %v2938_v39 = vld [vmem:[%s3287_s26 + $0x510] sm:$0xff] }
  0xba   : > { %2971 = vmatprep.mubr.msk.f32.mxu0 %vm227_vm0, %v2909_v40  ;;  %3068 = vmatprep.mubr.msk.f32.mxu1 %vm227_vm0, %v3006_v41  ;;  %v3035_v40 = vld [vmem:[%s3287_s26 + $0x710] sm:$0xff]  ;;  %v2941_v41 = vld [vmem:[%s3287_s26 + $0x528] sm:$0xff] }
  0xbd   : > { %1239 = vmatmul.mubr.f32.gmra.mrb[68].mxu0 %v2908_v42  ;;  %1657 = vmatmul.mubr.f32.gmra.mrb[68].mxu1 %v3005_v43  ;;  %v3038_v42 = vld [vmem:[%s3287_s26 + $0x728] sm:$0xff]  ;;  %v2940_v43 = vld [vmem:[%s3287_s26 + $0x520] sm:$0xff] }
  0xbe   : > { %2972 = vmatprep.mubr.msk.f32.mxu0 %vm227_vm0, %v2911_v44  ;;  %3069 = vmatprep.mubr.msk.f32.mxu1 %vm227_vm0, %v3008_v45  ;;  %v3037_v44 = vld [vmem:[%s3287_s26 + $0x720] sm:$0xff]  ;;  %v2943_v45 = vld [vmem:[%s3287_s26 + $0x538] sm:$0xff] }
  0xc1   : > { %1244 = vmatmul.mubr.f32.gmra.mrb[70].mxu0 %v2910_v46  ;;  %1662 = vmatmul.mubr.f32.gmra.mrb[70].mxu1 %v3007_v47  ;;  %v3040_v46 = vld [vmem:[%s3287_s26 + $0x738] sm:$0xff]  ;;  %v2942_v47 = vld [vmem:[%s3287_s26 + $0x530] sm:$0xff] }
  0xc2   : > { %2973 = vmatprep.mubr.msk.f32.mxu0 %vm227_vm0, %v2913_v48  ;;  %3070 = vmatprep.mubr.msk.f32.mxu1 %vm227_vm0, %v3010_v49  ;;  %v3039_v48 = vld [vmem:[%s3287_s26 + $0x730] sm:$0xff]  ;;  %v2945_v49 = vld [vmem:[%s3287_s26 + $0x548] sm:$0xff] }
  0xc5   : > { %1249 = vmatmul.mubr.f32.gmra.mrb[72].mxu0 %v2912_v50  ;;  %1667 = vmatmul.mubr.f32.gmra.mrb[72].mxu1 %v3009_v51  ;;  %v3042_v50 = vld [vmem:[%s3287_s26 + $0x748] sm:$0xff]  ;;  %v2944_v51 = vld [vmem:[%s3287_s26 + $0x540] sm:$0xff] }
  0xc6   : > { %2974 = vmatprep.mubr.msk.f32.mxu0 %vm227_vm0, %v2915_v52  ;;  %3071 = vmatprep.mubr.msk.f32.mxu1 %vm227_vm0, %v3012_v53  ;;  %v3041_v52 = vld [vmem:[%s3287_s26 + $0x740] sm:$0xff]  ;;  %v2947_v53 = vld [vmem:[%s3287_s26 + $0x558] sm:$0xff] }
  0xc9   : > { %1254 = vmatmul.mubr.f32.gmra.mrb[74].mxu0 %v2914_v54  ;;  %1672 = vmatmul.mubr.f32.gmra.mrb[74].mxu1 %v3011_v55  ;;  %v3044_v54 = vld [vmem:[%s3287_s26 + $0x758] sm:$0xff]  ;;  %v2946_v55 = vld [vmem:[%s3287_s26 + $0x550] sm:$0xff] }
  0xca   : > { %2975 = vmatprep.mubr.msk.f32.mxu0 %vm227_vm0, %v2917_v56  ;;  %3072 = vmatprep.mubr.msk.f32.mxu1 %vm227_vm0, %v3014_v57  ;;  %v3043_v56 = vld [vmem:[%s3287_s26 + $0x750] sm:$0xff]  ;;  %v2949_v57 = vld [vmem:[%s3287_s26 + $0x568] sm:$0xff] }
  0xcd   : > { %1259 = vmatmul.mubr.f32.gmra.mrb[76].mxu0 %v2916_v58  ;;  %1677 = vmatmul.mubr.f32.gmra.mrb[76].mxu1 %v3013_v59  ;;  %v3046_v58 = vld [vmem:[%s3287_s26 + $0x768] sm:$0xff] }
  0xce   : > { %2976 = vmatprep.mubr.msk.f32.mxu0 %vm227_vm0, %v2919_v60  ;;  %3073 = vmatprep.mubr.msk.f32.mxu1 %vm227_vm0, %v3016_v61 }
  0xd1   : > { %1264 = vmatmul.mubr.f32.gmra.mrb[78].mxu0 %v2918_v62  ;;  %1682 = vmatmul.mubr.f32.gmra.mrb[78].mxu1 %v3015_v63 }
  0xd2   : > { %2977 = vmatprep.mubr.msk.f32.mxu0 %vm227_vm0, %v2921_v0  ;;  %3074 = vmatprep.mubr.msk.f32.mxu1 %vm227_vm0, %v3018_v1  ;;  %v2948_v1 = vld [vmem:[%s3287_s26 + $0x560] sm:$0xff] }
  0xd5   : > { %1269 = vmatmul.mubr.f32.gmra.mrb[80].mxu0 %v2920_v2  ;;  %1687 = vmatmul.mubr.f32.gmra.mrb[80].mxu1 %v3017_v4  ;;  %v3045_v2 = vld [vmem:[%s3287_s26 + $0x760] sm:$0xff] }
  0xd6   : > { %2978 = vmatprep.mubr.msk.f32.mxu0 %vm227_vm0, %v2923_v5  ;;  %3075 = vmatprep.mubr.msk.f32.mxu1 %vm227_vm0, %v3020_v6  ;;  %v2951_v5 = vld [vmem:[%s3287_s26 + $0x578] sm:$0xff] }
  0xd7   : > { %v3048_v6 = vld [vmem:[%s3287_s26 + $0x778] sm:$0xff] }
  0xd9   : > { %1274 = vmatmul.mubr.f32.gmra.mrb[82].mxu0 %v2922_v7  ;;  %1692 = vmatmul.mubr.f32.gmra.mrb[82].mxu1 %v3019_v8 }
  0xda   : > { %2979 = vmatprep.mubr.msk.f32.mxu0 %vm227_vm0, %v2925_v9  ;;  %3076 = vmatprep.mubr.msk.f32.mxu1 %vm227_vm0, %v3022_v10 }
  0xdd   : > { %1279 = vmatmul.mubr.f32.gmra.mrb[84].mxu0 %v2924_v11  ;;  %1697 = vmatmul.mubr.f32.gmra.mrb[84].mxu1 %v3021_v12 }
  0xde   : > { %2980 = vmatprep.mubr.msk.f32.mxu0 %vm227_vm0, %v2927_v3  ;;  %3077 = vmatprep.mubr.msk.f32.mxu1 %vm227_vm0, %v3024_v13  ;;  %v2950_v3 = vld [vmem:[%s3287_s26 + $0x570] sm:$0xff] }
  0xdf   : > { %v3047_v13 = vld [vmem:[%s3287_s26 + $0x770] sm:$0xff] }
  0xe1   : > { %1284 = vmatmul.mubr.f32.gmra.mrb[86].mxu0 %v2926_v14  ;;  %1702 = vmatmul.mubr.f32.gmra.mrb[86].mxu1 %v3023_v15  ;;  %v2953_v15 = vld [vmem:[%s3287_s26 + $0x588] sm:$0xff] }
  0xe2   : > { %2981 = vmatprep.mubr.msk.f32.mxu0 %vm227_vm0, %v2929_v16  ;;  %3078 = vmatprep.mubr.msk.f32.mxu1 %vm227_vm0, %v3026_v17  ;;  %v3050_v16 = vld [vmem:[%s3287_s26 + $0x788] sm:$0xff] }
  0xe5   : > { %1289 = vmatmul.mubr.f32.gmra.mrb[88].mxu0 %v2928_v18  ;;  %1707 = vmatmul.mubr.f32.gmra.mrb[88].mxu1 %v3025_v19 }
  0xe6   : > { %2982 = vmatprep.mubr.msk.f32.mxu0 %vm227_vm0, %v2931_v20  ;;  %3079 = vmatprep.mubr.msk.f32.mxu1 %vm227_vm0, %v3028_v21 }
  0xe9   : > { %1294 = vmatmul.mubr.f32.gmra.mrb[90].mxu0 %v2930_v22  ;;  %1712 = vmatmul.mubr.f32.gmra.mrb[90].mxu1 %v3027_v23  ;;  %v2952_v23 = vld [vmem:[%s3287_s26 + $0x580] sm:$0xff] }
  0xea   : > { %2983 = vmatprep.mubr.msk.f32.mxu0 %vm227_vm0, %v2933_v24  ;;  %3080 = vmatprep.mubr.msk.f32.mxu1 %vm227_vm0, %v3030_v25  ;;  %v3049_v24 = vld [vmem:[%s3287_s26 + $0x780] sm:$0xff] }
  0xed   : > { %1299 = vmatmul.mubr.f32.gmra.mrb[92].mxu0 %v2932_v26  ;;  %1717 = vmatmul.mubr.f32.gmra.mrb[92].mxu1 %v3029_v27  ;;  %v2955_v27 = vld [vmem:[%s3287_s26 + $0x598] sm:$0xff] }
  0xee   : > { %2984 = vmatprep.mubr.msk.f32.mxu0 %vm227_vm0, %v2935_v28  ;;  %3081 = vmatprep.mubr.msk.f32.mxu1 %vm227_vm0, %v3032_v29  ;;  %v3052_v28 = vld [vmem:[%s3287_s26 + $0x798] sm:$0xff] }
  0xf1   : > { %1304 = vmatmul.mubr.f32.gmra.mrb[94].mxu0 %v2934_v31  ;;  %1722 = vmatmul.mubr.f32.gmra.mrb[94].mxu1 %v3031_v32 }
  0xf2   : > { %2985 = vmatprep.mubr.msk.f32.mxu0 %vm227_vm0, %v2937_v33  ;;  %3082 = vmatprep.mubr.msk.f32.mxu1 %vm227_vm0, %v3034_v34 }
  0xf5   : > { %1309 = vmatmul.mubr.f32.gmra.mrb[96].mxu0 %v2936_v35  ;;  %1727 = vmatmul.mubr.f32.gmra.mrb[96].mxu1 %v3033_v36  ;;  %v2954_v36 = vld [vmem:[%s3287_s26 + $0x590] sm:$0xff] }
  0xf6   : > { %2986 = vmatprep.mubr.msk.f32.mxu0 %vm227_vm0, %v2939_v37  ;;  %3083 = vmatprep.mubr.msk.f32.mxu1 %vm227_vm0, %v3036_v38  ;;  %v3051_v37 = vld [vmem:[%s3287_s26 + $0x790] sm:$0xff] }
  0xf9   : > { %1314 = vmatmul.mubr.f32.gmra.mrb[98].mxu0 %v2938_v39  ;;  %1732 = vmatmul.mubr.f32.gmra.mrb[98].mxu1 %v3035_v40  ;;  %v2957_v39 = vld [vmem:[%s3287_s26 + $0x5a8] sm:$0xff] }
  0xfa   : > { %2987 = vmatprep.mubr.msk.f32.mxu0 %vm227_vm0, %v2941_v41  ;;  %3084 = vmatprep.mubr.msk.f32.mxu1 %vm227_vm0, %v3038_v42  ;;  %v3054_v40 = vld [vmem:[%s3287_s26 + $0x7a8] sm:$0xff] }
  0xfd   : > { %1319 = vmatmul.mubr.f32.gmra.mrb[100].mxu0 %v2940_v43  ;;  %1737 = vmatmul.mubr.f32.gmra.mrb[100].mxu1 %v3037_v44 }
  0xfe   : > { %2988 = vmatprep.mubr.msk.f32.mxu0 %vm227_vm0, %v2943_v45  ;;  %3085 = vmatprep.mubr.msk.f32.mxu1 %vm227_vm0, %v3040_v46 }
 0x101   : > { %1324 = vmatmul.mubr.f32.gmra.mrb[102].mxu0 %v2942_v47  ;;  %1742 = vmatmul.mubr.f32.gmra.mrb[102].mxu1 %v3039_v48  ;;  %v2956_v47 = vld [vmem:[%s3287_s26 + $0x5a0] sm:$0xff] }
 0x102   : > { %2989 = vmatprep.mubr.msk.f32.mxu0 %vm227_vm0, %v2945_v49  ;;  %3086 = vmatprep.mubr.msk.f32.mxu1 %vm227_vm0, %v3042_v50  ;;  %v3053_v48 = vld [vmem:[%s3287_s26 + $0x7a0] sm:$0xff]  ;;  %v2959_v50 = vld [vmem:[%s3287_s26 + $0x5b8] sm:$0xff] }
 0x105   : > { %1329 = vmatmul.mubr.f32.gmra.mrb[104].mxu0 %v2944_v51  ;;  %1747 = vmatmul.mubr.f32.gmra.mrb[104].mxu1 %v3041_v52  ;;  %v3056_v51 = vld [vmem:[%s3287_s26 + $0x7b8] sm:$0xff] }
 0x106   : > { %2990 = vmatprep.mubr.msk.f32.mxu0 %vm227_vm0, %v2947_v53  ;;  %3087 = vmatprep.mubr.msk.f32.mxu1 %vm227_vm0, %v3044_v54 }
 0x108   : > { %v812_v59 = vpop.f32.mrb[0].mxu1  ;;  %v394_v60 = vpop.f32.mrb[0].mxu0 }
 0x109   : > { %v971_v61 = vmax.f32 %v812_v59, 0.0  ;;  %v553_v62 = vmax.f32 %v394_v60, 0.0  ;;  %v814_v63 = vpop.f32.mrb[1].mxu1  ;;  %1334 = vmatmul.mubr.f32.gmra.mrb[106].mxu0 %v2946_v55  ;;  %1752 = vmatmul.mubr.f32.gmra.mrb[106].mxu1 %v3043_v56  ;;  %v396_v0 = vpop.f32.mrb[1].mxu0  ;;  %v3055_v59 = vld [vmem:[%s3287_s26 + $0x7b0] sm:$0xff] }
 0x10a   : > { %2991 = vmatprep.mubr.msk.f32.mxu0 %vm227_vm0, %v2949_v57  ;;  %3088 = vmatprep.mubr.msk.f32.mxu1 %vm227_vm0, %v3046_v58  ;;  %v2958_v58 = vld [vmem:[%s3287_s26 + $0x5b0] sm:$0xff] }
 0x10b   : > { %2035 = vst.msk [vmem:[#allocation2 + $0x1] sm:$0xff] %vm2034_vm3, %v971_v61  ;;  %v3755_v4 = vmax.f32 %v553_v62, %v971_v61  ;;  %v2961_v61 = vld [vmem:[%s3287_s26 + $0x5c8] sm:$0xff] }
 0x10c   : > { %v817_v7 = vpop.f32.mrb[2].mxu1  ;;  %v399_v8 = vpop.f32.mrb[2].mxu0  ;;  %v3058_v62 = vld [vmem:[%s3287_s26 + $0x7c8] sm:$0xff] }
 0x10d   : > { %v972_v9 = vmax.f32 %v817_v7, 0.0  ;;  %v554_v10 = vmax.f32 %v399_v8, 0.0  ;;  %v819_v11 = vpop.f32.mrb[3].mxu1  ;;  %1339 = vmatmul.mubr.f32.gmra.mrb[108].mxu0 %v2948_v1  ;;  %1757 = vmatmul.mubr.f32.gmra.mrb[108].mxu1 %v3045_v2  ;;  %v401_v12 = vpop.f32.mrb[3].mxu0  ;;  %v2960_v7 = vld [vmem:[%s3287_s26 + $0x5c0] sm:$0xff] }
 0x10e   : > { %2992 = vmatprep.mubr.msk.f32.mxu0 %vm227_vm0, %v2951_v5  ;;  %3089 = vmatprep.mubr.msk.f32.mxu1 %vm227_vm0, %v3048_v6  ;;  %v3057_v8 = vld [vmem:[%s3287_s26 + $0x7c0] sm:$0xff]  ;;  %v3060_v11 = vld [vmem:[%s3287_s26 + $0x7d8] sm:$0xff] }
 0x10f   : > { %2036 = vst.msk [vmem:[#allocation2 + $0x9] sm:$0xff] %vm2034_vm3, %v972_v9  ;;  %v3764_v14 = vmax.f32 %v554_v10, %v972_v9  ;;  %v2963_v10 = vld [vmem:[%s3287_s26 + $0x5d8] sm:$0xff] }
 0x110   : > { %v822_v17 = vpop.f32.mrb[4].mxu1  ;;  %v404_v18 = vpop.f32.mrb[4].mxu0 }
 0x111   : > { %v973_v19 = vmax.f32 %v822_v17, 0.0  ;;  %v555_v20 = vmax.f32 %v404_v18, 0.0  ;;  %v824_v21 = vpop.f32.mrb[5].mxu1  ;;  %1344 = vmatmul.mubr.f32.gmra.mrb[110].mxu0 %v2950_v3  ;;  %1762 = vmatmul.mubr.f32.gmra.mrb[110].mxu1 %v3047_v13  ;;  %v406_v22 = vpop.f32.mrb[5].mxu0  ;;  %v2962_v18 = vld [vmem:[%s3287_s26 + $0x5d0] sm:$0xff] }
 0x112   : > { %2993 = vmatprep.mubr.msk.f32.mxu0 %vm227_vm0, %v2953_v15  ;;  %3090 = vmatprep.mubr.msk.f32.mxu1 %vm227_vm0, %v3050_v16  ;;  %v3772_v25 = vld [vmem:[#allocation2] sm:$0xff]  ;;  %v2965_v21 = vld [vmem:[%s3287_s26 + $0x5e8] sm:$0xff] }
 0x113   : > { %2037 = vst.msk [vmem:[#allocation2 + $0x11] sm:$0xff] %vm2034_vm3, %v973_v19  ;;  %v3775_v26 = vmax.f32 %v555_v20, %v973_v19  ;;  %v3059_v19 = vld [vmem:[%s3287_s26 + $0x7d0] sm:$0xff]  ;;  %v3062_v22 = vld [vmem:[%s3287_s26 + $0x7e8] sm:$0xff] }
 0x114   : > { %2228 = vst.msk [vmem:[#allocation2] sm:$0x1] %vm2032_vm2, %v5246_v30  ;;  %v827_v29 = vpop.f32.mrb[6].mxu1  ;;  %v409_v31 = vpop.f32.mrb[6].mxu0 }
 0x115   : > { %v974_v32 = vmax.f32 %v827_v29, 0.0  ;;  %v556_v33 = vmax.f32 %v409_v31, 0.0  ;;  %v829_v34 = vpop.f32.mrb[7].mxu1  ;;  %1349 = vmatmul.mubr.f32.gmra.mrb[112].mxu0 %v2952_v23  ;;  %1767 = vmatmul.mubr.f32.gmra.mrb[112].mxu1 %v3049_v24  ;;  %v411_v35 = vpop.f32.mrb[7].mxu0 }
 0x116   : > { %2994 = vmatprep.mubr.msk.f32.mxu0 %vm227_vm0, %v2955_v27  ;;  %3091 = vmatprep.mubr.msk.f32.mxu1 %vm227_vm0, %v3052_v28  ;;  %v2967_v35 = vld [vmem:[%s3287_s26 + $0x5f8] sm:$0xff] }
 0x117   : > { %2038 = vst.msk [vmem:[#allocation2 + $0x19] sm:$0xff] %vm2034_vm3, %v974_v32  ;;  %v3786_v38 = vmax.f32 %v556_v33, %v974_v32  ;;  %v2964_v32 = vld [vmem:[%s3287_s26 + $0x5e0] sm:$0xff] }
 0x118   : > { %v832_v41 = vpop.f32.mrb[8].mxu1  ;;  %v414_v42 = vpop.f32.mrb[8].mxu0  ;;  %v3061_v33 = vld [vmem:[%s3287_s26 + $0x7e0] sm:$0xff] }
 0x119   : > { %v975_v43 = vmax.f32 %v832_v41, 0.0  ;;  %v557_v44 = vmax.f32 %v414_v42, 0.0  ;;  %v834_v45 = vpop.f32.mrb[9].mxu1  ;;  %1354 = vmatmul.mubr.f32.gmra.mrb[114].mxu0 %v2954_v36  ;;  %1772 = vmatmul.mubr.f32.gmra.mrb[114].mxu1 %v3051_v37  ;;  %v416_v46 = vpop.f32.mrb[9].mxu0  ;;  %v3064_v36 = vld [vmem:[%s3287_s26 + $0x7f8] sm:$0xff] }
 0x11a   : > { %2995 = vmatprep.mubr.msk.f32.mxu0 %vm227_vm0, %v2957_v39  ;;  %3092 = vmatprep.mubr.msk.f32.mxu1 %vm227_vm0, %v3054_v40  ;;  %v3063_v45 = vld [vmem:[%s3287_s26 + $0x7f0] sm:$0xff] }
 0x11b   : > { %2039 = vst.msk [vmem:[#allocation2 + $0x21] sm:$0xff] %vm2034_vm3, %v975_v43  ;;  %v3795_v49 = vmax.f32 %v557_v44, %v975_v43  ;;  %v2966_v44 = vld [vmem:[%s3287_s26 + $0x5f0] sm:$0xff]  ;;  %s3101_s26 = sshll.u32 %s5458_s10, 8 }
 0x11c   : > { %v837_v52 = vpop.f32.mrb[10].mxu1  ;;  %v419_v53 = vpop.f32.mrb[10].mxu0  ;;  %s4111_s29 = scalar_lea.vmem %s5243_s2, %s3101_s26 }
 0x11d   : > { %v976_v54 = vmax.f32 %v837_v52, 0.0  ;;  %v558_v55 = vmax.f32 %v419_v53, 0.0  ;;  %v839_v56 = vpop.f32.mrb[11].mxu1  ;;  %1359 = vmatmul.mubr.f32.gmra.mrb[116].mxu0 %v2956_v47  ;;  %1777 = vmatmul.mubr.f32.gmra.mrb[116].mxu1 %v3053_v48  ;;  %v421_v57 = vpop.f32.mrb[11].mxu0 }
 0x11e   : > { %2996 = vmatprep.mubr.msk.f32.mxu0 %vm227_vm0, %v2959_v50  ;;  %3093 = vmatprep.mubr.msk.f32.mxu1 %vm227_vm0, %v3056_v51 }
 0x11f   : > { %2040 = vst.msk [vmem:[#allocation2 + $0x29] sm:$0xff] %vm2034_vm3, %v976_v54  ;;  %v3804_v60 = vmax.f32 %v558_v55, %v976_v54 }
 0x120   : > { %v842_v63 = vpop.f32.mrb[12].mxu1  ;;  %v424_v0 = vpop.f32.mrb[12].mxu0 }
 0x121   : > { %v977_v1 = vmax.f32 %v842_v63, 0.0  ;;  %v559_v2 = vmax.f32 %v424_v0, 0.0  ;;  %v844_v5 = vpop.f32.mrb[13].mxu1  ;;  %1364 = vmatmul.mubr.f32.gmra.mrb[118].mxu0 %v2958_v58  ;;  %1782 = vmatmul.mubr.f32.gmra.mrb[118].mxu1 %v3055_v59  ;;  %v426_v6 = vpop.f32.mrb[13].mxu0 }
 0x122   : > { %2997 = vmatprep.mubr.msk.f32.mxu0 %vm227_vm0, %v2961_v61  ;;  %3094 = vmatprep.mubr.msk.f32.mxu1 %vm227_vm0, %v3058_v62 }
 0x123   : > { %2041 = vst.msk [vmem:[#allocation2 + $0x31] sm:$0xff] %vm2034_vm3, %v977_v1  ;;  %v3813_v9 = vmax.f32 %v559_v2, %v977_v1 }
 0x124   : > { %v847_v12 = vpop.f32.mrb[14].mxu1  ;;  %v429_v3 = vpop.f32.mrb[14].mxu0 }
 0x125   : > { %v978_v13 = vmax.f32 %v847_v12, 0.0  ;;  %v560_v15 = vmax.f32 %v429_v3, 0.0  ;;  %v849_v16 = vpop.f32.mrb[15].mxu1  ;;  %1369 = vmatmul.mubr.f32.gmra.mrb[120].mxu0 %v2960_v7  ;;  %1787 = vmatmul.mubr.f32.gmra.mrb[120].mxu1 %v3057_v8  ;;  %v431_v17 = vpop.f32.mrb[15].mxu0 }
 0x126   : > { %2998 = vmatprep.mubr.msk.f32.mxu0 %vm227_vm0, %v2963_v10  ;;  %3095 = vmatprep.mubr.msk.f32.mxu1 %vm227_vm0, %v3060_v11 }
 0x127   : > { %2042 = vst.msk [vmem:[#allocation2 + $0x39] sm:$0xff] %vm2034_vm3, %v978_v13  ;;  %v3822_v20 = vmax.f32 %v560_v15, %v978_v13 }
 0x128   : > { %v852_v23 = vpop.f32.mrb[16].mxu1  ;;  %v434_v24 = vpop.f32.mrb[16].mxu0 }
 0x129   : > { %v979_v27 = vmax.f32 %v852_v23, 0.0  ;;  %v561_v28 = vmax.f32 %v434_v24, 0.0  ;;  %v854_v29 = vpop.f32.mrb[17].mxu1  ;;  %1374 = vmatmul.mubr.f32.gmra.mrb[122].mxu0 %v2962_v18  ;;  %1792 = vmatmul.mubr.f32.gmra.mrb[122].mxu1 %v3059_v19  ;;  %v436_v31 = vpop.f32.mrb[17].mxu0 }
 0x12a   : > { %2999 = vmatprep.mubr.msk.f32.mxu0 %vm227_vm0, %v2965_v21  ;;  %3096 = vmatprep.mubr.msk.f32.mxu1 %vm227_vm0, %v3062_v22 }
 0x12b   : > { %2043 = vst.msk [vmem:[#allocation2 + $0x41] sm:$0xff] %vm2034_vm3, %v979_v27  ;;  %v3831_v34 = vmax.f32 %v561_v28, %v979_v27 }
 0x12c   : > { %v857_v37 = vpop.f32.mrb[18].mxu1  ;;  %v439_v39 = vpop.f32.mrb[18].mxu0 }
 0x12d   : > { %v980_v40 = vmax.f32 %v857_v37, 0.0  ;;  %v562_v41 = vmax.f32 %v439_v39, 0.0  ;;  %v859_v42 = vpop.f32.mrb[19].mxu1  ;;  %1379 = vmatmul.mubr.f32.gmra.mrb[124].mxu0 %v2964_v32  ;;  %1797 = vmatmul.mubr.f32.gmra.mrb[124].mxu1 %v3061_v33  ;;  %v441_v43 = vpop.f32.mrb[19].mxu0 }
 0x12e   : > { %3000 = vmatprep.mubr.msk.f32.mxu0 %vm227_vm0, %v2967_v35  ;;  %3097 = vmatprep.mubr.msk.f32.mxu1 %vm227_vm0, %v3064_v36 }
 0x12f   : > { %2044 = vst.msk [vmem:[#allocation2 + $0x49] sm:$0xff] %vm2034_vm3, %v980_v40  ;;  %v3840_v46 = vmax.f32 %v562_v41, %v980_v40 }
 0x130   : > { %v862_v47 = vpop.f32.mrb[20].mxu1  ;;  %v444_v48 = vpop.f32.mrb[20].mxu0 }
 0x131   : > { %v981_v50 = vmax.f32 %v862_v47, 0.0  ;;  %v563_v51 = vmax.f32 %v444_v48, 0.0  ;;  %v864_v52 = vpop.f32.mrb[21].mxu1  ;;  %1384 = vmatmul.mubr.f32.gmra.mrb[126].mxu0 %v2966_v44  ;;  %1802 = vmatmul.mubr.f32.gmra.mrb[126].mxu1 %v3063_v45  ;;  %v446_v53 = vpop.f32.mrb[21].mxu0 }
 0x133   : > { %2045 = vst.msk [vmem:[#allocation2 + $0x51] sm:$0xff] %vm2034_vm3, %v981_v50  ;;  %v3843_v54 = vmax.f32 %v563_v51, %v981_v50 }
 0x134   : > { %v867_v55 = vpop.f32.mrb[22].mxu1  ;;  %v449_v56 = vpop.f32.mrb[22].mxu0 }
 0x135   : > { %v982_v57 = vmax.f32 %v867_v55, 0.0  ;;  %v564_v58 = vmax.f32 %v449_v56, 0.0  ;;  %v869_v59 = vpop.f32.mrb[23].mxu1  ;;  %v451_v61 = vpop.f32.mrb[23].mxu0 }
 0x137   : > { %2046 = vst.msk [vmem:[#allocation2 + $0x59] sm:$0xff] %vm2034_vm3, %v982_v57  ;;  %v3846_v62 = vmax.f32 %v564_v58, %v982_v57 }
 0x138   : > { %v872_v63 = vpop.f32.mrb[24].mxu1  ;;  %v454_v0 = vpop.f32.mrb[24].mxu0 }
 0x139   : > { %v983_v1 = vmax.f32 %v872_v63, 0.0  ;;  %v565_v2 = vmax.f32 %v454_v0, 0.0  ;;  %v874_v5 = vpop.f32.mrb[25].mxu1  ;;  %v456_v6 = vpop.f32.mrb[25].mxu0 }
 0x13b   : > { %2047 = vst.msk [vmem:[#allocation2 + $0x61] sm:$0xff] %vm2034_vm3, %v983_v1  ;;  %v3849_v7 = vmax.f32 %v565_v2, %v983_v1 }
 0x13c   : > { %v877_v8 = vpop.f32.mrb[26].mxu1  ;;  %v459_v10 = vpop.f32.mrb[26].mxu0 }
 0x13d   : > { %v984_v11 = vmax.f32 %v877_v8, 0.0  ;;  %v566_v12 = vmax.f32 %v459_v10, 0.0  ;;  %v879_v3 = vpop.f32.mrb[27].mxu1  ;;  %v461_v13 = vpop.f32.mrb[27].mxu0 }
 0x13f   : > { %2048 = vst.msk [vmem:[#allocation2 + $0x69] sm:$0xff] %vm2034_vm3, %v984_v11  ;;  %v3852_v15 = vmax.f32 %v566_v12, %v984_v11 }
 0x140   : > { %v882_v16 = vpop.f32.mrb[28].mxu1  ;;  %v464_v17 = vpop.f32.mrb[28].mxu0 }
 0x141   : > { %5293 = vst [vmem:[#allocation3_spill] sm:$0xff] %v3852_v15  ;;  %v985_v18 = vmax.f32 %v882_v16, 0.0  ;;  %v567_v19 = vmax.f32 %v464_v17, 0.0  ;;  %v884_v21 = vpop.f32.mrb[29].mxu1  ;;  %v466_v22 = vpop.f32.mrb[29].mxu0 }
 0x143   : > { %2049 = vst.msk [vmem:[#allocation2 + $0x71] sm:$0xff] %vm2034_vm3, %v985_v18  ;;  %v3855_v23 = vmax.f32 %v567_v19, %v985_v18 }
 0x144   : > { %v887_v24 = vpop.f32.mrb[30].mxu1  ;;  %v469_v27 = vpop.f32.mrb[30].mxu0 }
 0x145   : > { %5294 = vst [vmem:[#allocation4_spill] sm:$0xff] %v3855_v23  ;;  %v986_v28 = vmax.f32 %v887_v24, 0.0  ;;  %v568_v29 = vmax.f32 %v469_v27, 0.0  ;;  %v889_v31 = vpop.f32.mrb[31].mxu1  ;;  %v471_v32 = vpop.f32.mrb[31].mxu0 }
 0x147   : > { %2050 = vst.msk [vmem:[#allocation2 + $0x79] sm:$0xff] %vm2034_vm3, %v986_v28  ;;  %v3858_v33 = vmax.f32 %v568_v29, %v986_v28 }
 0x148   : > { %v892_v35 = vpop.f32.mrb[32].mxu1  ;;  %v474_v36 = vpop.f32.mrb[32].mxu0 }
 0x149   : > { %5295 = vst [vmem:[#allocation5_spill] sm:$0xff] %v3858_v33  ;;  %v987_v37 = vmax.f32 %v892_v35, 0.0  ;;  %v569_v39 = vmax.f32 %v474_v36, 0.0  ;;  %v894_v40 = vpop.f32.mrb[33].mxu1  ;;  %v476_v41 = vpop.f32.mrb[33].mxu0 }
 0x14b   : > { %2051 = vst.msk [vmem:[#allocation2 + $0x81] sm:$0xff] %vm2034_vm3, %v987_v37  ;;  %v3861_v42 = vmax.f32 %v569_v39, %v987_v37 }
 0x14c   : > { %v897_v43 = vpop.f32.mrb[34].mxu1  ;;  %v479_v44 = vpop.f32.mrb[34].mxu0 }
 0x14d   : > { %5296 = vst [vmem:[#allocation6_spill] sm:$0xff] %v3861_v42  ;;  %v988_v45 = vmax.f32 %v897_v43, 0.0  ;;  %v570_v47 = vmax.f32 %v479_v44, 0.0  ;;  %v899_v48 = vpop.f32.mrb[35].mxu1  ;;  %v481_v50 = vpop.f32.mrb[35].mxu0 }
 0x14f   : > { %2052 = vst.msk [vmem:[#allocation2 + $0x89] sm:$0xff] %vm2034_vm3, %v988_v45  ;;  %v3864_v51 = vmax.f32 %v570_v47, %v988_v45 }
 0x150   : > { %v902_v52 = vpop.f32.mrb[36].mxu1  ;;  %v484_v53 = vpop.f32.mrb[36].mxu0 }
 0x151   : > { %5297 = vst [vmem:[#allocation7_spill] sm:$0xff] %v3864_v51  ;;  %v989_v55 = vmax.f32 %v902_v52, 0.0  ;;  %v571_v56 = vmax.f32 %v484_v53, 0.0  ;;  %v904_v57 = vpop.f32.mrb[37].mxu1  ;;  %v486_v58 = vpop.f32.mrb[37].mxu0  ;;  %v4066_v51 = vld [vmem:[#allocation2 + $0x40] sm:$0xff] }
 0x152   : > { %5318 = vst [vmem:[#allocation23_spill] sm:$0xff] %v4066_v51 }
 0x153   : > { %2053 = vst.msk [vmem:[#allocation2 + $0x91] sm:$0xff] %vm2034_vm3, %v989_v55  ;;  %v3867_v59 = vmax.f32 %v571_v56, %v989_v55 }
 0x154   : > { %v907_v61 = vpop.f32.mrb[38].mxu1  ;;  %v489_v63 = vpop.f32.mrb[38].mxu0 }
 0x155   : > { %5298 = vst [vmem:[#allocation8_spill] sm:$0xff] %v3867_v59  ;;  %v990_v0 = vmax.f32 %v907_v61, 0.0  ;;  %v572_v1 = vmax.f32 %v489_v63, 0.0  ;;  %v909_v2 = vpop.f32.mrb[39].mxu1  ;;  %v491_v5 = vpop.f32.mrb[39].mxu0 }
 0x157   : > { %2054 = vst.msk [vmem:[#allocation2 + $0x99] sm:$0xff] %vm2034_vm3, %v990_v0  ;;  %v3870_v6 = vmax.f32 %v572_v1, %v990_v0 }
 0x158   : > { %v912_v8 = vpop.f32.mrb[40].mxu1  ;;  %v494_v10 = vpop.f32.mrb[40].mxu0 }
 0x159   : > { %5299 = vst [vmem:[#allocation9_spill] sm:$0xff] %v3870_v6  ;;  %v991_v11 = vmax.f32 %v912_v8, 0.0  ;;  %v573_v12 = vmax.f32 %v494_v10, 0.0  ;;  %v914_v3 = vpop.f32.mrb[41].mxu1  ;;  %v496_v13 = vpop.f32.mrb[41].mxu0 }
 0x15b   : > { %2055 = vst.msk [vmem:[#allocation2 + $0xa1] sm:$0xff] %vm2034_vm3, %v991_v11  ;;  %v3873_v16 = vmax.f32 %v573_v12, %v991_v11 }
 0x15c   : > { %v917_v17 = vpop.f32.mrb[42].mxu1  ;;  %v499_v18 = vpop.f32.mrb[42].mxu0 }
 0x15d   : > { %5300 = vst [vmem:[#allocation10_spill] sm:$0xff] %v3873_v16  ;;  %v992_v19 = vmax.f32 %v917_v17, 0.0  ;;  %v574_v21 = vmax.f32 %v499_v18, 0.0  ;;  %v919_v22 = vpop.f32.mrb[43].mxu1  ;;  %v501_v24 = vpop.f32.mrb[43].mxu0 }
 0x15f   : > { %2056 = vst.msk [vmem:[#allocation2 + $0xa9] sm:$0xff] %vm2034_vm3, %v992_v19  ;;  %v3876_v27 = vmax.f32 %v574_v21, %v992_v19 }
 0x160   : > { %v922_v28 = vpop.f32.mrb[44].mxu1  ;;  %v504_v29 = vpop.f32.mrb[44].mxu0 }
 0x161   : > { %5301 = vst [vmem:[#allocation11_spill] sm:$0xff] %v3876_v27  ;;  %v993_v31 = vmax.f32 %v922_v28, 0.0  ;;  %v575_v32 = vmax.f32 %v504_v29, 0.0  ;;  %v924_v35 = vpop.f32.mrb[45].mxu1  ;;  %v506_v36 = vpop.f32.mrb[45].mxu0 }
 0x163   : > { %2057 = vst.msk [vmem:[#allocation2 + $0xb1] sm:$0xff] %vm2034_vm3, %v993_v31  ;;  %v3879_v37 = vmax.f32 %v575_v32, %v993_v31 }
 0x164   : > { %v927_v39 = vpop.f32.mrb[46].mxu1  ;;  %v509_v40 = vpop.f32.mrb[46].mxu0 }
 0x165   : > { %5302 = vst [vmem:[#allocation12_spill] sm:$0xff] %v3879_v37  ;;  %v994_v41 = vmax.f32 %v927_v39, 0.0  ;;  %v576_v43 = vmax.f32 %v509_v40, 0.0  ;;  %v929_v44 = vpop.f32.mrb[47].mxu1  ;;  %v511_v45 = vpop.f32.mrb[47].mxu0 }
 0x167   : > { %2058 = vst.msk [vmem:[#allocation2 + $0xb9] sm:$0xff] %vm2034_vm3, %v994_v41  ;;  %v3882_v47 = vmax.f32 %v576_v43, %v994_v41 }
 0x168   : > { %v932_v48 = vpop.f32.mrb[48].mxu1  ;;  %v514_v50 = vpop.f32.mrb[48].mxu0 }
 0x169   : > { %5303 = vst [vmem:[#allocation13_spill] sm:$0xff] %v3882_v47  ;;  %v995_v52 = vmax.f32 %v932_v48, 0.0  ;;  %v577_v53 = vmax.f32 %v514_v50, 0.0  ;;  %v934_v55 = vpop.f32.mrb[49].mxu1  ;;  %v516_v56 = vpop.f32.mrb[49].mxu0 }
 0x16b   : > { %2059 = vst.msk [vmem:[#allocation2 + $0xc1] sm:$0xff] %vm2034_vm3, %v995_v52  ;;  %v3885_v57 = vmax.f32 %v577_v53, %v995_v52 }
 0x16c   : > { %v937_v58 = vpop.f32.mrb[50].mxu1  ;;  %v519_v61 = vpop.f32.mrb[50].mxu0 }
 0x16d   : > { %5304 = vst [vmem:[#allocation14_spill] sm:$0xff] %v3885_v57  ;;  %v996_v63 = vmax.f32 %v937_v58, 0.0  ;;  %v578_v0 = vmax.f32 %v519_v61, 0.0  ;;  %v939_v1 = vpop.f32.mrb[51].mxu1  ;;  %v521_v2 = vpop.f32.mrb[51].mxu0  ;;  %v4031_v57 = vld [vmem:[#allocation2 + $0x38] sm:$0xff] }
 0x16e   : > { %5315 = vst [vmem:[#allocation22_spill] sm:$0xff] %v4031_v57 }
 0x16f   : > { %2060 = vst.msk [vmem:[#allocation2 + $0xc9] sm:$0xff] %vm2034_vm3, %v996_v63  ;;  %v3888_v5 = vmax.f32 %v578_v0, %v996_v63 }
 0x170   : > { %v942_v8 = vpop.f32.mrb[52].mxu1  ;;  %v524_v10 = vpop.f32.mrb[52].mxu0 }
 0x171   : > { %5305 = vst [vmem:[#allocation15_spill] sm:$0xff] %v3888_v5  ;;  %v997_v11 = vmax.f32 %v942_v8, 0.0  ;;  %v579_v12 = vmax.f32 %v524_v10, 0.0  ;;  %v944_v3 = vpop.f32.mrb[53].mxu1  ;;  %v526_v13 = vpop.f32.mrb[53].mxu0 }
 0x173   : > { %2061 = vst.msk [vmem:[#allocation2 + $0xd1] sm:$0xff] %vm2034_vm3, %v997_v11  ;;  %v3891_v17 = vmax.f32 %v579_v12, %v997_v11 }
 0x174   : > { %v947_v18 = vpop.f32.mrb[54].mxu1  ;;  %v529_v19 = vpop.f32.mrb[54].mxu0 }
 0x175   : > { %5306 = vst [vmem:[#allocation16_spill] sm:$0xff] %v3891_v17  ;;  %v998_v21 = vmax.f32 %v947_v18, 0.0  ;;  %v580_v22 = vmax.f32 %v529_v19, 0.0  ;;  %v949_v24 = vpop.f32.mrb[55].mxu1  ;;  %v531_v28 = vpop.f32.mrb[55].mxu0 }
 0x177   : > { %2062 = vst.msk [vmem:[#allocation2 + $0xd9] sm:$0xff] %vm2034_vm3, %v998_v21  ;;  %v3894_v29 = vmax.f32 %v580_v22, %v998_v21 }
 0x178   : > { %v952_v31 = vpop.f32.mrb[56].mxu1  ;;  %v534_v32 = vpop.f32.mrb[56].mxu0 }
 0x179   : > { %5307 = vst [vmem:[#allocation17_spill] sm:$0xff] %v3894_v29  ;;  %v999_v35 = vmax.f32 %v952_v31, 0.0  ;;  %v581_v36 = vmax.f32 %v534_v32, 0.0  ;;  %v954_v39 = vpop.f32.mrb[57].mxu1  ;;  %v536_v40 = vpop.f32.mrb[57].mxu0  ;;  %v3910_v31 = vld [vmem:[#allocation2 + $0x8] sm:$0xff] }
 0x17a   : > { %v5312_v29 = vmov 0.0  }
 0x17b   : > { %2063 = vst.msk [vmem:[#allocation2 + $0xe1] sm:$0xff] %vm2034_vm3, %v999_v35  ;;  %v3897_v41 = vmax.f32 %v581_v36, %v999_v35 }
 0x17c   : > { %v957_v43 = vpop.f32.mrb[58].mxu1  ;;  %v539_v44 = vpop.f32.mrb[58].mxu0 }
 0x17d   : > { %5308 = vst [vmem:[#allocation18_spill] sm:$0xff] %v3897_v41  ;;  %v1000_v45 = vmax.f32 %v957_v43, 0.0  ;;  %v582_v48 = vmax.f32 %v539_v44, 0.0  ;;  %v959_v50 = vpop.f32.mrb[59].mxu1  ;;  %v541_v52 = vpop.f32.mrb[59].mxu0  ;;  %v4008_v41 = vld [vmem:[#allocation2 + $0x30] sm:$0xff] }
 0x17f   : > { %2064 = vst.msk [vmem:[#allocation2 + $0xe9] sm:$0xff] %vm2034_vm3, %v1000_v45  ;;  %v3900_v53 = vmax.f32 %v582_v48, %v1000_v45  ;;  %v3924_v48 = vld [vmem:[#allocation2 + $0x10] sm:$0xff] }
 0x180   : > { %v962_v55 = vpop.f32.mrb[60].mxu1  ;;  %v544_v56 = vpop.f32.mrb[60].mxu0 }
 0x181   : > { %5309 = vst [vmem:[#allocation19_spill] sm:$0xff] %v3900_v53  ;;  %v1001_v58 = vmax.f32 %v962_v55, 0.0  ;;  %v583_v61 = vmax.f32 %v544_v56, 0.0  ;;  %v964_v63 = vpop.f32.mrb[61].mxu1  ;;  %v546_v0 = vpop.f32.mrb[61].mxu0 }
 0x183   : > { %2065 = vst.msk [vmem:[#allocation2 + $0xf1] sm:$0xff] %vm2034_vm3, %v1001_v58  ;;  %v3903_v1 = vmax.f32 %v583_v61, %v1001_v58 }
 0x184   : > { %v967_v2 = vpop.f32.mrb[62].mxu1  ;;  %v549_v8 = vpop.f32.mrb[62].mxu0 }
 0x185   : > { %5310 = vst [vmem:[#allocation20_spill] sm:$0xff] %v3903_v1  ;;  %v1002_v10 = vmax.f32 %v967_v2, 0.0  ;;  %v584_v11 = vmax.f32 %v549_v8, 0.0  ;;  %v969_v12 = vpop.f32.mrb[63].mxu1  ;;  %v551_v3 = vpop.f32.mrb[63].mxu0  ;;  %v3940_v8 = vld [vmem:[#allocation2 + $0x18] sm:$0xff] }
 0x187   : > { %2067 = vst.msk [vmem:[#allocation2 + $0xf9] sm:$0x7f] %vm2066_vm4, %v1002_v10  ;;  %v3906_v13 = vmax.f32 %v584_v11, %v1002_v10  ;;  %v1935_v11 = vlaneseq }
 0x188   : > { %v1230_v18 = vpop.f32.mrb[64].mxu0  ;;  %v1648_v19 = vpop.f32.mrb[64].mxu1 }
 0x189   : > { %5311 = vst [vmem:[#allocation21_spill] sm:$0xff] %v3906_v13  ;;  %v1389_v21 = vmax.f32 %v1230_v18, 0.0  ;;  %v3908_v22 = vmax.f32 %v1648_v19, 0.0  ;;  %v1650_v24 = vpop.f32.mrb[65].mxu1  ;;  %v1232_v28 = vpop.f32.mrb[65].mxu0 }
 0x18b   : > { %v3913_v32 = vmax.f32 %v1389_v21, %v3908_v22  ;;  %2229 = vst.msk [vmem:[#allocation2 + $0x1] sm:$0xff] %vm2034_vm3, %v3908_v22 }
 0x18c   : > { %v3917_v35 = vpop.f32.mrb[66].mxu0  ;;  %v1653_v36 = vpop.f32.mrb[66].mxu1 }
 0x18d   : > { %v1390_v40 = vmax.f32 %v3917_v35, 0.0  ;;  %v3922_v43 = vmax.f32 %v1653_v36, 0.0  ;;  %v1655_v44 = vpop.f32.mrb[67].mxu1  ;;  %v1237_v45 = vpop.f32.mrb[67].mxu0 }
 0x18e   : > { %v3960_v44 = vld [vmem:[#allocation2 + $0x20] sm:$0xff] }
 0x18f   : > { %v3927_v50 = vmax.f32 %v1390_v40, %v3922_v43  ;;  %2230 = vst.msk [vmem:[#allocation2 + $0x9] sm:$0xff] %vm2034_vm3, %v3922_v43 }
 0x190   : > { %v3931_v52 = vpop.f32.mrb[68].mxu0  ;;  %v1658_v55 = vpop.f32.mrb[68].mxu1 }
 0x191   : > { %v5245_v58 = vmax.f32 %v3931_v52, 0.0  ;;  %v3936_v61 = vmax.f32 %v1658_v55, 0.0  ;;  %v1660_v63 = vpop.f32.mrb[69].mxu1  ;;  %v1242_v0 = vpop.f32.mrb[69].mxu0  ;;  %v3971_v55 = vshrl.u32 %v1935_v11, 7 }
 0x192   : > { %v3938_v2 = vld [vmem:[#allocation2] sm:$0xff] }
 0x193   : > { %2357 = vst.msk [vmem:[#allocation2] sm:$0xff] %vm2034_vm3, %v5246_v30  ;;  %v3947_v10 = vmax.f32 %v5245_v58, %v3936_v61  ;;  %2231 = vst.msk [vmem:[#allocation2 + $0x11] sm:$0xff] %vm2034_vm3, %v3936_v61  ;;  %v3984_v58 = vld [vmem:[#allocation2 + $0x28] sm:$0xff] }
 0x194   : > { %v3951_v12 = vpop.f32.mrb[70].mxu0  ;;  %v1663_v3 = vpop.f32.mrb[70].mxu1 }
 0x195   : > { %v5244_v19 = vmax.f32 %v3951_v12, 0.0  ;;  %v3956_v24 = vmax.f32 %v1663_v3, 0.0  ;;  %v1665_v28 = vpop.f32.mrb[71].mxu1  ;;  %v1247_v35 = vpop.f32.mrb[71].mxu0 }
 0x196   : > { %v3958_v36 = vld [vmem:[#allocation2 + $0x8] sm:$0xff] }
 0x197   : > { %2358 = vst.msk [vmem:[#allocation2 + $0x8] sm:$0xff] %vm2034_vm3, %v5246_v30  ;;  %v3967_v45 = vmax.f32 %v5244_v19, %v3956_v24  ;;  %2232 = vst.msk [vmem:[#allocation2 + $0x19] sm:$0xff] %vm2034_vm3, %v3956_v24 }
 0x198   : > { %v3973_v63 = vpop.f32.mrb[72].mxu0  ;;  %v1668_v0 = vpop.f32.mrb[72].mxu1 }
 0x199   : > { %v5251_v28 = vmax.f32 %v3973_v63, 0.0  ;;  %v3978_v35 = vmax.f32 %v1668_v0, 0.0  ;;  %v1670_v18 = vpop.f32.mrb[73].mxu1  ;;  %v1252_v56 = vpop.f32.mrb[73].mxu0 }
 0x19a   : > { %v3980_v39 = vld [vmem:[#allocation2] sm:$0xff]  ;;  %v3982_v19 = vld [vmem:[#allocation2 + $0x10] sm:$0xff]  ;;  %v1968_v56 = vand.u32 15, %v3971_v55 }
 0x19b   : > { %2453 = vst.msk [vmem:[#allocation2] sm:$0xff] %vm2034_vm3, %v5246_v30  ;;  %2359 = vst.msk [vmem:[#allocation2 + $0x10] sm:$0xff] %vm2034_vm3, %v1389_v21  ;;  %v3992_v11 = vmax.f32 %v5251_v28, %v3978_v35 }
 0x19c   : > { %2233 = vst.msk [vmem:[#allocation2 + $0x21] sm:$0xff] %vm2034_vm3, %v3978_v35  ;;  %v3997_v18 = vpop.f32.mrb[74].mxu0  ;;  %v1673_v0 = vpop.f32.mrb[74].mxu1  ;;  %vm4020_vm5 = vcmp.ne.s32.totalorder %v1968_v56, 0 }
 0x19d   : > { %v5257_v30 = vmax.f32 %v3997_v18, 0.0  ;;  %v4002_v13 = vmax.f32 %v1673_v0, 0.0  ;;  %v1675_v21 = vpop.f32.mrb[75].mxu1  ;;  %v1257_v1 = vpop.f32.mrb[75].mxu0  ;;  %v2164_v16 = vsel %vm4020_vm5, %v3772_v25, 0.0  ;;  %v2293_v17 = vsel %vm4020_vm5, %v3938_v2, 0.0 }
 0x19e   : > { %v4004_v53 = vld [vmem:[#allocation2 + $0x8] sm:$0xff]  ;;  %v4006_v28 = vld [vmem:[#allocation2 + $0x18] sm:$0xff]  ;;  %v5317_v25 = vmax.f32 %v3755_v4, %v3913_v32 }
 0x19f   : > { %2454 = vst.msk [vmem:[#allocation2 + $0x8] sm:$0xff] %vm2034_vm3, %v5312_v29  ;;  %2360 = vst.msk [vmem:[#allocation2 + $0x18] sm:$0xff] %vm2034_vm3, %v1390_v40  ;;  %v4016_v3 = vmax.f32 %v5257_v30, %v4002_v13 }
 0x1a0   : > { %2234 = vst.msk [vmem:[#allocation2 + $0x29] sm:$0xff] %vm2034_vm3, %v4002_v13  ;;  %v4024_v0 = vpop.f32.mrb[76].mxu0  ;;  %v1678_v21 = vpop.f32.mrb[76].mxu1 }
 0x1a1   : > { %v5267_v40 = vmax.f32 %v4024_v0, 0.0  ;;  %v4029_v5 = vmax.f32 %v1678_v21, 0.0  ;;  %v1680_v30 = vpop.f32.mrb[77].mxu1  ;;  %v1262_v47 = vpop.f32.mrb[77].mxu0  ;;  %v1938_v21 = vadd.s32 16, %v3971_v55 }
 0x1a2   : > { %v2485_v37 = vld [vmem:[#allocation2] sm:$0xff]  ;;  %v4033_v27 = vld [vmem:[#allocation2 + $0x10] sm:$0xff]  ;;  %v5316_v30 = vmax.f32 %v3931_v52, 0.0  ;;  %v2196_v47 = vmax.f32 %v5317_v25, %v2164_v16  ;;  %v5319_v52 = vmax.f32 %v3764_v14, %v3927_v50 }
 0x1a3   : > { %v4035_v56 = vld [vmem:[#allocation2 + $0x20] sm:$0xff]  ;;  %2549 = vst.msk [vmem:[#allocation2] sm:$0xff] %vm2034_vm3, %v5312_v29  ;;  %2455 = vst.msk [vmem:[#allocation2 + $0x10] sm:$0xff] %vm2034_vm3, %v3908_v22  ;;  %v4059_v2 = vmax.f32 %v5267_v40, %v4029_v5 }
 0x1a4   : > { %2361 = vst.msk [vmem:[#allocation2 + $0x20] sm:$0xff] %vm2034_vm3, %v5316_v30  ;;  %2235 = vst.msk [vmem:[#allocation2 + $0x31] sm:$0xff] %vm2034_vm3, %v4029_v5  ;;  %v4061_v6 = vpop.f32.mrb[78].mxu0  ;;  %v1683_v59 = vpop.f32.mrb[78].mxu1  ;;  %v2325_v16 = vmax.f32 %v2196_v47, %v2293_v17  ;;  %v2197_v23 = vmax.f32 %v5319_v52, %v3910_v31  ;;  %v1970_v31 = vand.u32 15, %v1938_v21 }
 0x1a5   : > { %v4064_v30 = vmax.f32 %v1683_v59, 0.0  ;;  %v1685_v42 = vpop.f32.mrb[79].mxu1  ;;  %v1267_v4 = vpop.f32.mrb[79].mxu0  ;;  %v5321_v59 = vmax.f32 %v4061_v6, 0.0 }
 0x1a6   : > { %v2486_v32 = vld [vmem:[#allocation2 + $0x8] sm:$0xff]  ;;  %v4068_v25 = vld [vmem:[#allocation2 + $0x18] sm:$0xff]  ;;  %v5320_v42 = vmax.f32 %v3951_v12, 0.0  ;;  %v2421_v14 = vmax.f32 %v2325_v16, %v3980_v39  ;;  %v2326_v52 = vmax.f32 %v2197_v23, %v3958_v36  ;;  %vm4124_vm6 = vcmp.ne.s32.totalorder %v1970_v31, 0 }
 0x1a7   : > { %v4070_v33 = vld [vmem:[#allocation2 + $0x28] sm:$0xff]  ;;  %2550 = vst.msk [vmem:[#allocation2 + $0x8] sm:$0xff] %vm2034_vm3, %v5312_v29  ;;  %2456 = vst.msk [vmem:[#allocation2 + $0x18] sm:$0xff] %vm2034_vm3, %v3922_v43  ;;  %v4088_v17 = vmax.f32 %v5321_v59, %v4064_v30 }
 0x1a8   : > { %2362 = vst.msk [vmem:[#allocation2 + $0x28] sm:$0xff] %vm2034_vm3, %v5320_v42  ;;  %2236 = vst.msk [vmem:[#allocation2 + $0x39] sm:$0xff] %vm2034_vm3, %v4064_v30  ;;  %v4094_v50 = vpop.f32.mrb[80].mxu0  ;;  %v1688_v47 = vpop.f32.mrb[80].mxu1  ;;  %v4102_v59 = vld [vmem:[#allocation2 + $0x48] sm:$0xff]  ;;  %v2517_v15 = vmax.f32 %v2421_v14, %v2485_v37  ;;  %v2422_v36 = vmax.f32 %v2326_v52, %v4004_v53  ;;  %v5325_v53 = vmax.f32 %v3973_v63, 0.0 }
 0x1a9   : > { %v5270_v4 = vmax.f32 %v4094_v50, 0.0  ;;  %v4100_v42 = vmax.f32 %v1688_v47, 0.0  ;;  %5322 = vst [vmem:[#allocation24_spill] sm:$0xff] %v4102_v59  ;;  %v1690_v40 = vpop.f32.mrb[81].mxu1  ;;  %v1272_v51 = vpop.f32.mrb[81].mxu0  ;;  %v4142_v47 = vld [vmem:[#allocation2 + $0x50] sm:$0xff] }
 0x1aa   : > { %v2582_v57 = vld [vmem:[#allocation2] sm:$0xff]  ;;  %v4104_v39 = vld [vmem:[#allocation2 + $0x10] sm:$0xff]  ;;  %v2518_v14 = vmax.f32 %v2422_v36, %v2486_v32  ;;  %5326 = vst [vmem:[#allocation25_spill] sm:$0xff] %v4142_v47  ;;  %v2166_v36 = vsel %vm4124_vm6, %v3924_v48, 0.0  ;;  %v5327_v48 = vmax.f32 %v3775_v26, %v3947_v10 }
 0x1ab   : > { %v4106_v21 = vld [vmem:[#allocation2 + $0x20] sm:$0xff]  ;;  %v2614_v23 = vsel %vm4020_vm5, %v2582_v57, 0.0  ;;  %2551 = vst.msk [vmem:[#allocation2 + $0x10] sm:$0x1] %vm2032_vm2, %v5312_v29  ;;  %v4120_v51 = vld [vmem:[#allocation2 + $0x30] sm:$0xff]  ;;  %v1940_v57 = vadd.s32 32, %v3971_v55  ;;  %v4135_v29 = vmax.f32 %v5270_v4, %v4100_v42 }
 0x1ac   : > { %2457 = vst.msk [vmem:[#allocation2 + $0x20] sm:$0xff] %vm2034_vm3, %v3936_v61  ;;  %2237 = vst.msk [vmem:[#allocation2 + $0x41] sm:$0xff] %vm2034_vm3, %v4100_v42  ;;  %v2646_v37 = vmax.f32 %v2517_v15, %v2614_v23  ;;  %v4137_v1 = vpop.f32.mrb[82].mxu0  ;;  %v1693_v16 = vpop.f32.mrb[82].mxu1 }
 0x1ad   : > { %2363 = vst.msk [vmem:[#allocation2 + $0x30] sm:$0xff] %vm2034_vm3, %v5325_v53  ;;  %v5271_v15 = vmax.f32 %v4137_v1, 0.0  ;;  %v4140_v31 = vmax.f32 %v1693_v16, 0.0  ;;  %v1695_v52 = vpop.f32.mrb[83].mxu1  ;;  %v1277_v23 = vpop.f32.mrb[83].mxu0  ;;  %v2295_v16 = vsel %vm4124_vm6, %v3982_v19, 0.0  ;;  %v2198_v19 = vmax.f32 %v5327_v48, %v2166_v36 }
 0x1ae   : > { %2678 = vst.msk [vmem:[%s4111_s29] sm:$0xff] %vm2034_vm3, %v2646_v37  ;;  %v2583_v63 = vld [vmem:[#allocation2 + $0x8] sm:$0xff]  ;;  %v4146_v53 = vld [vmem:[#allocation2 + $0x18] sm:$0xff]  ;;  %v1972_v52 = vand.u32 15, %v1940_v57 }
 0x1af   : > { %v4148_v12 = vld [vmem:[#allocation2 + $0x28] sm:$0xff]  ;;  %v2647_v32 = vmax.f32 %v2518_v14, %v2583_v63  ;;  %2552 = vst.msk [vmem:[#allocation2 + $0x11] sm:$0xff] %vm2034_vm3, %v3908_v22  ;;  %v4162_v37 = vld [vmem:[#allocation2 + $0x38] sm:$0xff]  ;;  %v4167_v14 = vmax.f32 %v5271_v15, %v4140_v31  ;;  %2238 = vst.msk [vmem:[#allocation2 + $0x49] sm:$0xff] %vm2034_vm3, %v4140_v31  ;;  %v5328_v22 = vmax.f32 %v3997_v18, 0.0  ;;  %v2327_v10 = vmax.f32 %v2198_v19, %v2295_v16 }
 0x1b0   : > { %2458 = vst.msk [vmem:[#allocation2 + $0x28] sm:$0xff] %vm2034_vm3, %v3956_v24  ;;  %v4177_v23 = vpop.f32.mrb[84].mxu0  ;;  %v1698_v63 = vpop.f32.mrb[84].mxu1  ;;  %v4190_v36 = vld [vmem:[#allocation2 + $0x58] sm:$0xff]  ;;  %vm4211_vm7 = vcmp.ne.s32.totalorder %v1972_v52, 0  ;;  %v4226_v52 = vld [vmem:[#allocation2 + $0x60] sm:$0xff] }
 0x1b1   : > { %2364 = vst.msk [vmem:[#allocation2 + $0x38] sm:$0xff] %vm2034_vm3, %v5328_v22  ;;  %2679 = vst.msk [vmem:[%s4111_s29 + $0x8] sm:$0xff] %vm2034_vm3, %v2647_v32  ;;  %v5272_v15 = vmax.f32 %v4177_v23, 0.0  ;;  %v4184_v47 = vmax.f32 %v1698_v63, 0.0  ;;  %v1700_v59 = vpop.f32.mrb[85].mxu1  ;;  %v1282_v26 = vpop.f32.mrb[85].mxu0  ;;  %v5330_v32 = vmax.f32 %v3786_v38, %v3967_v45  ;;  %v2423_v38 = vmax.f32 %v2327_v10, %v4033_v27 }
 0x1b2   : > { %5329 = vst [vmem:[#allocation26_spill] sm:$0xff] %v4190_v36  ;;  %v5331_v59 = vmax.f32 %v4024_v0, 0.0 }
 0x1b3   : > { %v4186_v57 = vld [vmem:[#allocation2 + $0x20] sm:$0xff]  ;;  %v2199_v48 = vmax.f32 %v5330_v32, %v3940_v8  ;;  %v4206_v16 = vmax.f32 %v5272_v15, %v4184_v47  ;;  %2239 = vst.msk [vmem:[#allocation2 + $0x51] sm:$0xff] %vm2034_vm3, %v4184_v47 }
 0x1b4   : > { %v4188_v18 = vld [vmem:[#allocation2 + $0x40] sm:$0xff]  ;;  %2553 = vst.msk [vmem:[#allocation2 + $0x19] sm:$0xff] %vm2034_vm3, %v3922_v43  ;;  %v4198_v22 = vld [vmem:[#allocation2 + $0x30] sm:$0xff]  ;;  %v1942_v43 = vadd.s32 48, %v3971_v55  ;;  %v4218_v45 = vpop.f32.mrb[86].mxu0  ;;  %v1703_v0 = vpop.f32.mrb[86].mxu1 }
 0x1b5   : > { %2365 = vst.msk [vmem:[#allocation2 + $0x40] sm:$0xff] %vm2034_vm3, %v5331_v59  ;;  %2459 = vst.msk [vmem:[#allocation2 + $0x30] sm:$0xff] %vm2034_vm3, %v3978_v35  ;;  %v2328_v19 = vmax.f32 %v2199_v48, %v4006_v28  ;;  %v5275_v26 = vmax.f32 %v4218_v45, 0.0  ;;  %v4224_v27 = vmax.f32 %v1703_v0, 0.0  ;;  %v1705_v10 = vpop.f32.mrb[87].mxu1  ;;  %v1287_v32 = vpop.f32.mrb[87].mxu0  ;;  %v2519_v59 = vmax.f32 %v2423_v38, %v4104_v39 }
 0x1b6   : > { %v2584_v4 = vld [vmem:[#allocation2 + $0x10] sm:$0xff]  ;;  %v4231_v36 = vld [vmem:[#allocation2 + $0x48] sm:$0xff]  ;;  %v2168_v0 = vsel %vm4211_vm7, %v3960_v44, 0.0  ;;  %v2297_v10 = vsel %vm4211_vm7, %v4035_v56, 0.0  ;;  %v5334_v38 = vmax.f32 %v4061_v6, 0.0  ;;  %v5335_v44 = vmax.f32 %v3795_v49, %v3992_v11 }
 0x1b7   : > { %v4229_v15 = vld [vmem:[#allocation2 + $0x28] sm:$0xff]  ;;  %v2424_v28 = vmax.f32 %v2328_v19, %v4068_v25  ;;  %v2616_v48 = vsel %vm4124_vm6, %v2584_v4, 0.0  ;;  %2240 = vst.msk [vmem:[#allocation2 + $0x59] sm:$0xff] %vm2034_vm3, %v4224_v27  ;;  %v1974_v40 = vand.u32 15, %v1942_v43 }
 0x1b8   : > { %2554 = vst.msk [vmem:[#allocation2 + $0x21] sm:$0xff] %vm2034_vm3, %v3936_v61  ;;  %v4244_v39 = vld [vmem:[#allocation2 + $0x38] sm:$0xff]  ;;  %2366 = vst.msk [vmem:[#allocation2 + $0x48] sm:$0xff] %vm2034_vm3, %v5334_v38  ;;  %v2648_v25 = vmax.f32 %v2519_v59, %v2616_v48  ;;  %v2200_v4 = vmax.f32 %v5335_v44, %v2168_v0  ;;  %v4259_v61 = vmax.f32 %v5275_v26, %v4224_v27  ;;  %v4261_v6 = vpop.f32.mrb[88].mxu0  ;;  %v1708_v56 = vpop.f32.mrb[88].mxu1  ;;  %v4267_v49 = vld [vmem:[#allocation2 + $0x68] sm:$0xff] }
 0x1b9   : > { %2460 = vst.msk [vmem:[#allocation2 + $0x38] sm:$0xff] %vm2034_vm3, %v4002_v13  ;;  %v2520_v19 = vmax.f32 %v2424_v28, %v4146_v53  ;;  %v5273_v32 = vmax.f32 %v4261_v6, 0.0  ;;  %v4265_v59 = vmax.f32 %v1708_v56, 0.0  ;;  %v1710_v11 = vpop.f32.mrb[89].mxu1  ;;  %v1292_v43 = vpop.f32.mrb[89].mxu0  ;;  %v1944_v56 = vadd.s32 64, %v3971_v55 }
 0x1ba   : > { %2680 = vst.msk [vmem:[%s4111_s29 + $0x10] sm:$0xff] %vm2034_vm3, %v2648_v25  ;;  %v2329_v48 = vmax.f32 %v2200_v4, %v2297_v10  ;;  %v4273_v44 = vld [vmem:[#allocation2 + $0x50] sm:$0xff]  ;;  %v5336_v25 = vmax.f32 %v4094_v50, 0.0  ;;  %vm4297_vm8 = vcmp.ne.s32.totalorder %v1974_v40, 0 }
 0x1bb   : > { %v2585_v0 = vld [vmem:[#allocation2 + $0x18] sm:$0xff]  ;;  %v4288_v10 = vmax.f32 %v5273_v32, %v4265_v59  ;;  %2241 = vst.msk [vmem:[#allocation2 + $0x61] sm:$0xff] %vm2034_vm3, %v4265_v59 }
 0x1bc   : > { %v4271_v38 = vld [vmem:[#allocation2 + $0x40] sm:$0xff]  ;;  %v2649_v28 = vmax.f32 %v2520_v19, %v2585_v0  ;;  %v4277_v63 = vld [vmem:[#allocation2 + $0x30] sm:$0xff]  ;;  %2367 = vst.msk [vmem:[#allocation2 + $0x50] sm:$0xff] %vm2034_vm3, %v5336_v25  ;;  %v2425_v4 = vmax.f32 %v2329_v48, %v4106_v21  ;;  %v5337_v19 = vmax.f32 %v3804_v60, %v4016_v3  ;;  %v4303_v50 = vpop.f32.mrb[90].mxu0  ;;  %v1713_v0 = vpop.f32.mrb[90].mxu1 }
 0x1bd   : > { %2461 = vst.msk [vmem:[#allocation2 + $0x40] sm:$0xff] %vm2034_vm3, %v4029_v5  ;;  %2555 = vst.msk [vmem:[#allocation2 + $0x29] sm:$0xff] %vm2034_vm3, %v3956_v24  ;;  %v5274_v48 = vmax.f32 %v4303_v50, 0.0  ;;  %v4310_v25 = vmax.f32 %v1713_v0, 0.0  ;;  %v4312_v60 = vld [vmem:[#allocation2 + $0x70] sm:$0xff]  ;;  %v1297_v3 = vpop.f32.mrb[91].mxu0 }
 0x1be   : > { %v2201_v11 = vmax.f32 %v5337_v19, %v3984_v58  ;;  %2681 = vst.msk [vmem:[%s4111_s29 + $0x18] sm:$0xff] %vm2034_vm3, %v2649_v28  ;;  %v1715_v58 = vpop.f32.mrb[91].mxu1  ;;  %v2521_v40 = vmax.f32 %v2425_v4, %v4186_v57  ;;  %v4318_v32 = vld [vmem:[#allocation2 + $0x58] sm:$0xff]  ;;  %v2170_v0 = vsel %vm4297_vm8, %v4008_v41, 0.0  ;;  %v2299_v41 = vsel %vm4297_vm8, %v4120_v51, 0.0 }
 0x1bf   : > { %v2586_v19 = vld [vmem:[#allocation2 + $0x20] sm:$0xff]  ;;  %v4316_v53 = vld [vmem:[#allocation2 + $0x48] sm:$0xff]  ;;  %v1976_v58 = vand.u32 15, %v1944_v56  ;;  %2242 = vst.msk [vmem:[#allocation2 + $0x69] sm:$0xff] %vm2034_vm3, %v4310_v25  ;;  %v4353_v51 = vld [vmem:[#allocation2 + $0x78] sm:$0xff] }
 0x1c0   : > { %v2330_v24 = vmax.f32 %v2201_v11, %v4070_v33  ;;  %v2618_v28 = vsel %vm4211_vm7, %v2586_v19, 0.0  ;;  %v4325_v21 = vld [vmem:[#allocation2 + $0x38] sm:$0xff]  ;;  %2462 = vst.msk [vmem:[#allocation2 + $0x48] sm:$0xff] %vm2034_vm3, %v4064_v30  ;;  %v5340_v33 = vmax.f32 %v4137_v1, 0.0  ;;  %v4343_v1 = vmax.f32 %v5274_v48, %v4310_v25  ;;  %v4345_v56 = vpop.f32.mrb[92].mxu0  ;;  %v1718_v4 = vpop.f32.mrb[92].mxu1 }
 0x1c1   : > { %v2650_v8 = vmax.f32 %v2521_v40, %v2618_v28  ;;  %2556 = vst.msk [vmem:[#allocation2 + $0x31] sm:$0xff] %vm2034_vm3, %v3978_v35  ;;  %v5341_v11 = vmax.f32 %v3813_v9, %v4059_v2  ;;  %v5276_v3 = vmax.f32 %v4345_v56, 0.0  ;;  %v4351_v40 = vmax.f32 %v1718_v4, 0.0  ;;  %5342 = vst [vmem:[#allocation27_spill] sm:$0xff] %v4353_v51  ;;  %v1302_v35 = vpop.f32.mrb[93].mxu0  ;;  %v5343_v28 = vld [vmem:[#allocation22_spill] sm:$0xff] }
 0x1c2   : > { %2368 = vst.msk [vmem:[#allocation2 + $0x58] sm:$0xff] %vm2034_vm3, %v5340_v33  ;;  %v2426_v57 = vmax.f32 %v2330_v24, %v4148_v12  ;;  %v1720_v24 = vpop.f32.mrb[93].mxu1  ;;  %v5344_v33 = vmax.f32 %v3822_v20, %v4088_v17  ;;  %v4366_v2 = vld [vmem:[#allocation2 + $0x60] sm:$0xff]  ;;  %v5346_v20 = vmax.f32 %v4177_v23, 0.0  ;;  %vm4385_vm9 = vcmp.ne.s32.totalorder %v1976_v58, 0  ;;  %v5349_v35 = vld [vmem:[#allocation4_spill] sm:$0xff] }
 0x1c3   : > { %v2202_v12 = vmax.f32 %v5341_v11, %v2170_v0  ;;  %2682 = vst.msk [vmem:[%s4111_s29 + $0x20] sm:$0xff] %vm2034_vm3, %v2650_v8  ;;  %v4364_v9 = vld [vmem:[#allocation2 + $0x50] sm:$0xff]  ;;  %v5345_v0 = vld [vmem:[#allocation3_spill] sm:$0xff]  ;;  %v4380_v17 = vmax.f32 %v5276_v3, %v4351_v40  ;;  %2243 = vst.msk [vmem:[#allocation2 + $0x71] sm:$0xff] %vm2034_vm3, %v4351_v40  ;;  %v1946_v23 = vadd.s32 80, %v3971_v55 }
 0x1c4   : > { %v2522_v19 = vmax.f32 %v2426_v57, %v4229_v15  ;;  %v2203_v48 = vmax.f32 %v5344_v33, %v5343_v28  ;;  %v4362_v26 = vld [vmem:[#allocation2 + $0x40] sm:$0xff]  ;;  %v2587_v24 = vld [vmem:[#allocation2 + $0x28] sm:$0xff]  ;;  %2463 = vst.msk [vmem:[#allocation2 + $0x50] sm:$0xff] %vm2034_vm3, %v4100_v42  ;;  %2369 = vst.msk [vmem:[#allocation2 + $0x60] sm:$0xff] %vm2034_vm3, %v5346_v20  ;;  %v4390_v8 = vpop.f32.mrb[94].mxu0 }
 0x1c5   : > { %v2331_v11 = vmax.f32 %v2202_v12, %v2299_v41  ;;  %2557 = vst.msk [vmem:[#allocation2 + $0x39] sm:$0xff] %vm2034_vm3, %v4002_v13  ;;  %v1723_v41 = vpop.f32.mrb[94].mxu1  ;;  %v5277_v33 = vmax.f32 %v4390_v8, 0.0  ;;  %v5351_v3 = vld [vmem:[#allocation23_spill] sm:$0xff]  ;;  %v5363_v13 = vmax.f32 %v3843_v54, %v4206_v16  ;;  %v4528_v54 = vld [vmem:[#allocation2 + $0x98] sm:$0xff] }
 0x1c6   : > { %v2651_v15 = vmax.f32 %v2522_v19, %v2587_v24  ;;  %v2332_v57 = vmax.f32 %v2203_v48, %v4162_v37  ;;  %v4396_v20 = vmax.f32 %v1723_v41, 0.0  ;;  %v4398_v19 = vld [vmem:[#allocation2 + $0x80] sm:$0xff]  ;;  %v1725_v37 = vpop.f32.mrb[95].mxu1  ;;  %v1307_v48 = vpop.f32.mrb[95].mxu0  ;;  %v4406_v4 = vld [vmem:[#allocation2 + $0x68] sm:$0xff]  ;;  %v2172_v41 = vsel %vm4385_vm9, %v5351_v3, 0.0 }
 0x1c7   : > { %v2427_v12 = vmax.f32 %v2331_v11, %v4198_v22  ;;  %5350 = vst [vmem:[#allocation22_spill] sm:$0xff] %v4398_v19  ;;  %v4402_v58 = vld [vmem:[#allocation2 + $0x48] sm:$0xff]  ;;  %v2301_v37 = vsel %vm4385_vm9, %v4188_v18, 0.0  ;;  %v1978_v3 = vand.u32 15, %v1946_v23  ;;  %v5354_v19 = vld [vmem:[#allocation5_spill] sm:$0xff]  ;;  %5365 = vst [vmem:[#allocation4_spill] sm:$0xff] %v4528_v54 }
 0x1c8   : > { %2683 = vst.msk [vmem:[%s4111_s29 + $0x28] sm:$0xff] %vm2034_vm3, %v2651_v15  ;;  %v2428_v11 = vmax.f32 %v2332_v57, %v4244_v39  ;;  %v2588_v28 = vld [vmem:[#allocation2 + $0x30] sm:$0xff]  ;;  %2558 = vst.msk [vmem:[#allocation2 + $0x41] sm:$0xff] %vm2034_vm3, %v4029_v5  ;;  %v5352_v15 = vmax.f32 %v4218_v45, 0.0  ;;  %v5353_v39 = vmax.f32 %v3831_v34, %v4135_v29  ;;  %v4433_v5 = vmax.f32 %v5277_v33, %v4396_v20  ;;  %v4435_v45 = vpop.f32.mrb[96].mxu0  ;;  %v1728_v57 = vpop.f32.mrb[96].mxu1 }
 0x1c9   : > { %v4404_v24 = vld [vmem:[#allocation2 + $0x58] sm:$0xff]  ;;  %v2523_v22 = vmax.f32 %v2427_v12, %v4277_v63  ;;  %2244 = vst.msk [vmem:[#allocation2 + $0x79] sm:$0xff] %vm2034_vm3, %v4396_v20  ;;  %v2620_v63 = vsel %vm4297_vm8, %v2588_v28, 0.0  ;;  %v5278_v43 = vmax.f32 %v4435_v45, 0.0  ;;  %v4439_v28 = vmax.f32 %v1728_v57, 0.0  ;;  %v1730_v34 = vpop.f32.mrb[97].mxu1 }
 0x1ca   : > { %2464 = vst.msk [vmem:[#allocation2 + $0x58] sm:$0xff] %vm2034_vm3, %v4140_v31  ;;  %2370 = vst.msk [vmem:[#allocation2 + $0x68] sm:$0xff] %vm2034_vm3, %v5352_v15  ;;  %v2204_v18 = vmax.f32 %v5353_v39, %v2172_v41  ;;  %v2524_v12 = vmax.f32 %v2428_v11, %v4325_v21  ;;  %v4441_v15 = vld [vmem:[#allocation2 + $0x88] sm:$0xff]  ;;  %v1312_v29 = vpop.f32.mrb[97].mxu0  ;;  %v5356_v11 = vmax.f32 %v3840_v46, %v4167_v14  ;;  %vm4469_vm10 = vcmp.ne.s32.totalorder %v1978_v3, 0 }
 0x1cb   : > { %v2652_v48 = vmax.f32 %v2523_v22, %v2620_v63  ;;  %v4443_v39 = vld [vmem:[#allocation2 + $0x50] sm:$0xff]  ;;  %v4445_v33 = vld [vmem:[#allocation2 + $0x60] sm:$0xff]  ;;  %v5355_v22 = vld [vmem:[#allocation24_spill] sm:$0xff]  ;;  %2245 = vst.msk [vmem:[#allocation2 + $0x81] sm:$0xff] %vm2034_vm3, %v4439_v28  ;;  %v5359_v14 = vmax.f32 %v4261_v6, 0.0 }
 0x1cc   : > { %v2333_v23 = vmax.f32 %v2204_v18, %v2301_v37  ;;  %v2589_v41 = vld [vmem:[#allocation2 + $0x38] sm:$0xff]  ;;  %v2205_v63 = vmax.f32 %v5356_v11, %v5355_v22  ;;  %2559 = vst.msk [vmem:[#allocation2 + $0x49] sm:$0xff] %vm2034_vm3, %v4064_v30  ;;  %2465 = vst.msk [vmem:[#allocation2 + $0x60] sm:$0xff] %vm2034_vm3, %v4184_v47  ;;  %v4459_v37 = vld [vmem:[#allocation2 + $0x70] sm:$0xff]  ;;  %v4464_v18 = vmax.f32 %v5278_v43, %v4439_v28  ;;  %v1948_v30 = vadd.s32 96, %v3971_v55 }
 0x1cd   : > { %2684 = vst.msk [vmem:[%s4111_s29 + $0x30] sm:$0xff] %vm2034_vm3, %v2652_v48  ;;  %v2653_v21 = vmax.f32 %v2524_v12, %v2589_v41  ;;  %2371 = vst.msk [vmem:[#allocation2 + $0x70] sm:$0xff] %vm2034_vm3, %v5359_v14  ;;  %v4477_v12 = vpop.f32.mrb[98].mxu0  ;;  %v1733_v48 = vpop.f32.mrb[98].mxu1  ;;  %v5360_v29 = vld [vmem:[#allocation6_spill] sm:$0xff]  ;;  %v4487_v41 = vld [vmem:[#allocation2 + $0x90] sm:$0xff] }
 0x1ce   : > { %v2429_v57 = vmax.f32 %v2333_v23, %v4271_v38  ;;  %v2334_v34 = vmax.f32 %v2205_v63, %v4231_v36  ;;  %v5279_v3 = vmax.f32 %v4477_v12, 0.0  ;;  %v4485_v23 = vmax.f32 %v1733_v48, 0.0  ;;  %5361 = vst [vmem:[#allocation3_spill] sm:$0xff] %v4487_v41  ;;  %v1735_v22 = vpop.f32.mrb[99].mxu1  ;;  %v1317_v6 = vpop.f32.mrb[99].mxu0  ;;  %v5362_v63 = vld [vmem:[#allocation25_spill] sm:$0xff] }
 0x1cf   : > { %2685 = vst.msk [vmem:[%s4111_s29 + $0x38] sm:$0xff] %vm2034_vm3, %v2653_v21  ;;  %v2590_v14 = vld [vmem:[#allocation2 + $0x40] sm:$0xff]  ;;  %v2174_v48 = vsel %vm4469_vm10, %v5362_v63, 0.0  ;;  %v2303_v22 = vsel %vm4469_vm10, %v4273_v44, 0.0  ;;  %v5364_v44 = vmax.f32 %v4303_v50, 0.0 }
 0x1d0   : > { %v2525_v11 = vmax.f32 %v2429_v57, %v4362_v26  ;;  %v2430_v36 = vmax.f32 %v2334_v34, %v4316_v53  ;;  %v2622_v21 = vsel %vm4385_vm9, %v2590_v14, 0.0  ;;  %v4507_v26 = vld [vmem:[#allocation2 + $0x78] sm:$0xff]  ;;  %2246 = vst.msk [vmem:[#allocation2 + $0x89] sm:$0xff] %vm2034_vm3, %v4485_v23  ;;  %v2206_v57 = vmax.f32 %v5363_v13, %v2174_v48  ;;  %v4522_v6 = vpop.f32.mrb[100].mxu0  ;;  %v1738_v14 = vpop.f32.mrb[100].mxu1  ;;  %v5366_v38 = vld [vmem:[#allocation7_spill] sm:$0xff] }
 0x1d1   : > { %v4490_v51 = vld [vmem:[#allocation2 + $0x58] sm:$0xff]  ;;  %v4492_v43 = vld [vmem:[#allocation2 + $0x68] sm:$0xff]  ;;  %v1980_v34 = vand.u32 15, %v1948_v30  ;;  %2372 = vst.msk [vmem:[#allocation2 + $0x78] sm:$0xff] %vm2034_vm3, %v5364_v44  ;;  %v1740_v16 = vpop.f32.mrb[101].mxu1  ;;  %v1322_v50 = vpop.f32.mrb[101].mxu0 }
 0x1d2   : > { %2560 = vst.msk [vmem:[#allocation2 + $0x51] sm:$0xff] %vm2034_vm3, %v4100_v42  ;;  %2466 = vst.msk [vmem:[#allocation2 + $0x68] sm:$0xff] %vm2034_vm3, %v4224_v27  ;;  %v2654_v53 = vmax.f32 %v2525_v11, %v2622_v21  ;;  %v4520_v42 = vmax.f32 %v5279_v3, %v4485_v23  ;;  %v2526_v63 = vmax.f32 %v2430_v36, %v4402_v58  ;;  %v4526_v21 = vmax.f32 %v1738_v14, 0.0  ;;  %v4534_v44 = vld [vmem:[#allocation2 + $0x80] sm:$0xff]  ;;  %v5367_v3 = vld [vmem:[#allocation26_spill] sm:$0xff] }
 0x1d3   : > { %v2335_v30 = vmax.f32 %v2206_v57, %v2303_v22  ;;  %v2591_v48 = vld [vmem:[#allocation2 + $0x48] sm:$0xff]  ;;  %v4532_v13 = vld [vmem:[#allocation2 + $0x60] sm:$0xff]  ;;  %v5368_v14 = vmax.f32 %v3846_v62, %v4259_v61  ;;  %v5369_v22 = vmax.f32 %v4345_v56, 0.0  ;;  %v5370_v57 = vmax.f32 %v4522_v6, 0.0 }
 0x1d4   : > { %2686 = vst.msk [vmem:[%s4111_s29 + $0x40] sm:$0xff] %vm2034_vm3, %v2654_v53  ;;  %v2655_v36 = vmax.f32 %v2526_v63, %v2591_v48  ;;  %2561 = vst.msk [vmem:[#allocation2 + $0x59] sm:$0xff] %vm2034_vm3, %v4140_v31  ;;  %v4544_v53 = vld [vmem:[#allocation2 + $0x70] sm:$0xff]  ;;  %vm4557_vm11 = vcmp.ne.s32.totalorder %v1980_v34, 0  ;;  %v1950_v31 = vadd.s32 112, %v3971_v55  ;;  %v4564_v56 = vpop.f32.mrb[102].mxu0 }
 0x1d5   : > { %v2207_v11 = vmax.f32 %v5368_v14, %v5367_v3  ;;  %2373 = vst.msk [vmem:[#allocation2 + $0x80] sm:$0xff] %vm2034_vm3, %v5369_v22  ;;  %v4552_v16 = vmax.f32 %v5370_v57, %v4526_v21  ;;  %2247 = vst.msk [vmem:[#allocation2 + $0x91] sm:$0xff] %vm2034_vm3, %v4526_v21  ;;  %v2431_v62 = vmax.f32 %v2335_v30, %v4364_v9  ;;  %v1743_v3 = vpop.f32.mrb[102].mxu1  ;;  %v5373_v50 = vld [vmem:[#allocation8_spill] sm:$0xff]  ;;  %v5281_v9 = vmax.f32 %v4564_v56, 0.0  ;;  %v4574_v30 = vld [vmem:[#allocation2 + $0xa0] sm:$0xff] }
 0x1d6   : > { %2467 = vst.msk [vmem:[#allocation2 + $0x70] sm:$0xff] %vm2034_vm3, %v4265_v59  ;;  %2687 = vst.msk [vmem:[%s4111_s29 + $0x48] sm:$0xff] %vm2034_vm3, %v2655_v36  ;;  %v4572_v34 = vmax.f32 %v1743_v3, 0.0  ;;  %v1745_v14 = vpop.f32.mrb[103].mxu1  ;;  %v1327_v22 = vpop.f32.mrb[103].mxu0  ;;  %v2176_v36 = vsel %vm4557_vm11, %v4226_v52, 0.0  ;;  %v5375_v52 = vmax.f32 %v3849_v7, %v4288_v10 }
 0x1d7   : > { %v2336_v63 = vmax.f32 %v2207_v11, %v4318_v32  ;;  %v2527_v57 = vmax.f32 %v2431_v62, %v4443_v39  ;;  %v4579_v41 = vld [vmem:[#allocation2 + $0x88] sm:$0xff]  ;;  %v2305_v3 = vsel %vm4557_vm11, %v4366_v2, 0.0  ;;  %v5374_v62 = vmax.f32 %v4390_v8, 0.0 }
 0x1d8   : > { %v4592_v39 = vld [vmem:[#allocation2 + $0x78] sm:$0xff]  ;;  %2248 = vst.msk [vmem:[#allocation2 + $0x99] sm:$0xff] %vm2034_vm3, %v4572_v34  ;;  %v2208_v46 = vmax.f32 %v5375_v52, %v2176_v36  ;;  %v4609_v2 = vpop.f32.mrb[104].mxu0  ;;  %v1748_v8 = vpop.f32.mrb[104].mxu1  ;;  %v4615_v7 = vld [vmem:[#allocation2 + $0xa8] sm:$0xff]  ;;  %v5376_v52 = vld [vmem:[#allocation9_spill] sm:$0xff] }
 0x1d9   : > { %v2592_v58 = vld [vmem:[#allocation2 + $0x50] sm:$0xff]  ;;  %v4577_v54 = vld [vmem:[#allocation2 + $0x68] sm:$0xff]  ;;  %v2432_v32 = vmax.f32 %v2336_v63, %v4404_v24  ;;  %2374 = vst.msk [vmem:[#allocation2 + $0x88] sm:$0xff] %vm2034_vm3, %v5374_v62  ;;  %2468 = vst.msk [vmem:[#allocation2 + $0x78] sm:$0xff] %vm2034_vm3, %v4310_v25  ;;  %v5280_v14 = vmax.f32 %v4609_v2, 0.0  ;;  %v4613_v22 = vmax.f32 %v1748_v8, 0.0 }
 0x1da   : > { %v2624_v11 = vsel %vm4469_vm10, %v2592_v58, 0.0  ;;  %2562 = vst.msk [vmem:[#allocation2 + $0x61] sm:$0xff] %vm2034_vm3, %v4184_v47  ;;  %v1982_v58 = vand.u32 15, %v1950_v31  ;;  %v4607_v47 = vmax.f32 %v5281_v9, %v4572_v34  ;;  %v1750_v10 = vpop.f32.mrb[105].mxu1  ;;  %v1332_v31 = vpop.f32.mrb[105].mxu0  ;;  %v1952_v8 = vadd.s32 128, %v3971_v55 }
 0x1db   : > { %v2656_v24 = vmax.f32 %v2527_v57, %v2624_v11  ;;  %v2528_v63 = vmax.f32 %v2432_v32, %v4490_v51  ;;  %v2337_v57 = vmax.f32 %v2208_v46, %v2305_v3  ;;  %v2593_v11 = vld [vmem:[#allocation2 + $0x58] sm:$0xff]  ;;  %v4636_v3 = vmax.f32 %v5280_v14, %v4613_v22  ;;  %2249 = vst.msk [vmem:[#allocation2 + $0xa1] sm:$0xff] %vm2034_vm3, %v4613_v22 }
 0x1dc   : > { %v4619_v36 = vld [vmem:[#allocation2 + $0x80] sm:$0xff]  ;;  %v4621_v62 = vld [vmem:[#allocation2 + $0x90] sm:$0xff]  ;;  %vm4645_vm12 = vcmp.ne.s32.totalorder %v1982_v58, 0 }
 0x1dd   : > { %2688 = vst.msk [vmem:[%s4111_s29 + $0x50] sm:$0xff] %vm2034_vm3, %v2656_v24  ;;  %v2657_v32 = vmax.f32 %v2528_v63, %v2593_v11  ;;  %v4625_v48 = vld [vmem:[#allocation2 + $0x70] sm:$0xff]  ;;  %2469 = vst.msk [vmem:[#allocation2 + $0x80] sm:$0xff] %vm2034_vm3, %v4351_v40  ;;  %v5377_v24 = vmax.f32 %v4435_v45, 0.0  ;;  %v2433_v46 = vmax.f32 %v2337_v57, %v4445_v33  ;;  %v5378_v63 = vmax.f32 %v5345_v0, %v4343_v1  ;;  %v4651_v45 = vpop.f32.mrb[106].mxu0  ;;  %v1753_v11 = vpop.f32.mrb[106].mxu1 }
 0x1de   : > { %2563 = vst.msk [vmem:[#allocation2 + $0x69] sm:$0xff] %vm2034_vm3, %v4224_v27  ;;  %v5282_v57 = vmax.f32 %v4651_v45, 0.0  ;;  %v4658_v51 = vmax.f32 %v1753_v11, 0.0  ;;  %v1755_v1 = vpop.f32.mrb[107].mxu1  ;;  %v1337_v0 = vpop.f32.mrb[107].mxu0  ;;  %v2178_v11 = vsel %vm4645_vm12, %v4312_v60, 0.0 }
 0x1df   : > { %2375 = vst.msk [vmem:[#allocation2 + $0x90] sm:$0xff] %vm2034_vm3, %v5377_v24  ;;  %v2209_v10 = vmax.f32 %v5378_v63, %v4267_v49  ;;  %2689 = vst.msk [vmem:[%s4111_s29 + $0x58] sm:$0xff] %vm2034_vm3, %v2657_v32  ;;  %v5381_v24 = vld [vmem:[#allocation10_spill] sm:$0xff]  ;;  %v4660_v49 = vld [vmem:[#allocation2 + $0xb0] sm:$0xff]  ;;  %v2529_v58 = vmax.f32 %v2433_v46, %v4532_v13  ;;  %v1984_v1 = vand.u32 15, %v1952_v8  ;;  %v2307_v60 = vsel %vm4645_vm12, %v4459_v37, 0.0 }
 0x1e0   : > { %5382 = vst [vmem:[#allocation23_spill] sm:$0xff] %v4660_v49  ;;  %v4664_v14 = vld [vmem:[#allocation2 + $0x88] sm:$0xff]  ;;  %v4666_v9 = vld [vmem:[#allocation2 + $0x98] sm:$0xff]  ;;  %2250 = vst.msk [vmem:[#allocation2 + $0xa9] sm:$0xff] %vm2034_vm3, %v4658_v51  ;;  %v4693_v8 = vpop.f32.mrb[108].mxu0  ;;  %v1758_v46 = vpop.f32.mrb[108].mxu1 }
 0x1e1   : > { %v2338_v27 = vmax.f32 %v2209_v10, %v4406_v4  ;;  %v2594_v63 = vld [vmem:[#allocation2 + $0x60] sm:$0xff]  ;;  %v4673_v33 = vld [vmem:[#allocation2 + $0x78] sm:$0xff]  ;;  %2470 = vst.msk [vmem:[#allocation2 + $0x88] sm:$0xff] %vm2034_vm3, %v4396_v20  ;;  %v5383_v4 = vmax.f32 %v4477_v12, 0.0  ;;  %v4691_v12 = vmax.f32 %v5282_v57, %v4658_v51  ;;  %v5384_v10 = vmax.f32 %v5349_v35, %v4380_v17 }
 0x1e2   : > { %v2626_v32 = vsel %vm4557_vm11, %v2594_v63, 0.0  ;;  %2564 = vst.msk [vmem:[#allocation2 + $0x71] sm:$0xff] %vm2034_vm3, %v4265_v59  ;;  %v5283_v0 = vmax.f32 %v4693_v8, 0.0  ;;  %v4701_v37 = vld [vmem:[#allocation2 + $0xb8] sm:$0xff]  ;;  %v1342_v59 = vpop.f32.mrb[109].mxu0  ;;  %v4714_v35 = vld [vmem:[#allocation2 + $0xa0] sm:$0xff] }
 0x1e3   : > { %2376 = vst.msk [vmem:[#allocation2 + $0x98] sm:$0xff] %vm2034_vm3, %v5383_v4  ;;  %v2434_v13 = vmax.f32 %v2338_v27, %v4492_v43  ;;  %v2658_v61 = vmax.f32 %v2529_v58, %v2626_v32  ;;  %v2210_v43 = vmax.f32 %v5384_v10, %v2178_v11  ;;  %v4699_v58 = vmax.f32 %v1758_v46, 0.0  ;;  %5385 = vst [vmem:[#allocation5_spill] sm:$0xff] %v4701_v37  ;;  %v1760_v27 = vpop.f32.mrb[109].mxu1  ;;  %v5386_v32 = vld [vmem:[#allocation27_spill] sm:$0xff]  ;;  %v5392_v59 = vld [vmem:[#allocation12_spill] sm:$0xff] }
 0x1e4   : > { %v5387_v4 = vmax.f32 %v5354_v19, %v4433_v5  ;;  %v4710_v49 = vld [vmem:[#allocation2 + $0x80] sm:$0xff]  ;;  %v5389_v19 = vmax.f32 %v4522_v6, 0.0  ;;  %vm4733_vm13 = vcmp.ne.s32.totalorder %v1984_v1, 0  ;;  %v1954_v6 = vadd.s32 144, %v3971_v55 }
 0x1e5   : > { %v2530_v63 = vmax.f32 %v2434_v13, %v4577_v54  ;;  %2690 = vst.msk [vmem:[%s4111_s29 + $0x60] sm:$0xff] %vm2034_vm3, %v2658_v61  ;;  %v5388_v11 = vld [vmem:[#allocation11_spill] sm:$0xff]  ;;  %v2339_v10 = vmax.f32 %v2210_v43, %v2307_v60  ;;  %v2595_v27 = vld [vmem:[#allocation2 + $0x68] sm:$0xff]  ;;  %2565 = vst.msk [vmem:[#allocation2 + $0x79] sm:$0xff] %vm2034_vm3, %v4310_v25  ;;  %v4728_v5 = vmax.f32 %v5283_v0, %v4699_v58  ;;  %v4738_v61 = vpop.f32.mrb[110].mxu0  ;;  %v1763_v60 = vpop.f32.mrb[110].mxu1 }
 0x1e6   : > { %v2211_v57 = vmax.f32 %v5387_v4, %v5386_v32  ;;  %v4712_v17 = vld [vmem:[#allocation2 + $0x90] sm:$0xff]  ;;  %2377 = vst.msk [vmem:[#allocation2 + $0xa0] sm:$0xff] %vm2034_vm3, %v5389_v19  ;;  %2251 = vst.msk [vmem:[#allocation2 + $0xb1] sm:$0xff] %vm2034_vm3, %v4699_v58  ;;  %v5284_v4 = vmax.f32 %v4738_v61, 0.0  ;;  %v4744_v19 = vmax.f32 %v1763_v60, 0.0  ;;  %v5394_v0 = vld [vmem:[#allocation22_spill] sm:$0xff]  ;;  %v5404_v25 = vmax.f32 %v5373_v50, %v4552_v16 }
 0x1e7   : > { %2471 = vst.msk [vmem:[#allocation2 + $0x90] sm:$0xff] %vm2034_vm3, %v4439_v28  ;;  %v2659_v54 = vmax.f32 %v2530_v63, %v2595_v27  ;;  %v2435_v43 = vmax.f32 %v2339_v10, %v4544_v53  ;;  %v4746_v63 = vld [vmem:[#allocation2 + $0xc0] sm:$0xff]  ;;  %v4754_v46 = vld [vmem:[#allocation2 + $0xa8] sm:$0xff]  ;;  %v2180_v60 = vsel %vm4733_vm13, %v5394_v0, 0.0  ;;  %v1986_v0 = vand.u32 15, %v1954_v6  ;;  %v4876_v16 = vld [vmem:[#allocation2 + $0xd8] sm:$0xff] }
 0x1e8   : > { %v2340_v13 = vmax.f32 %v2211_v57, %v4507_v26  ;;  %5393 = vst [vmem:[#allocation24_spill] sm:$0xff] %v4746_v63  ;;  %v1765_v26 = vpop.f32.mrb[111].mxu1  ;;  %v1347_v57 = vpop.f32.mrb[111].mxu0  ;;  %v4750_v1 = vld [vmem:[#allocation2 + $0x88] sm:$0xff]  ;;  %2252 = vst.msk [vmem:[#allocation2 + $0xb9] sm:$0xff] %vm2034_vm3, %v4744_v19  ;;  %v5397_v63 = vld [vmem:[#allocation13_spill] sm:$0xff] }
 0x1e9   : > { %2691 = vst.msk [vmem:[%s4111_s29 + $0x68] sm:$0xff] %vm2034_vm3, %v2659_v54  ;;  %v2531_v53 = vmax.f32 %v2435_v43, %v4625_v48  ;;  %v2596_v32 = vld [vmem:[#allocation2 + $0x70] sm:$0xff]  ;;  %v2309_v26 = vsel %vm4733_vm13, %v4534_v44, 0.0  ;;  %2566 = vst.msk [vmem:[#allocation2 + $0x81] sm:$0xff] %vm2034_vm3, %v4351_v40  ;;  %v5395_v54 = vmax.f32 %v4564_v56, 0.0  ;;  %v4781_v40 = vmax.f32 %v5284_v4, %v4744_v19  ;;  %v4783_v56 = vpop.f32.mrb[112].mxu0 }
 0x1ea   : > { %v4752_v27 = vld [vmem:[#allocation2 + $0x98] sm:$0xff]  ;;  %v2436_v10 = vmax.f32 %v2340_v13, %v4592_v39  ;;  %v2628_v48 = vsel %vm4645_vm12, %v2596_v32, 0.0  ;;  %v5396_v39 = vmax.f32 %v5360_v29, %v4464_v18  ;;  %v1768_v13 = vpop.f32.mrb[112].mxu1  ;;  %v5286_v31 = vmax.f32 %v4783_v56, 0.0  ;;  %v1352_v29 = vpop.f32.mrb[113].mxu0  ;;  %5406 = vst [vmem:[#allocation6_spill] sm:$0xff] %v4876_v16 }
 0x1eb   : > { %2472 = vst.msk [vmem:[#allocation2 + $0x98] sm:$0xff] %vm2034_vm3, %v4485_v23  ;;  %2378 = vst.msk [vmem:[#allocation2 + $0xa8] sm:$0xff] %vm2034_vm3, %v5395_v54  ;;  %v2660_v57 = vmax.f32 %v2531_v53, %v2628_v48  ;;  %v4787_v32 = vmax.f32 %v1768_v13, 0.0  ;;  %v4789_v54 = vld [vmem:[#allocation2 + $0xc8] sm:$0xff]  ;;  %v1770_v18 = vpop.f32.mrb[113].mxu1  ;;  %v5398_v53 = vmax.f32 %v5366_v38, %v4520_v42  ;;  %vm4817_vm14 = vcmp.ne.s32.totalorder %v1986_v0, 0 }
 0x1ec   : > { %v2212_v44 = vmax.f32 %v5396_v39, %v2180_v60  ;;  %v2532_v43 = vmax.f32 %v2436_v10, %v4673_v33  ;;  %v2597_v60 = vld [vmem:[#allocation2 + $0x78] sm:$0xff]  ;;  %v5401_v38 = vmax.f32 %v4609_v2, 0.0  ;;  %v4825_v42 = vpop.f32.mrb[114].mxu0  ;;  %v1773_v13 = vpop.f32.mrb[114].mxu1  ;;  %v4835_v29 = vld [vmem:[#allocation2 + $0xd0] sm:$0xff] }
 0x1ed   : > { %v4793_v4 = vld [vmem:[#allocation2 + $0xa0] sm:$0xff]  ;;  %2692 = vst.msk [vmem:[%s4111_s29 + $0x70] sm:$0xff] %vm2034_vm3, %v2660_v57  ;;  %v2213_v10 = vmax.f32 %v5398_v53, %v4441_v15  ;;  %v4812_v48 = vmax.f32 %v5286_v31, %v4787_v32  ;;  %2253 = vst.msk [vmem:[#allocation2 + $0xc1] sm:$0xff] %vm2034_vm3, %v4787_v32  ;;  %v5402_v57 = vld [vmem:[#allocation14_spill] sm:$0xff]  ;;  %v5285_v0 = vmax.f32 %v4825_v42, 0.0  ;;  %v4833_v18 = vmax.f32 %v1773_v13, 0.0 }
 0x1ee   : > { %v2341_v6 = vmax.f32 %v2212_v44, %v2309_v26  ;;  %v4791_v39 = vld [vmem:[#allocation2 + $0x90] sm:$0xff]  ;;  %v2661_v33 = vmax.f32 %v2532_v43, %v2597_v60  ;;  %2473 = vst.msk [vmem:[#allocation2 + $0xa0] sm:$0xff] %vm2034_vm3, %v4526_v21  ;;  %v1357_v2 = vpop.f32.mrb[115].mxu0 }
 0x1ef   : > { %2567 = vst.msk [vmem:[#allocation2 + $0x89] sm:$0xff] %vm2034_vm3, %v4396_v20  ;;  %v4807_v26 = vld [vmem:[#allocation2 + $0xb0] sm:$0xff]  ;;  %v1956_v20 = vadd.s32 160, %v3971_v55  ;;  %v2342_v43 = vmax.f32 %v2213_v10, %v4579_v41  ;;  %v5403_v10 = vld [vmem:[#allocation3_spill] sm:$0xff]  ;;  %2254 = vst.msk [vmem:[#allocation2 + $0xc9] sm:$0xff] %vm2034_vm3, %v4833_v18 }
 0x1f0   : > { %v2437_v44 = vmax.f32 %v2341_v6, %v4619_v36  ;;  %2379 = vst.msk [vmem:[#allocation2 + $0xb0] sm:$0xff] %vm2034_vm3, %v5401_v38  ;;  %2693 = vst.msk [vmem:[%s4111_s29 + $0x78] sm:$0xff] %vm2034_vm3, %v2661_v33  ;;  %v1775_v6 = vpop.f32.mrb[115].mxu1  ;;  %v2598_v53 = vld [vmem:[#allocation2 + $0x80] sm:$0xff]  ;;  %v2182_v13 = vsel %vm4817_vm14, %v5403_v10, 0.0  ;;  %v4870_v2 = vpop.f32.mrb[116].mxu0 }
 0x1f1   : > { %v2438_v41 = vmax.f32 %v2342_v43, %v4664_v14  ;;  %v2630_v33 = vsel %vm4733_vm13, %v2598_v53, 0.0  ;;  %v2311_v6 = vsel %vm4817_vm14, %v4621_v62, 0.0  ;;  %v1988_v43 = vand.u32 15, %v1956_v20  ;;  %v1778_v53 = vpop.f32.mrb[116].mxu1  ;;  %v5407_v36 = vld [vmem:[#allocation15_spill] sm:$0xff] }
 0x1f2   : > { %v2533_v60 = vmax.f32 %v2437_v44, %v4710_v49  ;;  %v4838_v38 = vld [vmem:[#allocation2 + $0x98] sm:$0xff]  ;;  %v4840_v37 = vld [vmem:[#allocation2 + $0xa8] sm:$0xff]  ;;  %v2214_v44 = vmax.f32 %v5404_v25, %v2182_v13  ;;  %v5405_v62 = vmax.f32 %v4651_v45, 0.0  ;;  %v1780_v50 = vpop.f32.mrb[117].mxu1  ;;  %v1362_v45 = vpop.f32.mrb[117].mxu0 }
 0x1f3   : > { %2568 = vst.msk [vmem:[#allocation2 + $0x91] sm:$0xff] %vm2034_vm3, %v4439_v28  ;;  %2474 = vst.msk [vmem:[#allocation2 + $0xa8] sm:$0xff] %vm2034_vm3, %v4572_v34  ;;  %v4855_v49 = vld [vmem:[#allocation2 + $0xb8] sm:$0xff]  ;;  %v4868_v28 = vmax.f32 %v5285_v0, %v4833_v18  ;;  %v2534_v10 = vmax.f32 %v2438_v41, %v4750_v1  ;;  %v5408_v0 = vld [vmem:[#allocation4_spill] sm:$0xff]  ;;  %vm4905_vm15 = vcmp.ne.s32.totalorder %v1988_v43, 0 }
 0x1f4   : > { %v2662_v14 = vmax.f32 %v2533_v60, %v2630_v33  ;;  %2380 = vst.msk [vmem:[#allocation2 + $0xb8] sm:$0xff] %vm2034_vm3, %v5405_v62  ;;  %v5287_v60 = vmax.f32 %v4870_v2, 0.0  ;;  %v4874_v33 = vmax.f32 %v1778_v53, 0.0  ;;  %v2343_v20 = vmax.f32 %v2214_v44, %v2311_v6  ;;  %v4882_v62 = vld [vmem:[#allocation2 + $0xc0] sm:$0xff]  ;;  %v5413_v50 = vld [vmem:[#allocation16_spill] sm:$0xff] }
 0x1f5   : > { %v4880_v25 = vld [vmem:[#allocation2 + $0xa0] sm:$0xff]  ;;  %v5409_v53 = vmax.f32 %v5376_v52, %v4607_v47  ;;  %v5410_v6 = vmax.f32 %v4693_v8, 0.0  ;;  %v4912_v8 = vpop.f32.mrb[118].mxu0 }
 0x1f6   : > { %2694 = vst.msk [vmem:[%s4111_s29 + $0x80] sm:$0xff] %vm2034_vm3, %v2662_v14  ;;  %v2599_v13 = vld [vmem:[#allocation2 + $0x88] sm:$0xff]  ;;  %2569 = vst.msk [vmem:[#allocation2 + $0x99] sm:$0xff] %vm2034_vm3, %v4485_v23  ;;  %v4900_v44 = vmax.f32 %v5287_v60, %v4874_v33  ;;  %v2439_v47 = vmax.f32 %v2343_v20, %v4712_v17  ;;  %v1958_v23 = vadd.s32 176, %v3971_v55  ;;  %v5289_v17 = vmax.f32 %v4912_v8, 0.0  ;;  %v4922_v20 = vld [vmem:[#allocation2 + $0xe0] sm:$0xff] }
 0x1f7   : > { %v2663_v41 = vmax.f32 %v2534_v10, %v2599_v13  ;;  %v2215_v31 = vmax.f32 %v5409_v53, %v5408_v0  ;;  %v4892_v14 = vld [vmem:[#allocation2 + $0xb0] sm:$0xff]  ;;  %2381 = vst.msk [vmem:[#allocation2 + $0xc0] sm:$0xff] %vm2034_vm3, %v5410_v6  ;;  %2255 = vst.msk [vmem:[#allocation2 + $0xd1] sm:$0xff] %vm2034_vm3, %v4874_v33  ;;  %v1783_v0 = vpop.f32.mrb[118].mxu1  ;;  %v1367_v53 = vpop.f32.mrb[119].mxu0  ;;  %v4927_v16 = vld [vmem:[#allocation2 + $0xc8] sm:$0xff] }
 0x1f8   : > { %2475 = vst.msk [vmem:[#allocation2 + $0xb0] sm:$0xff] %vm2034_vm3, %v4613_v22  ;;  %v4920_v43 = vmax.f32 %v1783_v0, 0.0  ;;  %v1785_v13 = vpop.f32.mrb[119].mxu1  ;;  %v2535_v6 = vmax.f32 %v2439_v47, %v4791_v39  ;;  %v2313_v0 = vsel %vm4905_vm15, %v4714_v35, 0.0  ;;  %v5414_v47 = vmax.f32 %v4738_v61, 0.0  ;;  %v4957_v35 = vpop.f32.mrb[120].mxu0 }
 0x1f9   : > { %2695 = vst.msk [vmem:[%s4111_s29 + $0x88] sm:$0xff] %vm2034_vm3, %v2663_v41  ;;  %v2344_v10 = vmax.f32 %v2215_v31, %v4666_v9  ;;  %v2184_v41 = vsel %vm4905_vm15, %v4574_v30, 0.0  ;;  %v5415_v30 = vmax.f32 %v5381_v24, %v4636_v3  ;;  %v1788_v61 = vpop.f32.mrb[120].mxu1  ;;  %v5288_v13 = vmax.f32 %v4957_v35, 0.0  ;;  %v4963_v3 = vld [vmem:[#allocation2 + $0xe8] sm:$0xff] }
 0x1fa   : > { %v2600_v1 = vld [vmem:[#allocation2 + $0x90] sm:$0xff]  ;;  %v4925_v60 = vld [vmem:[#allocation2 + $0xa8] sm:$0xff]  ;;  %2382 = vst.msk [vmem:[#allocation2 + $0xc8] sm:$0xff] %vm2034_vm3, %v5414_v47  ;;  %2256 = vst.msk [vmem:[#allocation2 + $0xd9] sm:$0xff] %vm2034_vm3, %v4920_v43  ;;  %v4961_v53 = vmax.f32 %v1788_v61, 0.0  ;;  %v1790_v24 = vpop.f32.mrb[121].mxu1 }
 0x1fb   : > { %v2440_v9 = vmax.f32 %v2344_v10, %v4752_v27  ;;  %v2632_v31 = vsel %vm4817_vm14, %v2600_v1, 0.0  ;;  %2570 = vst.msk [vmem:[#allocation2 + $0xa1] sm:$0xff] %vm2034_vm3, %v4526_v21  ;;  %v4940_v39 = vld [vmem:[#allocation2 + $0xb8] sm:$0xff]  ;;  %v2216_v15 = vmax.f32 %v5415_v30, %v2184_v41  ;;  %v1990_v1 = vand.u32 15, %v1958_v23  ;;  %5416 = vst [vmem:[#allocation25_spill] sm:$0xff] %v4963_v3  ;;  %v1372_v23 = vpop.f32.mrb[121].mxu0 }
 0x1fc   : > { %v2664_v27 = vmax.f32 %v2535_v6, %v2632_v31  ;;  %2476 = vst.msk [vmem:[#allocation2 + $0xb8] sm:$0xff] %vm2034_vm3, %v4658_v51  ;;  %v4955_v21 = vmax.f32 %v5289_v17, %v4920_v43  ;;  %v5417_v30 = vld [vmem:[#allocation17_spill] sm:$0xff]  ;;  %v1960_v61 = vadd.s32 192, %v3971_v55  ;;  %2257 = vst.msk [vmem:[#allocation2 + $0xe1] sm:$0xff] %vm2034_vm3, %v4961_v53 }
 0x1fd   : > { %v2536_v10 = vmax.f32 %v2440_v9, %v4838_v38  ;;  %v2345_v6 = vmax.f32 %v2216_v15, %v2313_v0  ;;  %v2601_v31 = vld [vmem:[#allocation2 + $0x98] sm:$0xff]  ;;  %v4984_v0 = vmax.f32 %v5288_v13, %v4961_v53  ;;  %vm4993_vm0 = vcmp.ne.s32.totalorder %v1990_v1, 0 }
 0x1fe   : > { %2696 = vst.msk [vmem:[%s4111_s29 + $0x90] sm:$0xff] %vm2034_vm3, %v2664_v27  ;;  %v4967_v41 = vld [vmem:[#allocation2 + $0xc0] sm:$0xff]  ;;  %v4969_v47 = vld [vmem:[#allocation2 + $0xd0] sm:$0xff]  ;;  %v5418_v27 = vmax.f32 %v4783_v56, 0.0  ;;  %v4999_v56 = vpop.f32.mrb[122].mxu0 }
 0x1ff   : > { %v2665_v9 = vmax.f32 %v2536_v10, %v2601_v31  ;;  %v4973_v45 = vld [vmem:[#allocation2 + $0xb0] sm:$0xff]  ;;  %2477 = vst.msk [vmem:[#allocation2 + $0xc0] sm:$0xff] %vm2034_vm3, %v4699_v58  ;;  %v2441_v15 = vmax.f32 %v2345_v6, %v4793_v4  ;;  %v5419_v10 = vmax.f32 %v5388_v11, %v4691_v12  ;;  %v1793_v31 = vpop.f32.mrb[122].mxu1  ;;  %v5290_v6 = vmax.f32 %v4999_v56, 0.0  ;;  %v1377_v12 = vpop.f32.mrb[123].mxu0  ;;  %v5425_v4 = vld [vmem:[#allocation23_spill] sm:$0xff] }
 0x200   : > { %2383 = vst.msk [vmem:[#allocation2 + $0xd0] sm:$0xff] %vm2034_vm3, %v5418_v27  ;;  %2571 = vst.msk [vmem:[#allocation2 + $0xa9] sm:$0xff] %vm2034_vm3, %v4572_v34  ;;  %v5422_v27 = vld [vmem:[#allocation18_spill] sm:$0xff]  ;;  %v5006_v38 = vmax.f32 %v1793_v31, 0.0  ;;  %v5008_v11 = vld [vmem:[#allocation2 + $0xf0] sm:$0xff]  ;;  %v2186_v31 = vsel %vm4993_vm0, %v5425_v4, 0.0 }
 0x201   : > { %v2217_v24 = vmax.f32 %v5419_v10, %v4615_v7  ;;  %2697 = vst.msk [vmem:[%s4111_s29 + $0x98] sm:$0xff] %vm2034_vm3, %v2665_v9  ;;  %v1795_v7 = vpop.f32.mrb[123].mxu1  ;;  %5424 = vst [vmem:[#allocation26_spill] sm:$0xff] %v5008_v11  ;;  %v2537_v1 = vmax.f32 %v2441_v15, %v4880_v25  ;;  %v5012_v13 = vld [vmem:[#allocation2 + $0xc8] sm:$0xff]  ;;  %v5014_v17 = vld [vmem:[#allocation2 + $0xd8] sm:$0xff]  ;;  %v1992_v12 = vand.u32 15, %v1960_v61 }
 0x202   : > { %5423 = vst [vmem:[#allocation7_spill] sm:$0xff] %v5006_v38  ;;  %v2602_v10 = vld [vmem:[#allocation2 + $0xa0] sm:$0xff]  ;;  %2478 = vst.msk [vmem:[#allocation2 + $0xc8] sm:$0xff] %vm2034_vm3, %v4744_v19  ;;  %v2315_v15 = vsel %vm4993_vm0, %v4807_v26, 0.0  ;;  %v1380_v61 = vpop.f32.mrb[124].mxu0  ;;  %v5041_v4 = vld [vmem:[#allocation2 + $0xf8] sm:$0xff] }
 0x203   : > { %v2346_v34 = vmax.f32 %v2217_v24, %v4754_v46  ;;  %v2634_v9 = vsel %vm4905_vm15, %v2602_v10, 0.0  ;;  %v5021_v7 = vld [vmem:[#allocation2 + $0xb8] sm:$0xff]  ;;  %v5426_v46 = vmax.f32 %v4825_v42, 0.0  ;;  %2258 = vst.msk [vmem:[#allocation2 + $0xe9] sm:$0xff] %vm2034_vm3, %v5006_v38  ;;  %v5039_v42 = vmax.f32 %v5290_v6, %v5006_v38  ;;  %v1798_v24 = vpop.f32.mrb[124].mxu1  ;;  %5427 = vst [vmem:[#allocation8_spill] sm:$0xff] %v5041_v4 }
 0x204   : > { %v2666_v52 = vmax.f32 %v2537_v1, %v2634_v9  ;;  %2572 = vst.msk [vmem:[#allocation2 + $0xb1] sm:$0xff] %vm2034_vm3, %v4613_v22  ;;  %v1837_v10 = vmax.f32 %v1798_v24, 0.0  ;;  %v1800_v9 = vpop.f32.mrb[125].mxu1  ;;  %v1382_v26 = vpop.f32.mrb[125].mxu0  ;;  %v5429_v22 = vld [vmem:[#allocation5_spill] sm:$0xff]  ;;  %v5430_v6 = vmax.f32 %v5397_v63, %v4781_v40  ;;  %v5055_v4 = vld [vmem:[#allocation2 + $0xe0] sm:$0xff] }
 0x205   : > { %2384 = vst.msk [vmem:[#allocation2 + $0xd8] sm:$0xff] %vm2034_vm3, %v5426_v46  ;;  %v2442_v25 = vmax.f32 %v2346_v34, %v4840_v37  ;;  %v5428_v37 = vmax.f32 %v5392_v59, %v4728_v5  ;;  %v1419_v34 = vmax.f32 %v1380_v61, 0.0  ;;  %v5431_v5 = vld [vmem:[#allocation19_spill] sm:$0xff]  ;;  %vm5070_vm1 = vcmp.ne.s32.totalorder %v1992_v12, 0  ;;  %v5435_v24 = vld [vmem:[#allocation20_spill] sm:$0xff] }
 0x206   : > { %2698 = vst.msk [vmem:[%s4111_s29 + $0xa0] sm:$0xff] %vm2034_vm3, %v2666_v52  ;;  %v2219_v11 = vmax.f32 %v5430_v6, %v5429_v22  ;;  %v2509_v3 = vld [vmem:[#allocation2 + $0xc0] sm:$0xff]  ;;  %v1932_v59 = vmax.f32 %v5431_v5, %v5039_v42  ;;  %2259 = vst.msk [vmem:[#allocation2 + $0xf1] sm:$0xff] %vm2034_vm3, %v1837_v10  ;;  %v1385_v52 = vpop.f32.mrb[126].mxu0 }
 0x207   : > { %v2218_v1 = vmax.f32 %v5428_v37, %v2186_v31  ;;  %v2538_v46 = vmax.f32 %v2442_v25, %v4925_v60  ;;  %v5053_v38 = vld [vmem:[#allocation2 + $0xd0] sm:$0xff]  ;;  %v2603_v61 = vld [vmem:[#allocation2 + $0xa8] sm:$0xff]  ;;  %2573 = vst.msk [vmem:[#allocation2 + $0xb9] sm:$0xff] %vm2034_vm3, %v4658_v51  ;;  %v5432_v60 = vmax.f32 %v4870_v2, 0.0  ;;  %v5066_v63 = vmax.f32 %v1419_v34, %v1837_v10  ;;  %v1387_v10 = vpop.f32.mrb[127].mxu0 }
 0x208   : > { %2479 = vst.msk [vmem:[#allocation2 + $0xd0] sm:$0xff] %vm2034_vm3, %v4787_v32  ;;  %v2348_v6 = vmax.f32 %v2219_v11, %v4855_v49  ;;  %v1962_v51 = vadd.s32 208, %v3971_v55  ;;  %v5439_v10 = vld [vmem:[#allocation21_spill] sm:$0xff] }
 0x209   : > { %v2347_v31 = vmax.f32 %v2218_v1, %v2315_v15  ;;  %2385 = vst.msk [vmem:[#allocation2 + $0xe0] sm:$0xff] %vm2034_vm3, %v5432_v60  ;;  %v2667_v40 = vmax.f32 %v2538_v46, %v2603_v61  ;;  %v1803_v15 = vpop.f32.mrb[126].mxu1  ;;  %v1933_v37 = vmax.f32 %v5435_v24, %v5066_v63  ;;  %v1420_v1 = vmax.f32 %v1385_v52, 0.0  ;;  %v2510_v49 = vld [vmem:[#allocation2 + $0xc8] sm:$0xff] }
 0x20a   : > { %v1838_v34 = vmax.f32 %v1803_v15, 0.0  ;;  %v1805_v9 = vpop.f32.mrb[127].mxu1  ;;  %v5082_v12 = vld [vmem:[#allocation2 + $0xe8] sm:$0xff]  ;;  %v2444_v46 = vmax.f32 %v2348_v6, %v4940_v39  ;;  %v2317_v61 = vsel %vm5070_vm1, %v4882_v62, 0.0  ;;  %2574 = vst.msk [vmem:[#allocation2 + $0xc1] sm:$0xff] %vm2034_vm3, %v4699_v58  ;;  %v5438_v60 = vmax.f32 %v5402_v57, %v4812_v48 }
 0x20b   : > { %v2443_v2 = vmax.f32 %v2347_v31, %v4892_v14  ;;  %2699 = vst.msk [vmem:[%s4111_s29 + $0xa8] sm:$0xff] %vm2034_vm3, %v2667_v40  ;;  %v2604_v22 = vld [vmem:[#allocation2 + $0xb0] sm:$0xff]  ;;  %v5436_v14 = vld [vmem:[#allocation24_spill] sm:$0xff]  ;;  %v1994_v40 = vand.u32 15, %v1962_v51  ;;  %v5440_v48 = vmax.f32 %v5407_v36, %v4868_v28 }
 0x20c   : > { %v5080_v11 = vld [vmem:[#allocation2 + $0xd8] sm:$0xff]  ;;  %v2188_v31 = vsel %vm5070_vm1, %v5436_v14, 0.0  ;;  %2260 = vst.msk [vmem:[#allocation2 + $0xf9] sm:$0x7f] %vm2066_vm4, %v1838_v34  ;;  %v2636_v39 = vsel %vm4993_vm0, %v2604_v22, 0.0  ;;  %v5105_v6 = vmax.f32 %v1420_v1, %v1838_v34  ;;  %v2540_v58 = vmax.f32 %v2444_v46, %v5021_v7 }
 0x20d   : > { %v2539_v26 = vmax.f32 %v2443_v2, %v4973_v45  ;;  %2480 = vst.msk [vmem:[#allocation2 + $0xd8] sm:$0xff] %vm2034_vm3, %v4833_v18  ;;  %v5437_v45 = vmax.f32 %v4912_v8, 0.0  ;;  %v2220_v62 = vmax.f32 %v5438_v60, %v2188_v31  ;;  %v2221_v57 = vmax.f32 %v5440_v48, %v4789_v54  ;;  %v5122_v7 = vld [vmem:[#allocation2 + $0xf0] sm:$0xff] }
 0x20e   : > { %v2605_v8 = vld [vmem:[#allocation2 + $0xb8] sm:$0xff]  ;;  %v1934_v23 = vmax.f32 %v5439_v10, %v5105_v6  ;;  %vm5125_vm2 = vcmp.ne.s32.totalorder %v1994_v40, 0  ;;  %v1964_v34 = vadd.s32 224, %v3971_v55  ;;  %v5447_v40 = vmax.f32 %v5417_v30, %v4955_v21 }
 0x20f   : > { %2386 = vst.msk [vmem:[#allocation2 + $0xe8] sm:$0xff] %vm2034_vm3, %v5437_v45  ;;  %v2668_v52 = vmax.f32 %v2539_v26, %v2636_v39  ;;  %v2349_v15 = vmax.f32 %v2220_v62, %v2317_v61  ;;  %v2511_v2 = vld [vmem:[#allocation2 + $0xd0] sm:$0xff]  ;;  %v2669_v22 = vmax.f32 %v2540_v58, %v2605_v8  ;;  %v5443_v26 = vmax.f32 %v4957_v35, 0.0  ;;  %v5446_v62 = vld [vmem:[#allocation6_spill] sm:$0xff] }
 0x210   : > { %v5108_v9 = vld [vmem:[#allocation2 + $0xe0] sm:$0xff]  ;;  %2575 = vst.msk [vmem:[#allocation2 + $0xc9] sm:$0xff] %vm2034_vm3, %v4744_v19  ;;  %v2350_v19 = vmax.f32 %v2221_v57, %v4927_v16  ;;  %v2190_v35 = vsel %vm5125_vm2, %v4835_v29, 0.0  ;;  %v2319_v31 = vsel %vm5125_vm2, %v4969_v47, 0.0  ;;  %v1996_v61 = vand.u32 15, %v1964_v34 }
 0x211   : > { %2700 = vst.msk [vmem:[%s4111_s29 + $0xb0] sm:$0xff] %vm2034_vm3, %v2668_v52  ;;  %2481 = vst.msk [vmem:[#allocation2 + $0xe0] sm:$0xff] %vm2034_vm3, %v4874_v33  ;;  %v2445_v51 = vmax.f32 %v2349_v15, %v4967_v41  ;;  %v2606_v36 = vld [vmem:[#allocation2 + $0xc0] sm:$0xff]  ;;  %v5445_v29 = vmax.f32 %v4999_v56, 0.0  ;;  %v2223_v58 = vmax.f32 %v5447_v40, %v5446_v62 }
 0x212   : > { %2387 = vst.msk [vmem:[#allocation2 + $0xf0] sm:$0xff] %vm2034_vm3, %v5443_v26  ;;  %2701 = vst.msk [vmem:[%s4111_s29 + $0xb8] sm:$0xff] %vm2034_vm3, %v2669_v22  ;;  %v2446_v41 = vmax.f32 %v2350_v19, %v5012_v13  ;;  %v2638_v14 = vsel %vm5070_vm1, %v2606_v36, 0.0  ;;  %vm5166_vm5 = vcmp.ne.s32.totalorder %v1996_v61, 0  ;;  %v5451_v57 = vld [vmem:[#allocation7_spill] sm:$0xff]  ;;  %v5452_v26 = vld [vmem:[#allocation25_spill] sm:$0xff] }
 0x213   : > { %v2541_v54 = vmax.f32 %v2445_v51, %v2509_v3  ;;  %v5149_v16 = vld [vmem:[#allocation2 + $0xf8] sm:$0xff]  ;;  %v5444_v3 = vmax.f32 %v5413_v50, %v4900_v44  ;;  %v2352_v21 = vmax.f32 %v2223_v58, %v5014_v17  ;;  %v2321_v8 = vsel %vm5166_vm5, %v5055_v4, 0.0 }
 0x214   : > { %v2512_v28 = vld [vmem:[#allocation2 + $0xd8] sm:$0xff]  ;;  %2388 = vst.msk [vmem:[#allocation2 + $0xf8] sm:$0xff] %vm2034_vm3, %v5445_v29  ;;  %v2542_v47 = vmax.f32 %v2446_v41, %v2510_v49  ;;  %v1966_v49 = vadd.s32 240, %v3971_v55  ;;  %v2192_v55 = vsel %vm5166_vm5, %v4922_v20, 0.0  ;;  %v2225_v19 = vmax.f32 %v1932_v59, %v5452_v26 }
 0x215   : > { %2576 = vst.msk [vmem:[#allocation2 + $0xd1] sm:$0xff] %vm2034_vm3, %v4787_v32  ;;  %v2670_v13 = vmax.f32 %v2541_v54, %v2638_v14  ;;  %v2222_v25 = vmax.f32 %v5444_v3, %v2190_v35  ;;  %v2448_v15 = vmax.f32 %v2352_v21, %v5080_v11  ;;  %v5450_v11 = vmax.f32 %v5422_v27, %v4984_v0  ;;  %v5456_v14 = vld [vmem:[#allocation8_spill] sm:$0xff] }
 0x216   : > { %v2418_v46 = vld [vmem:[#allocation2 + $0xe8] sm:$0xff]  ;;  %v1998_v48 = vand.u32 15, %v1966_v49  ;;  %v2354_v54 = vmax.f32 %v2225_v19, %v5082_v12  ;;  %v2227_v12 = vmax.f32 %v1934_v23, %v5456_v14 }
 0x217   : > { %2482 = vst.msk [vmem:[#allocation2 + $0xe8] sm:$0xff] %vm2034_vm3, %v4920_v43  ;;  %2702 = vst.msk [vmem:[%s4111_s29 + $0xc0] sm:$0xff] %vm2034_vm3, %v2670_v13  ;;  %v2351_v32 = vmax.f32 %v2222_v25, %v2319_v31  ;;  %v2607_v45 = vld [vmem:[#allocation2 + $0xc8] sm:$0xff]  ;;  %v2224_v22 = vmax.f32 %v5450_v11, %v2192_v55  ;;  %v2544_v51 = vmax.f32 %v2448_v15, %v2512_v28 }
 0x218   : > { %v2513_v39 = vld [vmem:[#allocation2 + $0xe0] sm:$0xff]  ;;  %v2671_v60 = vmax.f32 %v2542_v47, %v2607_v45  ;;  %vm5199_vm6 = vcmp.ne.s32.totalorder %v1998_v48, 0  ;;  %v2450_v59 = vmax.f32 %v2354_v54, %v2418_v46 }
 0x219   : > { %2577 = vst.msk [vmem:[#allocation2 + $0xd9] sm:$0xff] %vm2034_vm3, %v4833_v18  ;;  %v2419_v44 = vld [vmem:[#allocation2 + $0xf0] sm:$0xff]  ;;  %v2447_v50 = vmax.f32 %v2351_v32, %v5053_v38  ;;  %v2353_v20 = vmax.f32 %v2224_v22, %v2321_v8 }
 0x21a   : > { %2483 = vst.msk [vmem:[#allocation2 + $0xf0] sm:$0xff] %vm2034_vm3, %v4961_v53  ;;  %2703 = vst.msk [vmem:[%s4111_s29 + $0xc8] sm:$0xff] %vm2034_vm3, %v2671_v60 }
 0x21b   : > { %v2543_v30 = vmax.f32 %v2447_v50, %v2511_v2  ;;  %v2420_v17 = vld [vmem:[#allocation2 + $0xf8] sm:$0xff] }
 0x21c   : > { %v2608_v52 = vld [vmem:[#allocation2 + $0xd0] sm:$0xff]  ;;  %2484 = vst.msk [vmem:[#allocation2 + $0xf8] sm:$0xff] %vm2034_vm3, %v5451_v57 }
 0x21d   : > { %v2640_v38 = vsel %vm5125_vm2, %v2608_v52, 0.0 }
 0x21e   : > { %v2514_v18 = vld [vmem:[#allocation2 + $0xe8] sm:$0xff]  ;;  %v2672_v2 = vmax.f32 %v2543_v30, %v2640_v38 }
 0x21f   : > { %2578 = vst.msk [vmem:[#allocation2 + $0xe1] sm:$0xff] %vm2034_vm3, %v4874_v33  ;;  %v2449_v33 = vmax.f32 %v2353_v20, %v5108_v9  ;;  %v5455_v9 = vld [vmem:[#allocation26_spill] sm:$0xff]  ;;  %v2546_v31 = vmax.f32 %v2450_v59, %v2514_v18 }
 0x220   : > { %2704 = vst.msk [vmem:[%s4111_s29 + $0xd0] sm:$0xff] %vm2034_vm3, %v2672_v2  ;;  %v2609_v1 = vld [vmem:[#allocation2 + $0xd8] sm:$0xff]  ;;  %v2194_v28 = vsel %vm5199_vm6, %v5455_v9, 0.0 }
 0x221   : > { %v2673_v4 = vmax.f32 %v2544_v51, %v2609_v1  ;;  %v2515_v34 = vld [vmem:[#allocation2 + $0xf0] sm:$0xff]  ;;  %v2545_v27 = vmax.f32 %v2449_v33, %v2513_v39  ;;  %v2226_v35 = vmax.f32 %v1933_v37, %v2194_v28 }
 0x222   : > { %2579 = vst.msk [vmem:[#allocation2 + $0xe9] sm:$0xff] %vm2034_vm3, %v4920_v43  ;;  %v2323_v43 = vsel %vm5199_vm6, %v5122_v7, 0.0  ;;  %v2356_v7 = vmax.f32 %v2227_v12, %v5149_v16 }
 0x223   : > { %2705 = vst.msk [vmem:[%s4111_s29 + $0xd8] sm:$0xff] %vm2034_vm3, %v2673_v4  ;;  %v2516_v5 = vld [vmem:[#allocation2 + $0xf8] sm:$0xff]  ;;  %v2355_v46 = vmax.f32 %v2226_v35, %v2323_v43 }
 0x224   : > { %2580 = vst.msk [vmem:[#allocation2 + $0xf1] sm:$0xff] %vm2034_vm3, %v4961_v53  ;;  %v2452_v23 = vmax.f32 %v2356_v7, %v2420_v17 }
 0x225   : > { %2581 = vst.msk [vmem:[#allocation2 + $0xf9] sm:$0x7f] %vm2066_vm4, %v5451_v57  ;;  %v2451_v13 = vmax.f32 %v2355_v46, %v2419_v44 }
 0x226   : > { %v2610_v36 = vld [vmem:[#allocation2 + $0xe0] sm:$0xff]  ;;  %v2548_v53 = vmax.f32 %v2452_v23, %v2516_v5 }
 0x227   : > { %v2642_v42 = vsel %vm5166_vm5, %v2610_v36, 0.0  ;;  %v2547_v3 = vmax.f32 %v2451_v13, %v2515_v34 }
 0x228   : > { %v2674_v41 = vmax.f32 %v2545_v27, %v2642_v42 }
 0x229   : > { %v2611_v6 = vld [vmem:[#allocation2 + $0xe8] sm:$0xff] }
 0x22a   : > { %2706 = vst.msk [vmem:[%s4111_s29 + $0xe0] sm:$0xff] %vm2034_vm3, %v2674_v41  ;;  %v2675_v10 = vmax.f32 %v2546_v31, %v2611_v6 }
 0x22b   : > { %v2612_v25 = vld [vmem:[#allocation2 + $0xf0] sm:$0xff] }
 0x22c   : > { %2707 = vst.msk [vmem:[%s4111_s29 + $0xe8] sm:$0xff] %vm2034_vm3, %v2675_v10  ;;  %v2613_v61 = vld [vmem:[#allocation2 + $0xf8] sm:$0xff]  ;;  %v2644_v63 = vsel %vm5199_vm6, %v2612_v25, 0.0 }
 0x22d   : > { %v2677_v24 = vmax.f32 %v2548_v53, %v2613_v61  ;;  %v2676_v37 = vmax.f32 %v2547_v3, %v2644_v63 }
 0x22f   : > { %2709 = vst.msk [vmem:[%s4111_s29 + $0xf8] sm:$0xff] %vm2034_vm3, %v2677_v24  ;;  %2708 = vst.msk [vmem:[%s4111_s29 + $0xf0] sm:$0xff] %vm2034_vm3, %v2676_v37 }
 0x230 PF: > { %s12_s9 = sadd.s32 1, %s3226_s9  }
 0x231   : > { %p9_p4 = scmp.ge.s32.totalorder %s12_s9, 4  }
 0x233   :  { %11 = sbr.rel (!%p9_p4) target bundleno = 1 (0x1), region = 61 }

// kernel: cct_forward.6
= control target key start
LH: loop header
LB: loop body
LE: loop exit
PB: predicated region body
PF: predicated region fallthrough
CT: control target
= control target key end

     0   :  { %s2686_s12 = smov 0   ;;  %s3426_s0 = inlined_call_operand.vmem [shape: f32[2,4,16,784], index: 0, kind: input, shape index: {}]   ;;  %s3427_s1 = inlined_call_operand.vmem [shape: f32[784,64], index: 1, kind: input, shape index: {}]   ;;  %s3428_s2 = inlined_call_operand.vmem [shape: f32[16,64], index: 2, kind: input, shape index: {}]   ;;  %s3429_s3 = inlined_call_operand.vmem [shape: f32[2,16,64], index: 3, kind: output, shape index: {}]  }
   0x1 LB: > { %s1686_s13 = sadd.s32 4294967295, %s2663_s12   ;;  %p1690_p0 = scmp.ge.s32.totalorder %s2663_s12, 1  ;;  %s2663_s12 = sphi %s2686_s12, %s13_s12  }
   0x2   : > { %p137_p1 = scmp.lt.s32.totalorder %s2663_s12, 3 }
   0x4   : > { %p138_p2 = pnand %p1690_p0, %p137_p1 }
   0x5   : > { %v187_v0 = vld [vmem:[%s3427_s1 + $0x80] sm:$0xff] (!%p138_p2)  ;;  %v188_v1 = vld [vmem:[%s3427_s1 + $0x88] sm:$0xff] (!%p138_p2)  ;;  %v189_v11 = vld [vmem:[%s3427_s1 + $0x90] sm:$0xff] (!%p138_p2)  ;;  %p2783_p3 = scmp.lt.s32.totalorder (!%p138_p2), %s1686_s13, 1  ;;  %vm283_vm0 = vcmask (!%p138_p2), 130048   ;;  %vm1574_vm1 = vcmask (!%p138_p2), 516096  }
   0x6   : > { %141 = sbr.rel (%p138_p2) target bundleno = 484 (0x1e4), region = 32  ;;  %v219_v2 = vld [vmem:[%s3427_s1 + $0x180] sm:$0xff] (!%p138_p2)  ;;  %v2703_v3 = vpack.c.bf16 (!%p138_p2), %v188_v1, %v187_v0  ;;  %v220_v4 = vld [vmem:[%s3427_s1 + $0x188] sm:$0xff] (!%p138_p2)  ;;  %v190_v13 = vld [vmem:[%s3427_s1 + $0x98] sm:$0xff] (!%p138_p2)  ;;  %vm1576_vm2 = vcmask (!%p138_p2), 523264   ;;  %vm1578_vm3 = vcmask (!%p138_p2), 522240  }
   0x7   : > { %v171_v5 = vld [vmem:[%s3427_s1] sm:$0xff] (!%p138_p2)  ;;  %v172_v6 = vld [vmem:[%s3427_s1 + $0x8] sm:$0xff] (!%p138_p2)  ;;  %v2714_v7 = vpack.c.bf16 (!%p138_p2), %v220_v4, %v219_v2  ;;  %v221_v14 = vld [vmem:[%s3427_s1 + $0x190] sm:$0xff] (!%p138_p2)  ;;  %v2741_v16 = vpack.c.bf16 (!%p138_p2), %v190_v13, %v189_v11  ;;  %vm1599_vm4 = vcmask (!%p138_p2), 519168   ;;  %vm1614_vm7 = vcmask (!%p138_p2), 520192  }
   0x8   : > { %v2716_v8 = vpack.c.bf16 (!%p138_p2), %v172_v6, %v171_v5  ;;  %v203_v9 = vld [vmem:[%s3427_s1 + $0x100] sm:$0xff] (!%p138_p2)  ;;  %v204_v10 = vld [vmem:[%s3427_s1 + $0x108] sm:$0xff] (!%p138_p2)  ;;  %2248 = vmatprep.subr.bf16.mxu0 (!%p138_p2), %v2703_v3  ;;  %v222_v15 = vld [vmem:[%s3427_s1 + $0x198] sm:$0xff] (!%p138_p2)  ;;  %vm1617_vm8 = vcmask (!%p138_p2), 518144  }
   0x9   : > { %v2728_v12 = vpack.c.bf16 (!%p138_p2), %v204_v10, %v203_v9  ;;  %2280 = vmatprep.subr.bf16.mxu1 (!%p138_p2), %v2714_v7  ;;  %v2743_v17 = vpack.c.bf16 (!%p138_p2), %v222_v15, %v221_v14  ;;  %v173_v18 = vld [vmem:[%s3427_s1 + $0x10] sm:$0xff] (!%p138_p2)  ;;  %v174_v19 = vld [vmem:[%s3427_s1 + $0x18] sm:$0xff] (!%p138_p2)  ;;  %v191_v23 = vld [vmem:[%s3427_s1 + $0xa0] sm:$0xff] (!%p138_p2) }
   0xa   : > { %2250 = vmatpush3.bf16.msra.mxu0 (!%p138_p2), %v2716_v8  ;;  %v205_v20 = vld [vmem:[%s3427_s1 + $0x110] sm:$0xff] (!%p138_p2)  ;;  %v2755_v21 = vpack.c.bf16 (!%p138_p2), %v174_v19, %v173_v18  ;;  %v206_v22 = vld [vmem:[%s3427_s1 + $0x118] sm:$0xff] (!%p138_p2)  ;;  %v192_v24 = vld [vmem:[%s3427_s1 + $0xa8] sm:$0xff] (!%p138_p2) }
   0xb   : > { %2282 = vmatpush3.bf16.msra.mxu1 (!%p138_p2), %v2728_v12  ;;  %2252 = vmatprep.subr.bf16.mxu0 (!%p138_p2), %v2741_v16  ;;  %v2768_v25 = vpack.c.bf16 (!%p138_p2), %v206_v22, %v205_v20  ;;  %v2770_v26 = vpack.c.bf16 (!%p138_p2), %v192_v24, %v191_v23  ;;  %v223_v27 = vld [vmem:[%s3427_s1 + $0x1a0] sm:$0xff] (!%p138_p2)  ;;  %v224_v28 = vld [vmem:[%s3427_s1 + $0x1a8] sm:$0xff] (!%p138_p2)  ;;  %v193_v35 = vld [vmem:[%s3427_s1 + $0xb0] sm:$0xff] (!%p138_p2) }
   0xc   : > { %2284 = vmatprep.subr.bf16.mxu1 (!%p138_p2), %v2743_v17  ;;  %v175_v29 = vld [vmem:[%s3427_s1 + $0x20] sm:$0xff] (!%p138_p2)  ;;  %v2787_v30 = vpack.c.bf16 (!%p138_p2), %v224_v28, %v223_v27  ;;  %v176_v31 = vld [vmem:[%s3427_s1 + $0x28] sm:$0xff] (!%p138_p2)  ;;  %v194_v36 = vld [vmem:[%s3427_s1 + $0xb8] sm:$0xff] (!%p138_p2) }
   0xd   : > { %v207_v32 = vld [vmem:[%s3427_s1 + $0x120] sm:$0xff]  ;;  %v208_v33 = vld [vmem:[%s3427_s1 + $0x128] sm:$0xff]  ;;  %v2799_v34 = vpack.c.bf16 %v176_v31, %v175_v29  ;;  %v225_v37 = vld [vmem:[%s3427_s1 + $0x1b0] sm:$0xff]  ;;  %v2814_v39 = vpack.c.bf16 %v194_v36, %v193_v35  ;;  %s3436_s13 = smov (!%p2783_p3, %s1686_s13), 1 }
   0xe   : > { %2254 = vmatpush3.bf16.msra.mxu0 %v2755_v21  ;;  %v2812_v38 = vpack.c.bf16 %v208_v33, %v207_v32  ;;  %v226_v40 = vld [vmem:[%s3427_s1 + $0x1b8] sm:$0xff]  ;;  %v177_v41 = vld [vmem:[%s3427_s1 + $0x30] sm:$0xff]  ;;  %v195_v46 = vld [vmem:[%s3427_s1 + $0xc0] sm:$0xff]  ;;  %s2647_s24 = smul.u32 448, %s3436_s13 }
   0xf   : > { %2286 = vmatpush3.bf16.msra.mxu1 %v2768_v25  ;;  %2256 = vmatprep.subr.bf16.mxu0 %v2770_v26  ;;  %v178_v42 = vld [vmem:[%s3427_s1 + $0x38] sm:$0xff]  ;;  %v2826_v43 = vpack.c.bf16 %v226_v40, %v225_v37  ;;  %v209_v44 = vld [vmem:[%s3427_s1 + $0x130] sm:$0xff]  ;;  %v196_v47 = vld [vmem:[%s3427_s1 + $0xc8] sm:$0xff] }
  0x10   : > { %2288 = vmatprep.subr.bf16.mxu1 %v2787_v30  ;;  %v210_v45 = vld [vmem:[%s3427_s1 + $0x138] sm:$0xff]  ;;  %v227_v48 = vld [vmem:[%s3427_s1 + $0x1c0] sm:$0xff]  ;;  %v228_v49 = vld [vmem:[%s3427_s1 + $0x1c8] sm:$0xff]  ;;  %v2853_v50 = vpack.c.bf16 %v178_v42, %v177_v41  ;;  %v2859_v52 = vpack.c.bf16 %v196_v47, %v195_v46  ;;  %s2922_s18 = scalar_lea.vmem %s3426_s0, %s2647_s24 }
  0x11   : > { %v2857_v51 = vpack.c.bf16 %v210_v45, %v209_v44  ;;  %v179_v53 = vld [vmem:[%s3427_s1 + $0x40] sm:$0xff]  ;;  %v180_v54 = vld [vmem:[%s3427_s1 + $0x48] sm:$0xff]  ;;  %v2871_v56 = vpack.c.bf16 %v228_v49, %v227_v48  ;;  %v197_v58 = vld [vmem:[%s3427_s1 + $0xd0] sm:$0xff] }
  0x12   : > { %2258 = vmatpush3.bf16.msra.mxu0 %v2799_v34  ;;  %v211_v55 = vld [vmem:[%s3427_s1 + $0x140] sm:$0xff]  ;;  %v212_v57 = vld [vmem:[%s3427_s1 + $0x148] sm:$0xff]  ;;  %v198_v59 = vld [vmem:[%s3427_s1 + $0xd8] sm:$0xff]  ;;  %v2890_v62 = vpack.c.bf16 %v180_v54, %v179_v53 }
  0x13   : > { %2290 = vmatpush3.bf16.msra.mxu1 %v2812_v38  ;;  %2260 = vmatprep.subr.bf16.mxu0 %v2814_v39  ;;  %v229_v60 = vld [vmem:[%s3427_s1 + $0x1d0] sm:$0xff]  ;;  %v230_v61 = vld [vmem:[%s3427_s1 + $0x1d8] sm:$0xff]  ;;  %v2894_v63 = vpack.c.bf16 %v212_v57, %v211_v55  ;;  %v2896_v0 = vpack.c.bf16 %v198_v59, %v197_v58  ;;  %v199_v9 = vld [vmem:[%s3427_s1 + $0xe0] sm:$0xff] }
  0x14   : > { %2292 = vmatprep.subr.bf16.mxu1 %v2826_v43  ;;  %v181_v1 = vld [vmem:[%s3427_s1 + $0x50] sm:$0xff]  ;;  %v182_v2 = vld [vmem:[%s3427_s1 + $0x58] sm:$0xff]  ;;  %v2908_v5 = vpack.c.bf16 %v230_v61, %v229_v60  ;;  %v200_v10 = vld [vmem:[%s3427_s1 + $0xe8] sm:$0xff] }
  0x15   : > { %v213_v4 = vld [vmem:[%s3427_s1 + $0x150] sm:$0xff]  ;;  %v214_v6 = vld [vmem:[%s3427_s1 + $0x158] sm:$0xff]  ;;  %v231_v11 = vld [vmem:[%s3427_s1 + $0x1e0] sm:$0xff]  ;;  %v2931_v14 = vpack.c.bf16 %v182_v2, %v181_v1  ;;  %v2943_v20 = vpack.c.bf16 %v200_v10, %v199_v9 }
  0x16   : > { %2262 = vmatpush3.bf16.msra.mxu0 %v2853_v50  ;;  %v232_v13 = vld [vmem:[%s3427_s1 + $0x1e8] sm:$0xff]  ;;  %v183_v15 = vld [vmem:[%s3427_s1 + $0x60] sm:$0xff]  ;;  %v2941_v19 = vpack.c.bf16 %v214_v6, %v213_v4  ;;  %v272_v24 = vld [vmem:[%s2922_s18 + $0x18] sm:$0xff] }
  0x17   : > { %2294 = vmatpush3.bf16.msra.mxu1 %v2857_v51  ;;  %2264 = vmatprep.subr.bf16.mxu0 %v2859_v52  ;;  %v184_v18 = vld [vmem:[%s3427_s1 + $0x68] sm:$0xff]  ;;  %v215_v22 = vld [vmem:[%s3427_s1 + $0x160] sm:$0xff]  ;;  %v2951_v27 = vpack.c.bf16 %v232_v13, %v231_v11  ;;  %v201_v29 = vld [vmem:[%s3427_s1 + $0xf0] sm:$0xff] }
  0x18   : > { %2296 = vmatprep.subr.bf16.mxu1 %v2871_v56  ;;  %v270_v23 = vld [vmem:[%s2922_s18 + $0x8] sm:$0xff]  ;;  %v202_v31 = vld [vmem:[%s3427_s1 + $0xf8] sm:$0xff]  ;;  %v233_v32 = vld [vmem:[%s3427_s1 + $0x1f0] sm:$0xff]  ;;  %429 = vmatprep.mubr.f32.mxu1 %v272_v24  ;;  %v2969_v35 = vpack.c.bf16 %v184_v18, %v183_v15 }
  0x19   : > { %v216_v28 = vld [vmem:[%s3427_s1 + $0x168] sm:$0xff]  ;;  %354 = vmatprep.mubr.f32.mxu0 %v270_v23  ;;  %v234_v33 = vld [vmem:[%s3427_s1 + $0x1f8] sm:$0xff]  ;;  %v2975_v37 = vpack.c.bf16 %v202_v31, %v201_v29  ;;  %v185_v40 = vld [vmem:[%s3427_s1 + $0x70] sm:$0xff] }
  0x1a   : > { %2266 = vmatpush3.bf16.msra.mxu0 %v2890_v62  ;;  %v2973_v36 = vpack.c.bf16 %v216_v28, %v215_v22  ;;  %v186_v41 = vld [vmem:[%s3427_s1 + $0x78] sm:$0xff]  ;;  %v217_v42 = vld [vmem:[%s3427_s1 + $0x170] sm:$0xff]  ;;  %v2987_v44 = vpack.c.bf16 %v234_v33, %v233_v32  ;;  %v251_v46 = vld [vmem:[%s3427_s1 + $0x280] sm:$0xff] }
  0x1b   : > { %2298 = vmatpush3.bf16.msra.mxu1 %v2894_v63  ;;  %2268 = vmatprep.subr.bf16.mxu0 %v2896_v0  ;;  %v218_v45 = vld [vmem:[%s3427_s1 + $0x178] sm:$0xff]  ;;  %v252_v47 = vld [vmem:[%s3427_s1 + $0x288] sm:$0xff]  ;;  %v267_v48 = vld [vmem:[%s3427_s1 + $0x300] sm:$0xff]  ;;  %v3005_v53 = vpack.c.bf16 %v186_v41, %v185_v40 }
  0x1c   : > { %2300 = vmatprep.subr.bf16.mxu1 %v2908_v5  ;;  %v268_v49 = vld [vmem:[%s3427_s1 + $0x308] sm:$0xff]  ;;  %v3009_v54 = vpack.c.bf16 %v218_v45, %v217_v42  ;;  %v3011_v55 = vpack.c.bf16 %v252_v47, %v251_v46  ;;  %v235_v57 = vld [vmem:[%s3427_s1 + $0x200] sm:$0xff]  ;;  %v253_v60 = vld [vmem:[%s3427_s1 + $0x290] sm:$0xff] }
  0x1d   : > { %v236_v58 = vld [vmem:[%s3427_s1 + $0x208] sm:$0xff]  ;;  %v3020_v59 = vpack.c.bf16 %v268_v49, %v267_v48  ;;  %v254_v61 = vld [vmem:[%s3427_s1 + $0x298] sm:$0xff]  ;;  %v269_v1 = vld [vmem:[%s2922_s18] sm:$0xff] }
  0x1e   : > { %2270 = vmatpush3.bf16.msra.mxu0 %v2931_v14  ;;  %v3030_v2 = vpack.c.bf16 %v236_v58, %v235_v57  ;;  %v271_v4 = vld [vmem:[%s2922_s18 + $0x10] sm:$0xff]  ;;  %v238_v9 = vld [vmem:[%s3427_s1 + $0x218] sm:$0xff]  ;;  %v277_v10 = vld [vmem:[%s2922_s18 + $0x40] sm:$0xff]  ;;  %v3043_v11 = vpack.c.bf16 %v254_v61, %v253_v60 }
  0x1f   : > { %2302 = vmatpush3.bf16.msra.mxu1 %v2941_v19  ;;  %2272 = vmatprep.subr.bf16.mxu0 %v2943_v20  ;;  %v237_v6 = vld [vmem:[%s3427_s1 + $0x210] sm:$0xff]  ;;  %v255_v13 = vld [vmem:[%s3427_s1 + $0x2a0] sm:$0xff]  ;;  %v256_v15 = vld [vmem:[%s3427_s1 + $0x2a8] sm:$0xff] }
  0x20   : > { %2304 = vmatprep.subr.bf16.mxu1 %v2951_v27  ;;  %v279_v18 = vld [vmem:[%s2922_s18 + $0x50] sm:$0xff]  ;;  %v276_v22 = vld [vmem:[%s2922_s18 + $0x38] sm:$0xff]  ;;  %v3054_v23 = vpack.c.bf16 %v238_v9, %v237_v6  ;;  %v278_v24 = vld [vmem:[%s2922_s18 + $0x48] sm:$0xff]  ;;  %v3058_v28 = vpack.c.bf16 %v256_v15, %v255_v13 }
  0x21   : > { %v239_v29 = vld [vmem:[%s3427_s1 + $0x220] sm:$0xff]  ;;  %v240_v31 = vld [vmem:[%s3427_s1 + $0x228] sm:$0xff]  ;;  %v275_v32 = vld [vmem:[%s2922_s18 + $0x30] sm:$0xff] }
  0x22   : > { %2274 = vmatpush3.bf16.msra.mxu0 %v2969_v35  ;;  %v257_v33 = vld [vmem:[%s3427_s1 + $0x2b0] sm:$0xff]  ;;  %v258_v40 = vld [vmem:[%s3427_s1 + $0x2b8] sm:$0xff]  ;;  %v274_v41 = vld [vmem:[%s2922_s18 + $0x28] sm:$0xff]  ;;  %v3077_v42 = vpack.c.bf16 %v240_v31, %v239_v29 }
  0x23   : > { %2306 = vmatpush3.bf16.msra.mxu1 %v2973_v36  ;;  %2276 = vmatprep.subr.bf16.mxu0 %v2975_v37  ;;  %v282_v45 = vld [vmem:[%s2922_s18 + $0x68] sm:$0xff]  ;;  %v3082_v46 = vpack.c.bf16 %v258_v40, %v257_v33  ;;  %v241_v47 = vld [vmem:[%s3427_s1 + $0x230] sm:$0xff]  ;;  %v242_v48 = vld [vmem:[%s3427_s1 + $0x238] sm:$0xff] }
  0x24   : > { %2308 = vmatprep.subr.bf16.mxu1 %v2987_v44  ;;  %v259_v49 = vld [vmem:[%s3427_s1 + $0x2c0] sm:$0xff]  ;;  %v260_v57 = vld [vmem:[%s3427_s1 + $0x2c8] sm:$0xff]  ;;  %v1697_v58 = vld [vmem:[%s2922_s18 + $0x78] sm:$0xff]  ;;  %v3099_v60 = vpack.c.bf16 %v242_v48, %v241_v47 }
  0x25   : > { %v3103_v61 = vpack.c.bf16 %v260_v57, %v259_v49  ;;  %v261_v6 = vld [vmem:[%s3427_s1 + $0x2d0] sm:$0xff]  ;;  %v262_v9 = vld [vmem:[%s3427_s1 + $0x2d8] sm:$0xff]  ;;  %v248_v33 = vld [vmem:[%s3427_s1 + $0x268] sm:$0xff] }
  0x26   : > { %2278 = vmatpush3.bf16.msra.mxu0 %v3005_v53  ;;  %v3123_v13 = vpack.c.bf16 %v262_v9, %v261_v6  ;;  %v245_v15 = vld [vmem:[%s3427_s1 + $0x250] sm:$0xff]  ;;  %v250_v49 = vld [vmem:[%s3427_s1 + $0x278] sm:$0xff]  ;;  %v1699_v6 = vld [vmem:[%s2922_s18 + $0x88] sm:$0xff] }
  0x27   : > { %2310 = vmatpush3.bf16.msra.mxu1 %v3009_v54  ;;  %2312 = vmatprep.subr.bf16.mxu0 %v3011_v55  ;;  %v265_v40 = vld [vmem:[%s3427_s1 + $0x2f0] sm:$0xff] }
  0x28   : > { %2344 = vmatprep.subr.bf16.mxu1 %v3020_v59  ;;  %v249_v48 = vld [vmem:[%s3427_s1 + $0x270] sm:$0xff] }
  0x29   : > { %355 = vmatmul.mubr.f32.vlgmr.msra.gmra.mrb[0].mxu0 %v269_v1  ;;  %v243_v1 = vld [vmem:[%s3427_s1 + $0x240] sm:$0xff]  ;;  %v3173_v57 = vpack.c.bf16 %v250_v49, %v249_v48  ;;  %v1696_v9 = vld [vmem:[%s2922_s18 + $0x70] sm:$0xff] }
  0x2a   : > { %430 = vmatmul.mubr.f32.vlgmr.msra.gmra.mrb[0].mxu1 %v271_v4  ;;  %2314 = vmatpush3.bf16.msra.mxu0 %v3030_v2  ;;  %v244_v4 = vld [vmem:[%s3427_s1 + $0x248] sm:$0xff]  ;;  %v1700_v48 = vld [vmem:[%s2922_s18 + $0x90] sm:$0xff] }
  0x2b   : > { %2346 = vmatpush3.bf16.msra.mxu1 %v3020_v59  ;;  %359 = vmatprep.mubr.f32.mxu0 %v277_v10  ;;  %v3119_v10 = vpack.c.bf16 %v244_v4, %v243_v1  ;;  %v281_v1 = vld [vmem:[%s2922_s18 + $0x60] sm:$0xff]  ;;  %v280_v4 = vld [vmem:[%s2922_s18 + $0x58] sm:$0xff]  ;;  %v1708_v49 = vld [vmem:[%s2922_s18 + $0xd0] sm:$0xff] }
  0x2c   : > { %434 = vmatprep.mubr.f32.mxu1 %v279_v18  ;;  %2316 = vmatprep.subr.bf16.mxu0 %v3043_v11  ;;  %v246_v18 = vld [vmem:[%s3427_s1 + $0x258] sm:$0xff] }
  0x2d   : > { %360 = vmatmul.mubr.f32.gmra.mrb[2].mxu0 %v276_v22  ;;  %2348 = vmatprep.subr.bf16.mxu1 %v2703_v3  ;;  %v263_v22 = vld [vmem:[%s3427_s1 + $0x2e0] sm:$0xff]  ;;  %v3139_v29 = vpack.c.bf16 %v246_v18, %v245_v15  ;;  %v1704_v15 = vld [vmem:[%s2922_s18 + $0xb0] sm:$0xff]  ;;  %v1703_v18 = vld [vmem:[%s2922_s18 + $0xa8] sm:$0xff] }
  0x2e   : > { %435 = vmatmul.mubr.f32.gmra.mrb[2].mxu1 %v278_v24  ;;  %2318 = vmatpush3.bf16.msra.mxu0 %v3054_v23  ;;  %v264_v24 = vld [vmem:[%s3427_s1 + $0x2e8] sm:$0xff] }
  0x2f   : > { %2223 = vmatprep.mubr.msk.f32.mxu1 %vm283_vm0, %v275_v32  ;;  %2320 = vmatprep.subr.bf16.mxu0 %v3058_v28  ;;  %v3143_v31 = vpack.c.bf16 %v264_v24, %v263_v22  ;;  %v247_v32 = vld [vmem:[%s3427_s1 + $0x260] sm:$0xff]  ;;  %v1701_v22 = vld [vmem:[%s2922_s18 + $0x98] sm:$0xff] }
  0x30   : > { %504 = vmatprep.mubr.f32.mxu0 %v274_v41  ;;  %v266_v41 = vld [vmem:[%s3427_s1 + $0x2f8] sm:$0xff]  ;;  %v1698_v24 = vld [vmem:[%s2922_s18 + $0x80] sm:$0xff] }
  0x31   : > { %v3163_v47 = vpack.c.bf16 %v266_v41, %v265_v40  ;;  %v1702_v40 = vld [vmem:[%s2922_s18 + $0xa0] sm:$0xff]  ;;  %v1709_v41 = vld [vmem:[%s2922_s18 + $0xd8] sm:$0xff] }
  0x32   : > { %2224 = vmatmul.mubr.msk.f32.vlgmr.msra.gmra.mrb[4].mxu1 %vm283_vm0, %v282_v45  ;;  %2322 = vmatpush3.bf16.msra.mxu0 %v3077_v42  ;;  %v3159_v45 = vpack.c.bf16 %v248_v33, %v247_v32  ;;  %v1706_v32 = vld [vmem:[%s2922_s18 + $0xc0] sm:$0xff]  ;;  %v1705_v33 = vld [vmem:[%s2922_s18 + $0xb8] sm:$0xff] }
  0x33   : > { %2350 = vmatpush3.bf16.msra.mxu1 %v2716_v8  ;;  %2324 = vmatprep.subr.bf16.mxu0 %v3082_v46 }
  0x34   : > { %2352 = vmatprep.subr.bf16.mxu1 %v2741_v16  ;;  %677 = vmatprep.mubr.f32.mxu1 %v1697_v58  ;;  %v273_v58 = vld [vmem:[%s2922_s18 + $0x20] sm:$0xff] }
  0x36   : > { %2326 = vmatpush3.bf16.msra.mxu0 %v3099_v60 }
  0x37   : > { %2354 = vmatpush3.bf16.msra.mxu1 %v2755_v21  ;;  %2328 = vmatprep.subr.bf16.mxu0 %v3103_v61 }
  0x38   : > { %2356 = vmatprep.subr.bf16.mxu1 %v2770_v26 }
  0x3a   : > { %2330 = vmatpush3.bf16.msra.mxu0 %v3119_v10 }
  0x3b   : > { %2358 = vmatpush3.bf16.msra.mxu1 %v2799_v34  ;;  %2332 = vmatprep.subr.bf16.mxu0 %v3123_v13 }
  0x3c   : > { %2360 = vmatprep.subr.bf16.mxu1 %v2814_v39 }
  0x3e   : > { %2334 = vmatpush3.bf16.msra.mxu0 %v3139_v29 }
  0x3f   : > { %2362 = vmatpush3.bf16.msra.mxu1 %v2853_v50  ;;  %2336 = vmatprep.subr.bf16.mxu0 %v3143_v31 }
  0x40   : > { %2364 = vmatprep.subr.bf16.mxu1 %v2859_v52 }
  0x42   : > { %2338 = vmatpush3.bf16.msra.mxu0 %v3159_v45 }
  0x43   : > { %2366 = vmatpush3.bf16.msra.mxu1 %v2890_v62  ;;  %2340 = vmatprep.subr.bf16.mxu0 %v3163_v47 }
  0x44   : > { %2368 = vmatprep.subr.bf16.mxu1 %v2896_v0 }
  0x46   : > { %2342 = vmatpush3.bf16.msra.mxu0 %v3173_v57 }
  0x47   : > { %2370 = vmatpush3.bf16.msra.mxu1 %v2931_v14  ;;  %2380 = vmatprep.subr.bf16.mxu0 %v2714_v7 }
  0x48   : > { %2372 = vmatprep.subr.bf16.mxu1 %v2943_v20 }
  0x49   : > { %505 = vmatmul.mubr.f32.vlgmr.msra.gmra.mrb[4].mxu0 %v273_v58  ;;  %v1713_v58 = vld [vmem:[%s2922_s18 + $0xe8] sm:$0xff] }
  0x4a   : > { %2382 = vmatpush3.bf16.msra.mxu0 %v2728_v12  ;;  %509 = vmatprep.mubr.f32.mxu0 %v281_v1  ;;  %v1707_v1 = vld [vmem:[%s2922_s18 + $0xc8] sm:$0xff] }
  0x4b   : > { %2374 = vmatpush3.bf16.msra.mxu1 %v2969_v35  ;;  %2384 = vmatprep.subr.bf16.mxu0 %v2743_v17 }
  0x4c   : > { %2376 = vmatprep.subr.bf16.mxu1 %v2975_v37 }
  0x4d   : > { %510 = vmatmul.mubr.f32.gmra.mrb[6].mxu0 %v280_v4  ;;  %v1715_v4 = vld [vmem:[%s2922_s18 + $0xf8] sm:$0xff] }
  0x4e   : > { %2386 = vmatpush3.bf16.msra.mxu0 %v2768_v25  ;;  %752 = vmatprep.mubr.f32.mxu0 %v1699_v6  ;;  %v1712_v6 = vld [vmem:[%s2922_s18 + $0xe0] sm:$0xff] }
  0x4f   : > { %2378 = vmatpush3.bf16.msra.mxu1 %v3005_v53  ;;  %2388 = vmatprep.subr.bf16.mxu0 %v2787_v30 }
  0x50   : > { %2412 = vmatprep.subr.bf16.mxu1 %v3011_v55 }
  0x52   : > { %678 = vmatmul.mubr.f32.vlgmr.msra.gmra.mrb[6].mxu1 %v1696_v9  ;;  %2390 = vmatpush3.bf16.msra.mxu0 %v2812_v38  ;;  %v1714_v9 = vld [vmem:[%s2922_s18 + $0xf0] sm:$0xff] }
  0x53   : > { %2414 = vmatpush3.bf16.msra.mxu1 %v3030_v2  ;;  %2392 = vmatprep.subr.bf16.mxu0 %v2826_v43 }
  0x54   : > { %2416 = vmatprep.subr.bf16.mxu1 %v3043_v11  ;;  %682 = vmatprep.mubr.f32.mxu1 %v1704_v15  ;;  %v1720_v15 = vld [vmem:[%s2922_s18 + $0x120] sm:$0xff] }
  0x56   : > { %2394 = vmatpush3.bf16.msra.mxu0 %v2857_v51  ;;  %683 = vmatmul.mubr.f32.gmra.mrb[8].mxu1 %v1703_v18  ;;  %v1722_v18 = vld [vmem:[%s2922_s18 + $0x130] sm:$0xff] }
  0x57   : > { %2418 = vmatpush3.bf16.msra.mxu1 %v3054_v23  ;;  %2396 = vmatprep.subr.bf16.mxu0 %v2871_v56 }
  0x58   : > { %2420 = vmatprep.subr.bf16.mxu1 %v3058_v28  ;;  %827 = vmatprep.mubr.f32.mxu1 %v1701_v22  ;;  %v1719_v22 = vld [vmem:[%s2922_s18 + $0x118] sm:$0xff] }
  0x5a   : > { %2398 = vmatpush3.bf16.msra.mxu0 %v2894_v63 }
  0x5b   : > { %2422 = vmatpush3.bf16.msra.mxu1 %v3077_v42  ;;  %2400 = vmatprep.subr.bf16.mxu0 %v2908_v5 }
  0x5c   : > { %2424 = vmatprep.subr.bf16.mxu1 %v3082_v46 }
  0x5e   : > { %2402 = vmatpush3.bf16.msra.mxu0 %v2941_v19 }
  0x5f   : > { %2426 = vmatpush3.bf16.msra.mxu1 %v3099_v60  ;;  %2404 = vmatprep.subr.bf16.mxu0 %v2951_v27 }
  0x60   : > { %2428 = vmatprep.subr.bf16.mxu1 %v3103_v61 }
  0x62   : > { %2406 = vmatpush3.bf16.msra.mxu0 %v2973_v36 }
  0x63   : > { %2430 = vmatpush3.bf16.msra.mxu1 %v3119_v10  ;;  %2408 = vmatprep.subr.bf16.mxu0 %v2987_v44 }
  0x64   : > { %2432 = vmatprep.subr.bf16.mxu1 %v3123_v13 }
  0x66   : > { %2410 = vmatpush3.bf16.msra.mxu0 %v3009_v54 }
  0x67   : > { %2434 = vmatpush3.bf16.msra.mxu1 %v3139_v29  ;;  %2444 = vmatprep.subr.bf16.mxu0 %v3020_v59 }
  0x68   : > { %2436 = vmatprep.subr.bf16.mxu1 %v3143_v31 }
  0x69   : > { %753 = vmatmul.mubr.f32.vlgmr.msra.gmra.mrb[8].mxu0 %v1698_v24  ;;  %v1721_v24 = vld [vmem:[%s2922_s18 + $0x128] sm:$0xff] }
  0x6a   : > { %757 = vmatprep.mubr.f32.mxu0 %v1706_v32  ;;  %2446 = vmatpush3.bf16.msra.mxu0 %v3020_v59  ;;  %v1718_v32 = vld [vmem:[%s2922_s18 + $0x110] sm:$0xff] }
  0x6b   : > { %2438 = vmatpush3.bf16.msra.mxu1 %v3159_v45  ;;  %2448 = vmatprep.subr.bf16.mxu0 %v2703_v3 }
  0x6c   : > { %2440 = vmatprep.subr.bf16.mxu1 %v3163_v47 }
  0x6d   : > { %758 = vmatmul.mubr.f32.gmra.mrb[10].mxu0 %v1705_v33  ;;  %v1717_v33 = vld [vmem:[%s2922_s18 + $0x108] sm:$0xff] }
  0x6e   : > { %2230 = vmatprep.mubr.msk.f32.mxu0 %vm283_vm0, %v1702_v40  ;;  %v1725_v40 = vld [vmem:[%s2922_s18 + $0x148] sm:$0xff] }
  0x6f   : > { %2442 = vmatpush3.bf16.msra.mxu1 %v3173_v57 }
  0x70   : > { %2480 = vmatprep.subr.bf16.mxu1 %v2714_v7 }
  0x71   : > { %2231 = vmatmul.mubr.msk.f32.vlgmr.msra.gmra.mrb[12].mxu0 %vm283_vm0, %v1709_v41  ;;  %v1729_v41 = vld [vmem:[%s2922_s18 + $0x158] sm:$0xff] }
  0x72   : > { %828 = vmatmul.mubr.f32.vlgmr.msra.gmra.mrb[10].mxu1 %v1700_v48  ;;  %2450 = vmatpush3.bf16.msra.mxu0 %v2716_v8 }
  0x73   : > { %2482 = vmatpush3.bf16.msra.mxu1 %v2728_v12  ;;  %832 = vmatprep.mubr.f32.mxu1 %v1708_v49 }
  0x74   : > { %2452 = vmatprep.subr.bf16.mxu0 %v2741_v16  ;;  %2484 = vmatprep.subr.bf16.mxu1 %v2743_v17 }
  0x75   : > { %1000 = vmatprep.mubr.f32.mxu0 %v1713_v58 }
  0x76   : > { %833 = vmatmul.mubr.f32.gmra.mrb[12].mxu1 %v1707_v1  ;;  %2454 = vmatpush3.bf16.msra.mxu0 %v2755_v21 }
  0x77   : > { %2486 = vmatpush3.bf16.msra.mxu1 %v2768_v25  ;;  %2456 = vmatprep.subr.bf16.mxu0 %v2770_v26 }
  0x78   : > { %2488 = vmatprep.subr.bf16.mxu1 %v2787_v30  ;;  %1075 = vmatprep.mubr.f32.mxu1 %v1715_v4 }
  0x7a   : > { %2458 = vmatpush3.bf16.msra.mxu0 %v2799_v34 }
  0x7b   : > { %2490 = vmatpush3.bf16.msra.mxu1 %v2812_v38  ;;  %2460 = vmatprep.subr.bf16.mxu0 %v2814_v39 }
  0x7c   : > { %2492 = vmatprep.subr.bf16.mxu1 %v2826_v43 }
  0x7e   : > { %2462 = vmatpush3.bf16.msra.mxu0 %v2853_v50 }
  0x7f   : > { %2494 = vmatpush3.bf16.msra.mxu1 %v2857_v51  ;;  %2464 = vmatprep.subr.bf16.mxu0 %v2859_v52 }
  0x80   : > { %2496 = vmatprep.subr.bf16.mxu1 %v2871_v56 }
  0x82   : > { %2466 = vmatpush3.bf16.msra.mxu0 %v2890_v62 }
  0x83   : > { %2498 = vmatpush3.bf16.msra.mxu1 %v2894_v63  ;;  %2468 = vmatprep.subr.bf16.mxu0 %v2896_v0 }
  0x84   : > { %2500 = vmatprep.subr.bf16.mxu1 %v2908_v5 }
  0x86   : > { %2470 = vmatpush3.bf16.msra.mxu0 %v2931_v14 }
  0x87   : > { %2502 = vmatpush3.bf16.msra.mxu1 %v2941_v19  ;;  %2472 = vmatprep.subr.bf16.mxu0 %v2943_v20 }
  0x88   : > { %2504 = vmatprep.subr.bf16.mxu1 %v2951_v27 }
  0x8a   : > { %2474 = vmatpush3.bf16.msra.mxu0 %v2969_v35 }
  0x8b   : > { %2506 = vmatpush3.bf16.msra.mxu1 %v2973_v36  ;;  %2476 = vmatprep.subr.bf16.mxu0 %v2975_v37 }
  0x8c   : > { %2508 = vmatprep.subr.bf16.mxu1 %v2987_v44 }
  0x8e   : > { %2478 = vmatpush3.bf16.msra.mxu0 %v3005_v53 }
  0x8f   : > { %2510 = vmatpush3.bf16.msra.mxu1 %v3009_v54  ;;  %2512 = vmatprep.subr.bf16.mxu0 %v3011_v55 }
  0x90   : > { %2544 = vmatprep.subr.bf16.mxu1 %v3020_v59 }
  0x91   : > { %1001 = vmatmul.mubr.f32.vlgmr.msra.gmra.mrb[14].mxu0 %v1712_v6 }
  0x92   : > { %1076 = vmatmul.mubr.f32.vlgmr.msra.gmra.mrb[14].mxu1 %v1714_v9  ;;  %2514 = vmatpush3.bf16.msra.mxu0 %v3030_v2 }
  0x93   : > { %2546 = vmatpush3.bf16.msra.mxu1 %v3020_v59  ;;  %1005 = vmatprep.mubr.f32.mxu0 %v1720_v15 }
  0x94   : > { %1080 = vmatprep.mubr.f32.mxu1 %v1722_v18  ;;  %2516 = vmatprep.subr.bf16.mxu0 %v3043_v11 }
  0x95   : > { %1006 = vmatmul.mubr.f32.gmra.mrb[16].mxu0 %v1719_v22  ;;  %2548 = vmatprep.subr.bf16.mxu1 %v2703_v3  ;;  %v1716_v3 = vld [vmem:[%s2922_s18 + $0x100] sm:$0xff] }
  0x96   : > { %1081 = vmatmul.mubr.f32.gmra.mrb[16].mxu1 %v1721_v24  ;;  %2518 = vmatpush3.bf16.msra.mxu0 %v3054_v23 }
  0x97   : > { %2237 = vmatprep.mubr.msk.f32.mxu1 %vm283_vm0, %v1718_v32  ;;  %2520 = vmatprep.subr.bf16.mxu0 %v3058_v28 }
  0x98   : > { %1150 = vmatprep.mubr.f32.mxu0 %v1717_v33 }
  0x9a   : > { %2238 = vmatmul.mubr.msk.f32.vlgmr.msra.gmra.mrb[18].mxu1 %vm283_vm0, %v1725_v40  ;;  %2522 = vmatpush3.bf16.msra.mxu0 %v3077_v42 }
  0x9b   : > { %2550 = vmatpush3.bf16.msra.mxu1 %v2716_v8  ;;  %2524 = vmatprep.subr.bf16.mxu0 %v3082_v46  ;;  %v1724_v8 = vld [vmem:[%s2922_s18 + $0x140] sm:$0xff] }
  0x9c   : > { %2552 = vmatprep.subr.bf16.mxu1 %v2741_v16  ;;  %1323 = vmatprep.mubr.f32.mxu1 %v1729_v41  ;;  %v1723_v16 = vld [vmem:[%s2922_s18 + $0x138] sm:$0xff] }
  0x9e   : > { %2526 = vmatpush3.bf16.msra.mxu0 %v3099_v60 }
  0x9f   : > { %2554 = vmatpush3.bf16.msra.mxu1 %v2755_v21  ;;  %2528 = vmatprep.subr.bf16.mxu0 %v3103_v61  ;;  %v1731_v21 = vld [vmem:[%s2922_s18 + $0x168] sm:$0xff] }
  0xa0   : > { %2556 = vmatprep.subr.bf16.mxu1 %v2770_v26  ;;  %v1730_v26 = vld [vmem:[%s2922_s18 + $0x160] sm:$0xff] }
  0xa2   : > { %2530 = vmatpush3.bf16.msra.mxu0 %v3119_v10 }
  0xa3   : > { %2558 = vmatpush3.bf16.msra.mxu1 %v2799_v34  ;;  %2532 = vmatprep.subr.bf16.mxu0 %v3123_v13  ;;  %v2665_v34 = vmov 0.0  }
  0xa4   : > { %2560 = vmatprep.subr.bf16.mxu1 %v2814_v39  ;;  %1575 = vst.msk [vmem:[#allocation2] sm:$0x1] %vm1574_vm1, %v2665_v34  ;;  %v1734_v39 = vld [vmem:[%s2922_s18 + $0x180] sm:$0xff] }
  0xa6   : > { %2534 = vmatpush3.bf16.msra.mxu0 %v3139_v29 }
  0xa7   : > { %2562 = vmatpush3.bf16.msra.mxu1 %v2853_v50  ;;  %2536 = vmatprep.subr.bf16.mxu0 %v3143_v31  ;;  %v1732_v50 = vld [vmem:[%s2922_s18 + $0x170] sm:$0xff] }
  0xa8   : > { %2564 = vmatprep.subr.bf16.mxu1 %v2859_v52  ;;  %v1739_v52 = vld [vmem:[%s2922_s18 + $0x1a8] sm:$0xff] }
  0xaa   : > { %2538 = vmatpush3.bf16.msra.mxu0 %v3159_v45 }
  0xab   : > { %2566 = vmatpush3.bf16.msra.mxu1 %v2890_v62  ;;  %2540 = vmatprep.subr.bf16.mxu0 %v3163_v47 }
  0xac   : > { %2568 = vmatprep.subr.bf16.mxu1 %v2896_v0 }
  0xae   : > { %2542 = vmatpush3.bf16.msra.mxu0 %v3173_v57 }
  0xaf   : > { %2570 = vmatpush3.bf16.msra.mxu1 %v2931_v14  ;;  %2580 = vmatprep.subr.bf16.mxu0 %v2714_v7  ;;  %v1728_v7 = vld [vmem:[%s2922_s18 + $0x150] sm:$0xff] }
  0xb0   : > { %2572 = vmatprep.subr.bf16.mxu1 %v2943_v20 }
  0xb1   : > { %1151 = vmatmul.mubr.f32.vlgmr.msra.gmra.mrb[18].mxu0 %v1716_v3 }
  0xb2   : > { %2582 = vmatpush3.bf16.msra.mxu0 %v2728_v12  ;;  %1155 = vmatprep.mubr.f32.mxu0 %v1724_v8  ;;  %v1736_v12 = vld [vmem:[%s2922_s18 + $0x190] sm:$0xff] }
  0xb3   : > { %2574 = vmatpush3.bf16.msra.mxu1 %v2969_v35  ;;  %2584 = vmatprep.subr.bf16.mxu0 %v2743_v17  ;;  %v1735_v17 = vld [vmem:[%s2922_s18 + $0x188] sm:$0xff] }
  0xb4   : > { %2576 = vmatprep.subr.bf16.mxu1 %v2975_v37 }
  0xb5   : > { %1156 = vmatmul.mubr.f32.gmra.mrb[20].mxu0 %v1723_v16 }
  0xb6   : > { %2586 = vmatpush3.bf16.msra.mxu0 %v2768_v25  ;;  %1398 = vmatprep.mubr.f32.mxu0 %v1731_v21  ;;  %v1733_v25 = vld [vmem:[%s2922_s18 + $0x178] sm:$0xff] }
  0xb7   : > { %2578 = vmatpush3.bf16.msra.mxu1 %v3005_v53  ;;  %2588 = vmatprep.subr.bf16.mxu0 %v2787_v30  ;;  %v1738_v30 = vld [vmem:[%s2922_s18 + $0x1a0] sm:$0xff] }
  0xb8   : > { %2612 = vmatprep.subr.bf16.mxu1 %v3011_v55 }
  0xba   : > { %1324 = vmatmul.mubr.f32.vlgmr.msra.gmra.mrb[20].mxu1 %v1728_v7  ;;  %2590 = vmatpush3.bf16.msra.mxu0 %v2812_v38  ;;  %v1737_v38 = vld [vmem:[%s2922_s18 + $0x198] sm:$0xff] }
  0xbb   : > { %2614 = vmatpush3.bf16.msra.mxu1 %v3030_v2  ;;  %2592 = vmatprep.subr.bf16.mxu0 %v2826_v43  ;;  %v1741_v43 = vld [vmem:[%s2922_s18 + $0x1b8] sm:$0xff] }
  0xbc   : > { %2616 = vmatprep.subr.bf16.mxu1 %v3043_v11  ;;  %1328 = vmatprep.mubr.f32.mxu1 %v1736_v12 }
  0xbe   : > { %2594 = vmatpush3.bf16.msra.mxu0 %v2857_v51  ;;  %1329 = vmatmul.mubr.f32.gmra.mrb[22].mxu1 %v1735_v17  ;;  %v1740_v51 = vld [vmem:[%s2922_s18 + $0x1b0] sm:$0xff]  ;;  %s1746_s18 = sshll.u32 %s3436_s13, 4 }
  0xbf   : > { %2618 = vmatpush3.bf16.msra.mxu1 %v3054_v23  ;;  %2596 = vmatprep.subr.bf16.mxu0 %v2871_v56  ;;  %s170_s25 = scalar_lea.vmem %s3429_s3, %s1746_s18 }
  0xc0   : > { %2620 = vmatprep.subr.bf16.mxu1 %v3058_v28  ;;  %1473 = vmatprep.mubr.f32.mxu1 %v1733_v25 }
  0xc2   : > { %2598 = vmatpush3.bf16.msra.mxu0 %v2894_v63 }
  0xc3   : > { %2622 = vmatpush3.bf16.msra.mxu1 %v3077_v42  ;;  %2600 = vmatprep.subr.bf16.mxu0 %v2908_v5 }
  0xc4   : > { %2624 = vmatprep.subr.bf16.mxu1 %v3082_v46 }
  0xc6   : > { %2602 = vmatpush3.bf16.msra.mxu0 %v2941_v19 }
  0xc7   : > { %2626 = vmatpush3.bf16.msra.mxu1 %v3099_v60  ;;  %2604 = vmatprep.subr.bf16.mxu0 %v2951_v27 }
  0xc8   : > { %2628 = vmatprep.subr.bf16.mxu1 %v3103_v61 }
  0xca   : > { %2606 = vmatpush3.bf16.msra.mxu0 %v2973_v36 }
  0xcb   : > { %2630 = vmatpush3.bf16.msra.mxu1 %v3119_v10  ;;  %2608 = vmatprep.subr.bf16.mxu0 %v2987_v44 }
  0xcc   : > { %2632 = vmatprep.subr.bf16.mxu1 %v3123_v13 }
  0xce   : > { %2610 = vmatpush3.bf16.msra.mxu0 %v3009_v54 }
  0xcf   : > { %2634 = vmatpush3.bf16.msra.mxu1 %v3139_v29  ;;  %2644 = vmatprep.subr.bf16.mxu0 %v3020_v59 }
  0xd0   : > { %2636 = vmatprep.subr.bf16.mxu1 %v3143_v31 }
  0xd1   : > { %1399 = vmatmul.mubr.f32.vlgmr.msra.gmra.mrb[22].mxu0 %v1730_v26 }
  0xd2   : > { %1403 = vmatprep.mubr.f32.mxu0 %v1738_v30  ;;  %2646 = vmatpush3.bf16.msra.mxu0 %v3020_v59 }
  0xd3   : > { %2638 = vmatpush3.bf16.msra.mxu1 %v3159_v45 }
  0xd4   : > { %2640 = vmatprep.subr.bf16.mxu1 %v3163_v47 }
  0xd5   : > { %1404 = vmatmul.mubr.f32.gmra.mrb[24].mxu0 %v1737_v38 }
  0xd6   : > { %2244 = vmatprep.mubr.msk.f32.mxu0 %vm283_vm0, %v1734_v39 }
  0xd7   : > { %2642 = vmatpush3.bf16.msra.mxu1 %v3173_v57 }
  0xd9   : > { %2245 = vmatmul.mubr.msk.f32.vlgmr.msra.gmra.mrb[26].mxu0 %vm283_vm0, %v1741_v43 }
  0xda   : > { %1474 = vmatmul.mubr.f32.vlgmr.msra.gmra.mrb[24].mxu1 %v1732_v50 }
  0xdb   : > { %1478 = vmatprep.mubr.f32.mxu1 %v1740_v51 }
  0xde   : > { %1479 = vmatmul.mubr.f32.gmra.mrb[26].mxu1 %v1739_v52 }
  0xfc   : > { %v1779_v56 = vpop.f32.mrb[0].mxu0 }
  0xfd   : > { %v1817_v62 = vpop.f32.mrb[0].mxu1  ;;  %v1780_v63 = vpop.f32.mrb[1].mxu0 }
  0xfe   : > { %v1781_v0 = vadd.f32 %v1780_v63, %v1779_v56  ;;  %v1818_v5 = vpop.f32.mrb[1].mxu1 }
  0xff   : > { %v1819_v14 = vadd.f32 %v1818_v5, %v1817_v62 }
 0x100   : > { %v1782_v19 = vpop.f32.mrb[2].mxu0 }
 0x101   : > { %v432_v20 = vadd.f32 %v1819_v14, %v1781_v0  ;;  %v1820_v27 = vpop.f32.mrb[2].mxu1  ;;  %v1783_v35 = vpop.f32.mrb[3].mxu0 }
 0x102   : > { %v1784_v36 = vadd.f32 %v1783_v35, %v1782_v19  ;;  %v1821_v37 = vpop.f32.mrb[3].mxu1 }
 0x103   : > { %v1822_v44 = vadd.f32 %v1821_v37, %v1820_v27 }
 0x105   : > { %v437_v53 = vadd.f32 %v1822_v44, %v1784_v36  ;;  %v2225_v54 = vpop.f32.mrb[4].mxu1 }
 0x106   : > { %v581_v55 = vpop.f32.mrb[5].mxu1 }
 0x11c   : > { %v1855_v59 = vpop.f32.mrb[4].mxu0 }
 0x11d   : > { %v1856_v2 = vpop.f32.mrb[5].mxu0 }
 0x11e   : > { %v1857_v11 = vadd.f32 %v1856_v2, %v1855_v59 }
 0x120   : > { %v507_v23 = vadd.f32 %v1857_v11, %v432_v20  ;;  %v1858_v28 = vpop.f32.mrb[6].mxu0 }
 0x121   : > { %v1859_v42 = vpop.f32.mrb[7].mxu0 }
 0x122   : > { %v582_v46 = vadd.f32 %v581_v55, %v507_v23  ;;  %v1860_v60 = vadd.f32 %v1859_v42, %v1858_v28 }
 0x124   : > { %v512_v61 = vadd.f32 %v1860_v60, %v437_v53  ;;  %v590_v7 = vmax.f32 %v582_v46, 0.0 }
 0x125   : > { %v1897_v10 = vpop.f32.mrb[6].mxu1 }
 0x126   : > { %v587_v13 = vadd.f32 %v2225_v54, %v512_v61  ;;  %v1898_v29 = vpop.f32.mrb[7].mxu1 }
 0x127   : > { %v1899_v31 = vadd.f32 %v1898_v29, %v1897_v10 }
 0x128   : > { %v591_v26 = vmax.f32 %v587_v13, 0.0 }
 0x129   : > { %v1900_v45 = vpop.f32.mrb[8].mxu1 }
 0x12a   : > { %v1901_v47 = vpop.f32.mrb[9].mxu1 }
 0x12b   : > { %v1902_v57 = vadd.f32 %v1901_v47, %v1900_v45 }
 0x13c   : > { %v1935_v48 = vpop.f32.mrb[8].mxu0 }
 0x13d   : > { %v1936_v49 = vpop.f32.mrb[9].mxu0 }
 0x13e   : > { %v1937_v58 = vadd.f32 %v1936_v49, %v1935_v48 }
 0x140   : > { %v755_v1 = vadd.f32 %v1937_v58, %v1899_v31  ;;  %v1938_v4 = vpop.f32.mrb[10].mxu0 }
 0x141   : > { %v1939_v6 = vpop.f32.mrb[11].mxu0 }
 0x142   : > { %v1940_v9 = vadd.f32 %v1939_v6, %v1938_v4 }
 0x144   : > { %v760_v15 = vadd.f32 %v1940_v9, %v1902_v57  ;;  %v2232_v18 = vpop.f32.mrb[12].mxu0 }
 0x145   : > { %v1973_v22 = vpop.f32.mrb[10].mxu1  ;;  %v904_v24 = vpop.f32.mrb[13].mxu0 }
 0x146   : > { %v1974_v32 = vpop.f32.mrb[11].mxu1 }
 0x147   : > { %v1975_v33 = vadd.f32 %v1974_v32, %v1973_v22 }
 0x149   : > { %v1976_v40 = vpop.f32.mrb[12].mxu1  ;;  %v830_v41 = vadd.f32 %v1975_v33, %v755_v1 }
 0x14a   : > { %v1977_v3 = vpop.f32.mrb[13].mxu1 }
 0x14b   : > { %v1978_v8 = vadd.f32 %v1977_v3, %v1976_v40  ;;  %v905_v16 = vadd.f32 %v904_v24, %v830_v41 }
 0x14d   : > { %v835_v21 = vadd.f32 %v1978_v8, %v760_v15  ;;  %v913_v12 = vmax.f32 %v905_v16, 0.0 }
 0x14f   : > { %v910_v17 = vadd.f32 %v2232_v18, %v835_v21  ;;  %v3370_v25 = vmax.f32 %v590_v7, %v913_v12  ;;  %1577 = vst.msk [vmem:[#allocation2 + $0x1] sm:$0xff] %vm1576_vm2, %v913_v12 }
 0x151   : > { %v914_v30 = vmax.f32 %v910_v17, 0.0 }
 0x153   : > { %v3373_v38 = vmax.f32 %v591_v26, %v914_v30  ;;  %1579 = vst.msk [vmem:[#allocation2 + $0x9] sm:$0x7f] %vm1578_vm3, %v914_v30 }
 0x156   : > { %v3376_v39 = vld [vmem:[#allocation2] sm:$0xff] }
 0x157   : > { %1590 = vst.msk [vmem:[#allocation2] sm:$0x1] %vm1574_vm1, %v2665_v34 }
 0x15a   : > { %v1581_v16 = vld [vmem:[#allocation2 + $0x8] sm:$0xff] }
 0x164   : > { %v2015_v43 = vpop.f32.mrb[14].mxu0 }
 0x165   : > { %v2053_v50 = vpop.f32.mrb[14].mxu1  ;;  %v2016_v51 = vpop.f32.mrb[15].mxu0 }
 0x166   : > { %v2017_v52 = vadd.f32 %v2016_v51, %v2015_v43  ;;  %v2054_v56 = vpop.f32.mrb[15].mxu1  ;;  %v1567_v51 = vlaneseq }
 0x167   : > { %v2055_v62 = vadd.f32 %v2054_v56, %v2053_v50 }
 0x168   : > { %v2018_v63 = vpop.f32.mrb[16].mxu0  ;;  %v1568_v56 = vshrl.u32 %v1567_v51, 7 }
 0x169   : > { %v1078_v0 = vadd.f32 %v2055_v62, %v2017_v52  ;;  %v2056_v5 = vpop.f32.mrb[16].mxu1  ;;  %v2019_v14 = vpop.f32.mrb[17].mxu0 }
 0x16a   : > { %v2020_v19 = vadd.f32 %v2019_v14, %v2018_v63  ;;  %v2057_v20 = vpop.f32.mrb[17].mxu1  ;;  %v1569_v62 = vadd.s32 8, %v1568_v56 }
 0x16b   : > { %v2058_v27 = vadd.f32 %v2057_v20, %v2056_v5  ;;  %v1570_v5 = vand.u32 3, %v1568_v56 }
 0x16d   : > { %v1083_v35 = vadd.f32 %v2058_v27, %v2020_v19  ;;  %v2239_v36 = vpop.f32.mrb[18].mxu1  ;;  %vm3392_vm6 = vcmp.ne.s32.totalorder %v1570_v5, 0 }
 0x16e   : > { %v1227_v37 = vpop.f32.mrb[19].mxu1 }
 0x184   : > { %v2091_v44 = vpop.f32.mrb[18].mxu0 }
 0x185   : > { %v2092_v53 = vpop.f32.mrb[19].mxu0 }
 0x186   : > { %v2093_v54 = vadd.f32 %v2092_v53, %v2091_v44 }
 0x188   : > { %v1153_v55 = vadd.f32 %v2093_v54, %v1078_v0  ;;  %v2094_v59 = vpop.f32.mrb[20].mxu0 }
 0x189   : > { %v2095_v2 = vpop.f32.mrb[21].mxu0 }
 0x18a   : > { %v1228_v11 = vadd.f32 %v1227_v37, %v1153_v55  ;;  %v2096_v23 = vadd.f32 %v2095_v2, %v2094_v59 }
 0x18c   : > { %v1158_v28 = vadd.f32 %v2096_v23, %v1083_v35  ;;  %v1236_v41 = vmax.f32 %v1228_v11, 0.0  ;;  %v1586_v35 = vsel %vm3392_vm6, %v3376_v39, 0.0 }
 0x18d   : > { %v2133_v42 = vpop.f32.mrb[20].mxu1 }
 0x18e   : > { %v1233_v46 = vadd.f32 %v2239_v36, %v1158_v28  ;;  %v2134_v60 = vpop.f32.mrb[21].mxu1 }
 0x18f   : > { %v2135_v61 = vadd.f32 %v2134_v60, %v2133_v42  ;;  %v1626_v60 = vld [vmem:[%s3428_s2 + $0x8] sm:$0xff] }
 0x190   : > { %v1237_v12 = vmax.f32 %v1233_v46, 0.0  ;;  %v1625_v46 = vld [vmem:[%s3428_s2] sm:$0xff] }
 0x191   : > { %v2136_v10 = vpop.f32.mrb[22].mxu1 }
 0x192   : > { %v2137_v13 = vpop.f32.mrb[23].mxu1 }
 0x193   : > { %v2138_v29 = vadd.f32 %v2137_v13, %v2136_v10 }
 0x1a4   : > { %v2171_v31 = vpop.f32.mrb[22].mxu0 }
 0x1a5   : > { %v2172_v45 = vpop.f32.mrb[23].mxu0 }
 0x1a6   : > { %v2173_v47 = vadd.f32 %v2172_v45, %v2171_v31 }
 0x1a8   : > { %v1401_v57 = vadd.f32 %v2173_v47, %v2135_v61  ;;  %v2174_v48 = vpop.f32.mrb[24].mxu0 }
 0x1a9   : > { %v2175_v49 = vpop.f32.mrb[25].mxu0 }
 0x1aa   : > { %v2176_v58 = vadd.f32 %v2175_v49, %v2174_v48 }
 0x1ac   : > { %v1406_v1 = vadd.f32 %v2176_v58, %v2138_v29  ;;  %v2246_v4 = vpop.f32.mrb[26].mxu0 }
 0x1ad   : > { %v2209_v6 = vpop.f32.mrb[24].mxu1  ;;  %v1550_v9 = vpop.f32.mrb[27].mxu0 }
 0x1ae   : > { %v2210_v15 = vpop.f32.mrb[25].mxu1 }
 0x1af   : > { %v2211_v18 = vadd.f32 %v2210_v15, %v2209_v6 }
 0x1b1   : > { %v2212_v22 = vpop.f32.mrb[26].mxu1  ;;  %v1476_v24 = vadd.f32 %v2211_v18, %v1401_v57 }
 0x1b2   : > { %v2213_v32 = vpop.f32.mrb[27].mxu1 }
 0x1b3   : > { %v2214_v33 = vadd.f32 %v2213_v32, %v2212_v22  ;;  %v1551_v40 = vadd.f32 %v1550_v9, %v1476_v24 }
 0x1b5   : > { %v1481_v3 = vadd.f32 %v2214_v33, %v1406_v1  ;;  %v1559_v8 = vmax.f32 %v1551_v40, 0.0 }
 0x1b7   : > { %v1556_v21 = vadd.f32 %v2246_v4, %v1481_v3  ;;  %v1563_v7 = vmax.f32 %v1236_v41, %v1559_v8  ;;  %1591 = vst.msk [vmem:[#allocation2 + $0x1] sm:$0xff] %vm1576_vm2, %v1559_v8 }
 0x1b9   : > { %v1560_v17 = vmax.f32 %v1556_v21, 0.0  ;;  %v1565_v26 = vmax.f32 %v3370_v25, %v1563_v7  ;;  %v1571_v25 = vand.u32 3, %v1569_v62 }
 0x1bb   : > { %v1564_v30 = vmax.f32 %v1237_v12, %v1560_v17  ;;  %1592 = vst.msk [vmem:[#allocation2 + $0x9] sm:$0x7f] %vm1578_vm3, %v1560_v17  ;;  %vm3388_vm5 = vcmp.ne.s32.totalorder %v1571_v25, 0  ;;  %v1588_v53 = vmax.f32 %v1565_v26, %v1586_v35 }
 0x1bc   : > { %v1587_v27 = vsel %vm3388_vm5, %v1581_v16, 0.0 }
 0x1bd   : > { %v1566_v43 = vmax.f32 %v3373_v38, %v1564_v30 }
 0x1be   : > { %v1593_v50 = vld [vmem:[#allocation2] sm:$0xff] }
 0x1bf   : > { %1600 = vst.msk [vmem:[#allocation2] sm:$0xf] %vm1599_vm4, %v2665_v34  ;;  %v1595_v36 = vsel %vm3392_vm6, %v1593_v50, 0.0  ;;  %v1589_v44 = vmax.f32 %v1566_v43, %v1587_v27 }
 0x1c0   : > { %v1597_v54 = vmax.f32 %v1588_v53, %v1595_v36 }
 0x1c2   : > { %v1594_v52 = vld [vmem:[#allocation2 + $0x8] sm:$0xff] }
 0x1c3   : > { %1601 = vst.msk [vmem:[#allocation2 + $0x4] sm:$0xff] %vm1576_vm2, %v1236_v41  ;;  %v1596_v37 = vsel %vm3388_vm5, %v1594_v52, 0.0 }
 0x1c4   : > { %1602 = vst.msk [vmem:[#allocation2 + $0xc] sm:$0xf] %vm1599_vm4, %v1237_v12  ;;  %v1598_v55 = vmax.f32 %v1589_v44, %v1596_v37 }
 0x1ca   : > { %v1603_v63 = vld [vmem:[#allocation2] sm:$0xff] }
 0x1cb   : > { %v1604_v0 = vld [vmem:[#allocation2 + $0x8] sm:$0xff]  ;;  %1607 = vst.msk [vmem:[#allocation2] sm:$0xf] %vm1599_vm4, %v2665_v34  ;;  %v1605_v59 = vmax.f32 %v1597_v54, %v1603_v63 }
 0x1cc   : > { %1608 = vst.msk [vmem:[#allocation2 + $0x4] sm:$0xff] %vm1576_vm2, %v1559_v8  ;;  %v1606_v2 = vmax.f32 %v1598_v55, %v1604_v0 }
 0x1cd   : > { %1609 = vst.msk [vmem:[#allocation2 + $0xc] sm:$0xf] %vm1599_vm4, %v1560_v17 }
 0x1d3   : > { %v1610_v19 = vld [vmem:[#allocation2] sm:$0xff] }
 0x1d4   : > { %v1611_v20 = vld [vmem:[#allocation2 + $0x8] sm:$0xff]  ;;  %1615 = vst.msk [vmem:[#allocation2] sm:$0x1f] %vm1614_vm7, %v2665_v34  ;;  %v1612_v11 = vmax.f32 %v1605_v59, %v1610_v19 }
 0x1d5   : > { %1616 = vst.msk [vmem:[#allocation2 + $0x5] sm:$0xff] %vm1576_vm2, %v1559_v8  ;;  %v1613_v39 = vmax.f32 %v1606_v2, %v1611_v20 }
 0x1d6   : > { %1618 = vst.msk [vmem:[#allocation2 + $0xd] sm:$0x7] %vm1617_vm8, %v1560_v17 }
 0x1dc   : > { %v1619_v23 = vld [vmem:[#allocation2] sm:$0xff] }
 0x1dd   : > { %v1620_v28 = vld [vmem:[#allocation2 + $0x8] sm:$0xff]  ;;  %v1621_v42 = vsel %vm3392_vm6, %v1619_v23, 0.0 }
 0x1de   : > { %v1622_v34 = vsel %vm3388_vm5, %v1620_v28, 0.0  ;;  %v1623_v61 = vmax.f32 %v1612_v11, %v1621_v42 }
 0x1df   : > { %v1624_v10 = vmax.f32 %v1613_v39, %v1622_v34 }
 0x1e0   : > { %v1627_v13 = vadd.f32 %v1625_v46, %v1623_v61 }
 0x1e1   : > { %v1628_v29 = vadd.f32 %v1626_v60, %v1624_v10 }
 0x1e2   : > { %1629 = vst.msk [vmem:[%s170_s25] sm:$0xff] %vm1576_vm2, %v1627_v13 }
 0x1e3   : > { %1630 = vst.msk [vmem:[%s170_s25 + $0x8] sm:$0xff] %vm1576_vm2, %v1628_v29 }
 0x1e4 PF: > { %s13_s12 = sadd.s32 1, %s2663_s12  }
 0x1e5   : > { %p10_p4 = scmp.ge.s32.totalorder %s13_s12, 4  }
 0x1e7   :  { %12 = sbr.rel (!%p10_p4) target bundleno = 1 (0x1), region = 65 }

// kernel: cct_forward.7
= control target key start
LH: loop header
LB: loop body
LE: loop exit
PB: predicated region body
PF: predicated region fallthrough
CT: control target
= control target key end

     0   :  { %s1871_s21 = smov 0   ;;  %s2216_s0 = inlined_call_operand.vmem [shape: f32[2,16,64], index: 0, kind: input, shape index: {}]   ;;  %s2217_s1 = inlined_call_operand.vmem [shape: f32[1,64], index: 1, kind: input, shape index: {}]   ;;  %s2218_s2 = inlined_call_operand.vmem [shape: f32[1,64], index: 2, kind: input, shape index: {}]   ;;  %s2219_s3 = inlined_call_operand.vmem [shape: f32[64,192], index: 3, kind: input, shape index: {}]   ;;  %s2220_s4 = inlined_call_operand.vmem [shape: f32[64,64], index: 4, kind: input, shape index: {}]   ;;  %s2221_s5 = inlined_call_operand.vmem [shape: f32[1,64], index: 5, kind: input, shape index: {}]   ;;  %s2222_s6 = inlined_call_operand.vmem [shape: f32[1,64], index: 6, kind: input, shape index: {}]   ;;  %s2223_s7 = inlined_call_operand.vmem [shape: f32[1,64], index: 7, kind: input, shape index: {}]   ;;  %s2224_s8 = inlined_call_operand.vmem [shape: f32[64,192], index: 8, kind: input, shape index: {}]   ;;  %s2225_s9 = inlined_call_operand.vmem [shape: f32[1,192], index: 9, kind: input, shape index: {}]   ;;  %s2226_s10 = inlined_call_operand.vmem [shape: f32[192,64], index: 10, kind: input, shape index: {}]   ;;  %s2227_s11 = inlined_call_operand.vmem [shape: f32[1,64], index: 11, kind: input, shape index: {}]   ;;  %s2228_s12 = inlined_call_operand.vmem [shape: f32[2,16,64], index: 12, kind: output, shape index: {}]  }
   0x1 LB: > { %s1506_s22 = sadd.s32 4294967295, %s1799_s21   ;;  %p1510_p0 = scmp.ge.s32.totalorder %s1799_s21, 1  ;;  %s1799_s21 = sphi %s1871_s21, %s22_s21  }
   0x2   : > { %p362_p1 = scmp.lt.s32.totalorder %s1799_s21, 3 }
   0x4   : > { %p363_p2 = pnand %p1510_p0, %p362_p1 }
   0x5   : > { %p404_p3 = scmp.lt.s32.totalorder (!%p363_p2), %s1506_s22, 1  ;;  %vm418_vm0 = vcmask (!%p363_p2), 523264   ;;  %v463_v14 = vld [vmem:[%s2219_s3 + $0x8] sm:$0xff] (!%p363_p2)  ;;  %v465_v15 = vld [vmem:[%s2219_s3 + $0x18] sm:$0xff] (!%p363_p2)  ;;  %v462_v17 = vld [vmem:[%s2219_s3] sm:$0xff] (!%p363_p2)  ;;  %v1801_v33 = vmov (!%p363_p2), 0.0  }
   0x6   : > { %366 = sbr.rel (%p363_p2) target bundleno = 3167 (0xc5f), region = 68  ;;  %v1625_v16 = vpack.c.bf16 (!%p363_p2), %v465_v15, %v463_v14  ;;  %v464_v18 = vld [vmem:[%s2219_s3 + $0x10] sm:$0xff] (!%p363_p2)  ;;  %v467_v20 = vld [vmem:[%s2219_s3 + $0x28] sm:$0xff] (!%p363_p2)  ;;  %v469_v21 = vld [vmem:[%s2219_s3 + $0x38] sm:$0xff] (!%p363_p2)  ;;  %548 = vmatprep.mubr.f32.mxu0 (!%p363_p2), %v1801_v33  ;;  %vm584_vm1 = vcmask (!%p363_p2), 261120   ;;  %s1802_s15 = smov (!%p363_p2), 64  }
   0x7   : > { %v1627_v19 = vpack.c.bf16 (!%p363_p2), %v464_v18, %v462_v17  ;;  %v1629_v22 = vpack.c.bf16 (!%p363_p2), %v469_v21, %v467_v20  ;;  %v466_v23 = vld [vmem:[%s2219_s3 + $0x20] sm:$0xff] (!%p363_p2)  ;;  %v468_v24 = vld [vmem:[%s2219_s3 + $0x30] sm:$0xff] (!%p363_p2)  ;;  %v471_v26 = vld [vmem:[%s2219_s3 + $0x48] sm:$0xff] (!%p363_p2)  ;;  %s1803_s16 = smov (!%p363_p2), 96   ;;  %vm670_vm3 = vcmask (!%p363_p2), 130048   ;;  %s1804_s17 = smov (!%p363_p2), 32  }
   0x8   : > { %1626 = vmatprep.subr.bf16.mxu0 (!%p363_p2), %v1625_v16  ;;  %v1631_v25 = vpack.c.bf16 (!%p363_p2), %v468_v24, %v466_v23  ;;  %v473_v27 = vld [vmem:[%s2219_s3 + $0x58] sm:$0xff] (!%p363_p2)  ;;  %v470_v28 = vld [vmem:[%s2219_s3 + $0x40] sm:$0xff] (!%p363_p2)  ;;  %v472_v30 = vld [vmem:[%s2219_s3 + $0x50] sm:$0xff] (!%p363_p2) }
   0x9   : > { %1628 = vmatpush1.bf16.msra.mxu0 (!%p363_p2), %v1627_v19  ;;  %v1633_v29 = vpack.c.bf16 (!%p363_p2), %v473_v27, %v471_v26  ;;  %v475_v31 = vld [vmem:[%s2219_s3 + $0x68] sm:$0xff] (!%p363_p2)  ;;  %v477_v32 = vld [vmem:[%s2219_s3 + $0x78] sm:$0xff] (!%p363_p2)  ;;  %v1635_v34 = vpack.c.bf16 (!%p363_p2), %v472_v30, %v470_v28  ;;  %v474_v36 = vld [vmem:[%s2219_s3 + $0x60] sm:$0xff] (!%p363_p2) }
   0xa   : > { %1630 = vmatprep.subr.bf16.mxu0 (!%p363_p2), %v1629_v22  ;;  %v1637_v35 = vpack.c.bf16 (!%p363_p2), %v477_v32, %v475_v31  ;;  %v476_v37 = vld [vmem:[%s2219_s3 + $0x70] sm:$0xff] (!%p363_p2)  ;;  %v1515_v46 = vld [vmem:[%s2217_s1] ss:$0 sm:$0xff] (!%p363_p2)  ;;  %vm1970_vm2 = vmpackc.low (!%p363_p2), %vm584_vm1, %vm584_vm1 }
   0xb   : > { %v1639_v38 = vpack.c.bf16 (!%p363_p2), %v476_v37, %v474_v36  ;;  %v1516_v48 = vld [vmem:[%s2218_s2] ss:$0 sm:$0xff] (!%p363_p2)  ;;  %v562_v22 = vld [vmem:[%s2220_s4 + $0x8] sm:$0xff] (!%p363_p2)  ;;  %v563_v28 = vld [vmem:[%s2220_s4 + $0x10] sm:$0xff] (!%p363_p2) }
   0xc   : > { %v561_v21 = vld [vmem:[%s2220_s4] sm:$0xff] (!%p363_p2) }
   0xd   : > { %s2232_s22 = smov (!%p404_p3, %s1506_s22), 1  ;;  %1632 = vmatpush1.bf16.msra.mxu0 %v1631_v25  ;;  %v1651_v23 = vpack.c.bf16 %v562_v22, %v561_v21 }
   0xe   : > { %s1545_s23 = sshll.u32 %s2232_s22, 4  ;;  %1634 = vmatprep.subr.bf16.mxu0 %v1633_v29  ;;  %v564_v29 = vld [vmem:[%s2220_s4 + $0x18] sm:$0xff] }
   0xf   : > { %s408_s26 = scalar_lea.vmem %s2216_s0, %s1545_s23  ;;  %s413_s24 = scalar_lea.vmem %s2228_s12, %s1545_s23 }
  0x10   : > { %v1887_v0 = vld [vmem:[%s408_s26] sm:$0xff]  ;;  %v1889_v1 = vld [vmem:[%s408_s26 + $0x8] sm:$0xff] }
  0x11   : > { %v419_v2 = vsel %vm418_vm0, %v1887_v0, 0.0  ;;  %v422_v3 = vsel %vm418_vm0, %v1889_v1, 0.0  ;;  %1636 = vmatpush1.bf16.msra.mxu0 %v1635_v34  ;;  %v1655_v34 = vpack.c.bf16 %v564_v29, %v563_v28 }
  0x12   : > { %420 = vadd.xlane.f32.xlu0 %v419_v2  ;;  %1638 = vmatprep.subr.bf16.mxu0 %v1637_v35 }
  0x15   : > { %1640 = vmatpush1.bf16.msra.mxu0 %v1639_v38 }
  0x16   : > { %423 = vadd.xlane.f32.xlu0 %v422_v3 }
  0x9f   : > { %v421_v4 = vpop.xlane.xlu0 %420 }
  0xa0   : > { %v426_v5 = vmul.f32 0.015625, %v421_v4 }
  0xa2   : > { %v428_v6 = vsub.f32 %v1887_v0, %v426_v5 }
  0xa3   : > { %v424_v7 = vpop.xlane.xlu0 %423 }
  0xa4   : > { %v427_v8 = vmul.f32 0.015625, %v424_v7  ;;  %v430_v9 = vmul.f32 %v428_v6, %v428_v6 }
  0xa6   : > { %v429_v10 = vsub.f32 %v1889_v1, %v427_v8  ;;  %v432_v11 = vsel %vm418_vm0, %v430_v9, 0.0 }
  0xa7   : > { %433 = vadd.xlane.f32.xlu1 %v432_v11 }
  0xa8   : > { %v431_v12 = vmul.f32 %v429_v10, %v429_v10 }
  0xaa   : > { %v435_v13 = vsel %vm418_vm0, %v431_v12, 0.0 }
  0xab   : > { %436 = vadd.xlane.f32.xlu1 %v435_v13 }
 0x134   : > { %v434_v39 = vpop.xlane.xlu1 %433 }
 0x135   : > { %v438_v40 = vmul.f32 0.015625, %v434_v39 }
 0x137   : > { %v440_v41 = vadd.f32 1e-05, %v438_v40 }
 0x138   : > { %v437_v42 = vpop.xlane.xlu1 %436 }
 0x139   : > { %1761 = vrsqrt.f32 %v440_v41  ;;  %v439_v43 = vmul.f32 0.015625, %v437_v42 }
 0x13b   : > { %v441_v44 = vadd.f32 1e-05, %v439_v43 }
 0x13d   : > { %1763 = vrsqrt.f32 %v441_v44 }
 0x143   : > { %v1762_v45 = vpop.eup %1761 }
 0x144   : > { %v444_v47 = vmul.f32 %v1762_v45, %v428_v6 }
 0x146   : > { %v452_v49 = vmul.f32 %v1515_v46, %v444_v47 }
 0x147   : > { %v1764_v50 = vpop.eup %1763 }
 0x148   : > { %v460_v51 = vadd.f32 %v1516_v48, %v452_v49  ;;  %v445_v52 = vmul.f32 %v1764_v50, %v429_v10 }
 0x14a   : > { %1517 = vmatmul.mubr.msk.f32.vlgmr.msra.gmra.mrb[0].mxu0 %vm418_vm0, %v460_v51  ;;  %v453_v53 = vmul.f32 %v1515_v46, %v445_v52 }
 0x14b   : > { %554 = vmatprep.mubr.f32.mxu0 %v1801_v33 }
 0x14c   : > { %v461_v54 = vadd.f32 %v1516_v48, %v453_v53 }
 0x14e   : > { %1518 = vmatmul.mubr.msk.f32.gmra.mrb[2].mxu0 %vm418_vm0, %v461_v54 }
 0x21d   : > { %v550_v55 = vpop.f32.mrb[0].mxu0 }
 0x21e   : > { %v1957_v56 = vpop.f32.mrb[1].mxu0  ;;  %1579 = vmatprep.mubr.msk.f32.mxu0 %vm584_vm1, %v550_v55 }
 0x221   : > { %v556_v57 = vpop.f32.mrb[2].mxu0 }
 0x222   : > { %v1960_v58 = vpop.f32.mrb[3].mxu0  ;;  %v1746_v59 = vpack.i.bf16 %v556_v57, %v550_v55 }
 0x223   : > { %v1756_v60 = vpack.i.bf16 %v1960_v58, %v1957_v56  ;;  %v1647_v61 = vpack.c.bf16 %v1960_v58, %v1957_v56  ;;  %v567_v58 = vld [vmem:[%s2220_s4 + $0x30] sm:$0xff] }
 0x224   : > { %1747 = vrot.lane.b32.xlu0 %v1746_v59, %s1802_s15 }
 0x228   : > { %857 = vrot.lane.b32.xlu0 %v550_v55, %s1803_s16 }
 0x22c   : > { %859 = vrot.lane.b32.xlu0 %v556_v57, %s1803_s16 }
 0x296   : > { %v1748_v62 = vpop.permute.xlu0 %1747 }
 0x297   : > { %v1750_v63 = vunpack.i.h.bf16 %v1748_v62  ;;  %v1749_v2 = vunpack.i.l.bf16 %v1748_v62 }
 0x299   : > { %v1641_v4 = vpack.c.bf16 %v1750_v63, %v1749_v2 }
 0x29a   : > { %v858_v40 = vpop.permute.xlu0 %857 }
 0x29b   : > { %1643 = vmatprep.subr.msk.bf16.mxu0 %vm1970_vm2, %v1641_v4 }
 0x29c   : > { %1646 = vmatpush3.bf16.xpose.msk.msra.mxu0 %vm1970_vm2, %v1641_v4  ;;  %v565_v4 = vld [vmem:[%s2220_s4 + $0x20] sm:$0xff] }
 0x29d   : > { %1648 = vmatprep.subr.bf16.mxu0 %v1647_v61 }
 0x29e   : > { %v860_v41 = vpop.permute.xlu0 %859 }
 0x2a3   : > { %1580 = vmatmul.mubr.msk.f32.vlgmr.msra.gmra.mrb[4].mxu0 %vm584_vm1, %v556_v57 }
 0x2a4   : > { %1650 = vmatpush3.bf16.msra.mxu0 %v1647_v61 }
 0x2a5   : > { %1652 = vmatprep.subr.bf16.mxu0 %v1651_v23 }
 0x376   : > { %v1581_v5 = vpop.f32.mrb[4].mxu0 }
 0x377   : > { %v659_v6 = vpop.f32.mrb[5].mxu0  ;;  %v669_v8 = vmul.f32 0.17677669, %v1581_v5  ;;  %v566_v5 = vld [vmem:[%s2220_s4 + $0x28] sm:$0xff] }
 0x378   : > { %v668_v7 = vmul.f32 0.17677669, %v659_v6 }
 0x379   : > { %v674_v10 = vsel %vm670_vm3, %v669_v8, -inf }
 0x37a   : > { %v671_v9 = vsel %vm670_vm3, %v668_v7, -inf }
 0x37b   : > { %672 = vmax.xlane.f32.xlu1 %v671_v9  ;;  %v1669_v9 = vpack.c.bf16 %v566_v5, %v565_v4  ;;  %v1805_v4 = vmov 0.0|0.0  }
 0x37f   : > { %675 = vmax.xlane.f32.xlu1 %v674_v10 }
 0x408   : > { %v673_v11 = vpop.xlane.xlu1 %672 }
 0x409   : > { %v677_v12 = vsub.f32 %v668_v7, %v673_v11 }
 0x40b   : > { %v679_v13 = vmul.f32 1.442695, %v677_v12 }
 0x40c   : > { %v676_v14 = vpop.xlane.xlu1 %675 }
 0x40d   : > { %1765 = vpow2.f32 %v679_v13  ;;  %v678_v15 = vsub.f32 %v669_v8, %v676_v14 }
 0x40f   : > { %v681_v16 = vmul.f32 1.442695, %v678_v15 }
 0x411   : > { %1767 = vpow2.f32 %v681_v16  ;;  %v1519_v16 = vld [vmem:[%s2221_s5] ss:$0 sm:$0xff] }
 0x417   : > { %v1766_v17 = vpop.eup %1765 }
 0x418   : > { %v683_v18 = vsel %vm670_vm3, %v1766_v17, 0.0 }
 0x419   : > { %684 = vadd.xlane.f32.xlu1 %v683_v18  ;;  %v576_v18 = vadd.f32 %v1519_v16, %v1887_v0 }
 0x41b   : > { %v1768_v19 = vpop.eup %1767 }
 0x41c   : > { %v686_v20 = vsel %vm670_vm3, %v1768_v19, 0.0 }
 0x41d   : > { %687 = vadd.xlane.f32.xlu1 %v686_v20 }
 0x42e   : > { %1752 = vrot.lane.b32.xlu1 %v1746_v59, %s1804_s17 }
 0x4a6   : > { %v685_v24 = vpop.xlane.xlu1 %684 }
 0x4a7   : > { %1769 = vrcp.f32 %v685_v24 }
 0x4aa   : > { %v688_v25 = vpop.xlane.xlu1 %687 }
 0x4ab   : > { %1771 = vrcp.f32 %v688_v25 }
 0x4ae   : > { %v1753_v31 = vpop.permute.xlu1 %1752 }
 0x4af   : > { %v1755_v35 = vunpack.i.h.bf16 %v1753_v31  ;;  %v1754_v36 = vunpack.i.l.bf16 %v1753_v31 }
 0x4b1   : > { %v1770_v26 = vpop.eup %1769  ;;  %v1659_v37 = vpack.c.bf16 %v1755_v35, %v1754_v36  ;;  %v1189_v36 = vld [vmem:[%s2224_s8 + $0x8] sm:$0xff] }
 0x4b2   : > { %v691_v27 = vmul.f32 %v1770_v26, %v1766_v17  ;;  %v577_v17 = vadd.f32 %v1519_v16, %v1889_v1 }
 0x4b4   : > { %1586 = vmatprep.mubr.msk.f32.mxu0 %vm670_vm3, %v691_v27 }
 0x4b5   : > { %v1772_v30 = vpop.eup %1771 }
 0x4b6   : > { %v692_v32 = vmul.f32 %v1772_v30, %v1768_v19 }
 0x4b8   : > { %1587 = vmatmul.mubr.msk.f32.vlgmr.msra.gmra.mrb[6].mxu0 %vm670_vm3, %v692_v32 }
 0x4b9   : > { %1654 = vmatpush3.bf16.msra.mxu0 %v1651_v23 }
 0x4ba   : > { %1656 = vmatprep.subr.bf16.mxu0 %v1655_v34 }
 0x4bd   : > { %1658 = vmatpush3.bf16.msra.mxu0 %v1655_v34 }
 0x4be   : > { %1661 = vmatprep.subr.msk.bf16.mxu0 %vm1970_vm2, %v1659_v37 }
 0x58b   : > { %v1588_v38 = vpop.f32.mrb[6].mxu0 }
 0x58c   : > { %v765_v39 = vpop.f32.mrb[7].mxu0 }
 0x58d   : > { %1597 = vmatprep.mubr.msk.f32.mxu0 %vm584_vm1, %v765_v39  ;;  %v1188_v39 = vld [vmem:[%s2224_s8] sm:$0xff] }
 0x58e   : > { %1598 = vmatmul.mubr.msk.f32.vlgmr.msra.gmra.mrb[8].mxu0 %vm584_vm1, %v1588_v38 }
 0x58f   : > { %1664 = vmatpush3.bf16.xpose.msk.msra.mxu0 %vm1970_vm2, %v1659_v37  ;;  %1604 = vmatprep.mubr.msk.f32.mxu0 %vm584_vm1, %v858_v40  ;;  %v1191_v37 = vld [vmem:[%s2224_s8 + $0x18] sm:$0xff]  ;;  %v1190_v40 = vld [vmem:[%s2224_s8 + $0x10] sm:$0xff] }
 0x590   : > { %v1677_v38 = vpack.c.bf16 %v1191_v37, %v1189_v36  ;;  %v1351_v37 = vld [vmem:[%s2226_s10 + $0x80] sm:$0xff] }
 0x592   : > { %1678 = vmatprep.subr.bf16.mxu0 %v1677_v38  ;;  %v1352_v38 = vld [vmem:[%s2226_s10 + $0x88] sm:$0xff] }
 0x596   : > { %1605 = vmatmul.mubr.msk.f32.vlgmr.msra.gmra.mrb[10].mxu0 %vm584_vm1, %v860_v41  ;;  %v1679_v41 = vpack.c.bf16 %v1190_v40, %v1188_v39  ;;  %v1718_v39 = vpack.c.bf16 %v1352_v38, %v1351_v37  ;;  %v1353_v40 = vld [vmem:[%s2226_s10 + $0x90] sm:$0xff]  ;;  %v1540_v38 = vld [vmem:[%s2227_s11] ss:$0 sm:$0xff] }
 0x597   : > { %1286 = vmatprep.mubr.f32.mxu0 %v1801_v33 }
 0x598   : > { %1680 = vmatpush1.bf16.msra.mxu0 %v1679_v41  ;;  %v1354_v41 = vld [vmem:[%s2226_s10 + $0x98] sm:$0xff] }
 0x661   : > { %v1599_v42 = vpop.f32.mrb[8].mxu0 }
 0x662   : > { %v846_v43 = vpop.f32.mrb[9].mxu0  ;;  %v856_v19 = vadd.f32 %v1599_v42, %v577_v17  ;;  %v1193_v42 = vld [vmem:[%s2224_s8 + $0x28] sm:$0xff] }
 0x663   : > { %v855_v20 = vadd.f32 %v846_v43, %v576_v18  ;;  %v1195_v43 = vld [vmem:[%s2224_s8 + $0x38] sm:$0xff] }
 0x669   : > { %v1606_v44 = vpop.f32.mrb[10].mxu0 }
 0x66a   : > { %v949_v45 = vmul.f32 0.17677669, %v1606_v44  ;;  %v939_v46 = vpop.f32.mrb[11].mxu0  ;;  %v1681_v44 = vpack.c.bf16 %v1195_v43, %v1193_v42  ;;  %v1721_v42 = vpack.c.bf16 %v1354_v41, %v1353_v40  ;;  %v1355_v43 = vld [vmem:[%s2226_s10 + $0xa0] sm:$0xff] }
 0x66b   : > { %v948_v47 = vmul.f32 0.17677669, %v939_v46  ;;  %v1194_v46 = vld [vmem:[%s2224_s8 + $0x30] sm:$0xff] }
 0x66c   : > { %v953_v48 = vsel %vm670_vm3, %v949_v45, -inf  ;;  %1682 = vmatprep.subr.bf16.mxu0 %v1681_v44  ;;  %v1356_v44 = vld [vmem:[%s2226_s10 + $0xa8] sm:$0xff] }
 0x66d   : > { %954 = vmax.xlane.f32.xlu1 %v953_v48  ;;  %v950_v49 = vsel %vm670_vm3, %v948_v47, -inf  ;;  %v1197_v48 = vld [vmem:[%s2224_s8 + $0x48] sm:$0xff] }
 0x66e   : > { %951 = vmax.xlane.f32.xlu0 %v950_v49  ;;  %v1199_v49 = vld [vmem:[%s2224_s8 + $0x58] sm:$0xff] }
 0x6fa   : > { %v955_v50 = vpop.xlane.xlu1 %954 }
 0x6fb   : > { %v957_v51 = vsub.f32 %v949_v45, %v955_v50  ;;  %v952_v52 = vpop.xlane.xlu0 %951  ;;  %v1192_v45 = vld [vmem:[%s2224_s8 + $0x20] sm:$0xff]  ;;  %v1685_v50 = vpack.c.bf16 %v1199_v49, %v1197_v48  ;;  %v1206_v49 = vlaneseq }
 0x6fc   : > { %v956_v53 = vsub.f32 %v948_v47, %v952_v52  ;;  %v1683_v47 = vpack.c.bf16 %v1194_v46, %v1192_v45  ;;  %v1198_v52 = vld [vmem:[%s2224_s8 + $0x50] sm:$0xff]  ;;  %v1724_v45 = vpack.c.bf16 %v1356_v44, %v1355_v43 }
 0x6fd   : > { %v960_v54 = vmul.f32 1.442695, %v957_v51  ;;  %v1196_v51 = vld [vmem:[%s2224_s8 + $0x40] sm:$0xff]  ;;  %v1357_v46 = vld [vmem:[%s2226_s10 + $0xb0] sm:$0xff] }
 0x6fe   : > { %v958_v55 = vmul.f32 1.442695, %v956_v53  ;;  %1684 = vmatpush1.bf16.msra.mxu0 %v1683_v47  ;;  %v1687_v53 = vpack.c.bf16 %v1198_v52, %v1196_v51  ;;  %v1358_v47 = vld [vmem:[%s2226_s10 + $0xb8] sm:$0xff]  ;;  %v1204_v52 = vld [vmem:[%s2225_s9] sm:$0x3] }
 0x6ff   : > { %1773 = vpow2.f32 %v960_v54  ;;  %1686 = vmatprep.subr.bf16.mxu0 %v1685_v50  ;;  %v1201_v54 = vld [vmem:[%s2224_s8 + $0x68] sm:$0xff]  ;;  %v1727_v48 = vpack.c.bf16 %v1358_v47, %v1357_v46  ;;  %v1207_v50 = vshrl.u32 %v1206_v49, 7 }
 0x700   : > { %1775 = vpow2.f32 %v958_v55  ;;  %v1203_v55 = vld [vmem:[%s2224_s8 + $0x78] sm:$0xff] }
 0x701   : > { %v1208_v51 = vsub.s32 0, %v1207_v50 }
 0x702   : > { %1688 = vmatpush1.bf16.msra.mxu0 %v1687_v53  ;;  %v1212_v53 = vsub.s32 1, %v1207_v50 }
 0x709   : > { %v1774_v57 = vpop.eup %1773 }
 0x70a   : > { %v965_v59 = vsel %vm670_vm3, %v1774_v57, 0.0  ;;  %v1776_v61 = vpop.eup %1775 }
 0x70b   : > { %966 = vadd.xlane.f32.xlu0 %v965_v59  ;;  %v962_v62 = vsel %vm670_vm3, %v1776_v61, 0.0  ;;  %v1200_v59 = vld [vmem:[%s2224_s8 + $0x60] sm:$0xff] }
 0x70f   : > { %963 = vadd.xlane.f32.xlu0 %v962_v62 }
 0x725   : > { %1757 = vrot.lane.b32.xlu0 %v1756_v60, %s1803_s16  ;;  %v568_v60 = vld [vmem:[%s2220_s4 + $0x38] sm:$0xff] }
 0x726   : > { %v1673_v13 = vpack.c.bf16 %v568_v60, %v567_v58  ;;  %v1341_v58 = vld [vmem:[%s2226_s10 + $0x30] sm:$0xff]  ;;  %v1342_v60 = vld [vmem:[%s2226_s10 + $0x38] sm:$0xff] }
 0x798   : > { %v967_v63 = vpop.xlane.xlu0 %966 }
 0x799   : > { %1777 = vrcp.f32 %v967_v63  ;;  %v1335_v63 = vld [vmem:[%s2226_s10] sm:$0xff] }
 0x79c   : > { %v964_v2 = vpop.xlane.xlu0 %963 }
 0x79d   : > { %1779 = vrcp.f32 %v964_v2  ;;  %v1336_v2 = vld [vmem:[%s2226_s10 + $0x8] sm:$0xff] }
 0x79e   : > { %v1694_v5 = vpack.c.bf16 %v1336_v2, %v1335_v63 }
 0x7a0   : > { %v1758_v3 = vpop.permute.xlu0 %1757 }
 0x7a1   : > { %v1760_v6 = vunpack.i.h.bf16 %v1758_v3  ;;  %v1759_v7 = vunpack.i.l.bf16 %v1758_v3  ;;  %v1337_v3 = vld [vmem:[%s2226_s10 + $0x10] sm:$0xff] }
 0x7a3   : > { %v1665_v8 = vpack.c.bf16 %v1760_v6, %v1759_v7  ;;  %v1778_v56 = vpop.eup %1777  ;;  %v1338_v6 = vld [vmem:[%s2226_s10 + $0x18] sm:$0xff] }
 0x7a4   : > { %v971_v12 = vmul.f32 %v1778_v56, %v1774_v57  ;;  %v1689_v57 = vpack.c.bf16 %v1203_v55, %v1201_v54  ;;  %v1697_v7 = vpack.c.bf16 %v1338_v6, %v1337_v3  ;;  %v1209_v54 = vrot.slane %v1204_v52, %v1208_v51 }
 0x7a5   : > { %1666 = vmatprep.subr.bf16.mxu1 %v1665_v8  ;;  %v1213_v55 = vrot.slane %v1204_v52, %v1212_v53 }
 0x7a6   : > { %1668 = vmatpush3.bf16.msra.mxu1 %v1665_v8  ;;  %1690 = vmatprep.subr.bf16.mxu0 %v1689_v57  ;;  %v1339_v8 = vld [vmem:[%s2226_s10 + $0x20] sm:$0xff] }
 0x7a7   : > { %v1780_v10 = vpop.eup %1779  ;;  %1670 = vmatprep.subr.bf16.mxu1 %v1669_v9 }
 0x7a8   : > { %v970_v11 = vmul.f32 %v1780_v10, %v1776_v61  ;;  %v1202_v61 = vld [vmem:[%s2224_s8 + $0x70] sm:$0xff]  ;;  %v1703_v10 = vpack.c.bf16 %v1342_v60, %v1341_v58 }
 0x7a9   : > { %v1691_v62 = vpack.c.bf16 %v1202_v61, %v1200_v59 }
 0x7aa   : > { %1611 = vmatprep.mubr.msk.f32.mxu1 %vm670_vm3, %v970_v11  ;;  %v1343_v11 = vld [vmem:[%s2226_s10 + $0x40] sm:$0xff] }
 0x7ab   : > { %1612 = vmatmul.mubr.msk.f32.vlgmr.msra.gmra.mrb[0].mxu1 %vm670_vm3, %v971_v12  ;;  %1692 = vmatpush1.bf16.msra.mxu0 %v1691_v62  ;;  %v1344_v12 = vld [vmem:[%s2226_s10 + $0x48] sm:$0xff] }
 0x7ac   : > { %1672 = vmatpush3.bf16.msra.mxu1 %v1669_v9  ;;  %v1340_v9 = vld [vmem:[%s2226_s10 + $0x28] sm:$0xff] }
 0x7ad   : > { %1674 = vmatprep.subr.bf16.mxu1 %v1673_v13  ;;  %v1700_v56 = vpack.c.bf16 %v1340_v9, %v1339_v8 }
 0x7b0   : > { %1676 = vmatpush3.bf16.msra.mxu1 %v1673_v13  ;;  %v1706_v13 = vpack.c.bf16 %v1344_v12, %v1343_v11 }
 0x7b1   : > { %1693 = vmatprep.subr.bf16.mxu1 %v1805_v4 }
 0x87e   : > { %v1613_v14 = vpop.f32.mrb[0].mxu1 }
 0x87f   : > { %v1052_v15 = vpop.f32.mrb[1].mxu1 }
 0x880   : > { %1622 = vmatprep.mubr.msk.f32.mxu1 %vm584_vm1, %v1052_v15 }
 0x881   : > { %1623 = vmatmul.mubr.msk.f32.vlgmr.msra.gmra.mrb[2].mxu1 %vm584_vm1, %v1613_v14 }
 0x882   : > { %1695 = vmatpush1.bf16.msra.mxu1 %v1694_v5 }
 0x883   : > { %1696 = vmatprep.subr.bf16.mxu1 %v1805_v4 }
 0x886   : > { %1698 = vmatpush1.bf16.msra.mxu1 %v1697_v7 }
 0x887   : > { %1699 = vmatprep.subr.bf16.mxu1 %v1805_v4 }
 0x88a   : > { %1701 = vmatpush1.bf16.msra.mxu1 %v1700_v56 }
 0x88b   : > { %1702 = vmatprep.subr.bf16.mxu1 %v1805_v4 }
 0x88e   : > { %1704 = vmatpush1.bf16.msra.mxu1 %v1703_v10 }
 0x88f   : > { %1705 = vmatprep.subr.bf16.mxu1 %v1805_v4 }
 0x892   : > { %1707 = vmatpush1.bf16.msra.mxu1 %v1706_v13 }
 0x893   : > { %1708 = vmatprep.subr.bf16.mxu1 %v1805_v4 }
 0x954   : > { %v1624_v21 = vpop.f32.mrb[2].mxu1 }
 0x955   : > { %v1143_v22 = vadd.f32 %v1624_v21, %v856_v19  ;;  %v1133_v23 = vpop.f32.mrb[3].mxu1  ;;  %v1536_v21 = vld [vmem:[%s2222_s6] ss:$0 sm:$0xff] }
 0x956   : > { %v1142_v24 = vadd.f32 %v1133_v23, %v855_v20  ;;  %v1537_v23 = vld [vmem:[%s2223_s7] ss:$0 sm:$0xff] }
 0x957   : > { %v1149_v26 = vsel %vm418_vm0, %v1143_v22, 0.0 }
 0x958   : > { %v1146_v25 = vsel %vm418_vm0, %v1142_v24, 0.0 }
 0x959   : > { %1147 = vadd.xlane.f32.xlu1 %v1146_v25 }
 0x95d   : > { %1150 = vadd.xlane.f32.xlu1 %v1149_v26 }
 0x9e6   : > { %v1148_v27 = vpop.xlane.xlu1 %1147 }
 0x9e7   : > { %v1152_v28 = vmul.f32 0.015625, %v1148_v27 }
 0x9e9   : > { %v2037_v29 = vsub.f32 %v1142_v24, %v1152_v28 }
 0x9ea   : > { %v1151_v30 = vpop.xlane.xlu1 %1150 }
 0x9eb   : > { %v1153_v1 = vmul.f32 0.015625, %v1151_v30  ;;  %v1156_v0 = vmul.f32 %v2037_v29, %v2037_v29 }
 0x9ed   : > { %v2041_v31 = vsub.f32 %v1143_v22, %v1153_v1  ;;  %v1158_v32 = vsel %vm418_vm0, %v1156_v0, 0.0  ;;  %v1346_v1 = vld [vmem:[%s2226_s10 + $0x58] sm:$0xff] }
 0x9ee   : > { %1159 = vadd.xlane.f32.xlu1 %v1158_v32 }
 0x9ef   : > { %v1157_v34 = vmul.f32 %v2041_v31, %v2041_v31 }
 0x9f1   : > { %v1161_v35 = vsel %vm418_vm0, %v1157_v34, 0.0  ;;  %v1349_v34 = vld [vmem:[%s2226_s10 + $0x70] sm:$0xff] }
 0x9f2   : > { %1162 = vadd.xlane.f32.xlu1 %v1161_v35  ;;  %v1350_v35 = vld [vmem:[%s2226_s10 + $0x78] sm:$0xff] }
 0x9f3   : > { %v1715_v36 = vpack.c.bf16 %v1350_v35, %v1349_v34 }
 0xa7b   : > { %v1160_v14 = vpop.xlane.xlu1 %1159 }
 0xa7c   : > { %v1164_v15 = vmul.f32 0.015625, %v1160_v14 }
 0xa7e   : > { %v1166_v16 = vadd.f32 1e-05, %v1164_v15 }
 0xa7f   : > { %v1163_v17 = vpop.xlane.xlu1 %1162 }
 0xa80   : > { %1781 = vrsqrt.f32 %v1166_v16  ;;  %v1165_v18 = vmul.f32 0.015625, %v1163_v17 }
 0xa82   : > { %v1167_v19 = vadd.f32 1e-05, %v1165_v18 }
 0xa84   : > { %1783 = vrsqrt.f32 %v1167_v19 }
 0xa8a   : > { %v1782_v20 = vpop.eup %1781 }
 0xa8b   : > { %v1170_v22 = vmul.f32 %v1782_v20, %v2037_v29  ;;  %v1345_v29 = vld [vmem:[%s2226_s10 + $0x50] sm:$0xff] }
 0xa8c   : > { %v1709_v0 = vpack.c.bf16 %v1346_v1, %v1345_v29 }
 0xa8d   : > { %v1178_v24 = vmul.f32 %v1536_v21, %v1170_v22 }
 0xa8e   : > { %v1784_v25 = vpop.eup %1783  ;;  %1710 = vmatpush1.bf16.msra.mxu1 %v1709_v0 }
 0xa8f   : > { %v2138_v26 = vadd.f32 %v1537_v23, %v1178_v24  ;;  %v1171_v27 = vmul.f32 %v1784_v25, %v2041_v31  ;;  %1711 = vmatprep.subr.bf16.mxu1 %v1805_v4  ;;  %v1348_v31 = vld [vmem:[%s2226_s10 + $0x68] sm:$0xff] }
 0xa91   : > { %1538 = vmatmul.mubr.msk.f32.vlgmr.msra.gmra.mrb[12].mxu0 %vm418_vm0, %v2138_v26  ;;  %v1179_v28 = vmul.f32 %v1536_v21, %v1171_v27 }
 0xa92   : > { %1292 = vmatprep.mubr.f32.mxu0 %v1801_v33  ;;  %v1347_v33 = vld [vmem:[%s2226_s10 + $0x60] sm:$0xff] }
 0xa93   : > { %v2144_v30 = vadd.f32 %v1537_v23, %v1179_v28  ;;  %v1712_v32 = vpack.c.bf16 %v1348_v31, %v1347_v33 }
 0xa95   : > { %1539 = vmatmul.mubr.msk.f32.gmra.mrb[14].mxu0 %vm418_vm0, %v2144_v30  ;;  %1713 = vmatpush1.bf16.msra.mxu1 %v1712_v32 }
 0xa96   : > { %1714 = vmatprep.subr.bf16.mxu1 %v1805_v4 }
 0xa99   : > { %1716 = vmatpush1.bf16.msra.mxu1 %v1715_v36 }
 0xa9a   : > { %1717 = vmatprep.subr.bf16.mxu1 %v1805_v4 }
 0xa9d   : > { %1719 = vmatpush1.bf16.msra.mxu1 %v1718_v39 }
 0xa9e   : > { %1720 = vmatprep.subr.bf16.mxu1 %v1805_v4 }
 0xaa1   : > { %1722 = vmatpush1.bf16.msra.mxu1 %v1721_v42 }
 0xaa2   : > { %1723 = vmatprep.subr.bf16.mxu1 %v1805_v4 }
 0xaa5   : > { %1725 = vmatpush1.bf16.msra.mxu1 %v1724_v45 }
 0xaa6   : > { %1726 = vmatprep.subr.bf16.mxu1 %v1805_v4 }
 0xaa9   : > { %1728 = vmatpush1.bf16.msra.mxu1 %v1727_v48 }
 0xb64   : > { %v1288_v57 = vpop.f32.mrb[12].mxu0 }
 0xb65   : > { %v1289_v59 = vadd.f32 %v1288_v57, %v1209_v54  ;;  %v1290_v61 = vpop.f32.mrb[13].mxu0 }
 0xb66   : > { %v1291_v62 = vadd.f32 %v1290_v61, %v1213_v55 }
 0xb67   : > { %v1303_v63 = vmul.f32 0.044715, %v1289_v59  ;;  %v1299_v28 = vmul.f32 0.5, %v1289_v59 }
 0xb68   : > { %v1304_v2 = vmul.f32 0.044715, %v1291_v62  ;;  %v1294_v3 = vpop.f32.mrb[14].mxu0  ;;  %v1300_v25 = vmul.f32 0.5, %v1291_v62 }
 0xb69   : > { %v1307_v5 = vmul.f32 %v1303_v63, %v1289_v59  ;;  %v1295_v4 = vadd.f32 %v1294_v3, %v1209_v54  ;;  %v1296_v6 = vpop.f32.mrb[15].mxu0 }
 0xb6a   : > { %v1308_v7 = vmul.f32 %v1304_v2, %v1291_v62  ;;  %v1297_v8 = vadd.f32 %v1296_v6, %v1213_v55 }
 0xb6b   : > { %v1311_v9 = vmul.f32 %v1307_v5, %v1289_v59  ;;  %v1305_v56 = vmul.f32 0.044715, %v1295_v4  ;;  %v1301_v35 = vmul.f32 0.5, %v1295_v4 }
 0xb6c   : > { %v1312_v58 = vmul.f32 %v1308_v7, %v1291_v62  ;;  %v1306_v60 = vmul.f32 0.044715, %v1297_v8  ;;  %v1302_v32 = vmul.f32 0.5, %v1297_v8 }
 0xb6d   : > { %v1315_v10 = vadd.f32 %v1311_v9, %v1289_v59  ;;  %v1309_v11 = vmul.f32 %v1305_v56, %v1295_v4 }
 0xb6e   : > { %v1316_v12 = vadd.f32 %v1312_v58, %v1291_v62  ;;  %v1310_v13 = vmul.f32 %v1306_v60, %v1297_v8 }
 0xb6f   : > { %v1319_v14 = vmul.f32 0.7978846, %v1315_v10  ;;  %v1313_v15 = vmul.f32 %v1309_v11, %v1295_v4 }
 0xb70   : > { %v1314_v16 = vmul.f32 %v1310_v13, %v1297_v8  ;;  %v1320_v17 = vmul.f32 0.7978846, %v1316_v12 }
 0xb71   : > { %1785 = vtanh.f32 %v1319_v14  ;;  %v1317_v18 = vadd.f32 %v1313_v15, %v1295_v4 }
 0xb72   : > { %v1318_v19 = vadd.f32 %v1314_v16, %v1297_v8  ;;  %1787 = vtanh.f32 %v1320_v17 }
 0xb73   : > { %v1321_v20 = vmul.f32 0.7978846, %v1317_v18 }
 0xb74   : > { %v1322_v21 = vmul.f32 0.7978846, %v1318_v19 }
 0xb75   : > { %1789 = vtanh.f32 %v1321_v20 }
 0xb76   : > { %1791 = vtanh.f32 %v1322_v21 }
 0xb7b   : > { %v1786_v22 = vpop.eup %1785 }
 0xb7c   : > { %v1788_v23 = vpop.eup %1787  ;;  %v1327_v24 = vadd.f32 1.0, %v1786_v22 }
 0xb7d   : > { %v1328_v27 = vadd.f32 1.0, %v1788_v23 }
 0xb7e   : > { %v1331_v33 = vmul.f32 %v1327_v24, %v1299_v28 }
 0xb7f   : > { %v1790_v29 = vpop.eup %1789  ;;  %v1332_v1 = vmul.f32 %v1328_v27, %v1300_v25 }
 0xb80   : > { %v1792_v0 = vpop.eup %1791  ;;  %v1329_v31 = vadd.f32 1.0, %v1790_v29 }
 0xb81   : > { %1541 = vmatprep.mubr.msk.f32.mxu1 %vm418_vm0, %v1332_v1  ;;  %v1330_v34 = vadd.f32 1.0, %v1792_v0 }
 0xb82   : > { %1437 = vmatmul.mubr.f32.vlgmr.msra.gmra.mrb[4].mxu1 %v1331_v33  ;;  %v1333_v37 = vmul.f32 %v1329_v31, %v1301_v35 }
 0xb83   : > { %v1334_v36 = vmul.f32 %v1330_v34, %v1302_v32 }
 0xb85   : > { %1542 = vmatprep.mubr.msk.f32.mxu1 %vm418_vm0, %v1334_v36 }
 0xb86   : > { %1442 = vmatmul.mubr.f32.gmra.mrb[6].mxu1 %v1333_v37 }
 0xc55   : > { %v1438_v39 = vpop.f32.mrb[4].mxu1 }
 0xc56   : > { %v1439_v40 = vadd.f32 %v1540_v38, %v1438_v39  ;;  %v1440_v41 = vpop.f32.mrb[5].mxu1 }
 0xc58   : > { %v1447_v42 = vadd.f32 %v1439_v40, %v2138_v26 }
 0xc59   : > { %v1443_v43 = vpop.f32.mrb[6].mxu1 }
 0xc5a   : > { %1449 = vst.msk [vmem:[%s413_s24] sm:$0xff] %vm418_vm0, %v1447_v42  ;;  %v1444_v44 = vadd.f32 %v1540_v38, %v1443_v43  ;;  %v1445_v45 = vpop.f32.mrb[7].mxu1 }
 0xc5c   : > { %v1448_v46 = vadd.f32 %v1444_v44, %v2144_v30 }
 0xc5e   : > { %1450 = vst.msk [vmem:[%s413_s24 + $0x8] sm:$0xff] %vm418_vm0, %v1448_v46 }
 0xc5f PF: > { %s22_s21 = sadd.s32 1, %s1799_s21  }
 0xc60   : > { %p19_p4 = scmp.ge.s32.totalorder %s22_s21, 4  }
 0xc62   :  { %21 = sbr.rel (!%p19_p4) target bundleno = 1 (0x1), region = 98 }

// kernel: cct_forward.9
= control target key start
LH: loop header
LB: loop body
LE: loop exit
PB: predicated region body
PF: predicated region fallthrough
CT: control target
= control target key end

     0   :  { %s930_s0 = inlined_call_operand.vmem [shape: f32[2,16,64], index: 0, kind: input, shape index: {}]   ;;  %s931_s1 = inlined_call_operand.vmem [shape: f32[1,64], index: 1, kind: input, shape index: {}]   ;;  %s932_s2 = inlined_call_operand.vmem [shape: f32[1,64], index: 2, kind: input, shape index: {}]   ;;  %s933_s3 = inlined_call_operand.vmem [shape: f32[1,64], index: 3, kind: input, shape index: {}]   ;;  %s934_s4 = inlined_call_operand.<no memory space> [shape: f32[1,1], index: 4, kind: input, shape index: {}]   ;;  %s935_s5 = inlined_call_operand.vmem [shape: f32[64,17], index: 5, kind: input, shape index: {}]   ;;  %s936_s6 = inlined_call_operand.vmem [shape: f32[1,17], index: 6, kind: input, shape index: {}]   ;;  %s937_s7 = inlined_call_operand.hbm [shape: f32[2,1,17], index: 7, kind: output, shape index: {}]  }
   0x1   :  { %v12_v0 = vstv %s934_s4 }
   0x2   :  { %13 = vst [vmem:[#allocation2] sm:$0x1] %v12_v0 }
   0x3   :  { %14 = vsyncpa [#allocation4], 0 }
   0x4   :  { %16 = vsyncpa [#allocation4 + $0x1], 0  ;;  %s773_s26 = smov 0   ;;  %s775_s27 = smov 0  }
   0x5   :  { %s777_s28 = smov 0   ;;  %s779_s29 = smov 0  }
   0x6 LB: > { %s794_s4 = sadd.s32 4294967295, %s723_s29   ;;  %s551_s30 = sadd.s32 4294967294, %s723_s29   ;;  %s723_s29 = sphi %s779_s29, %s943_s29   ;;  %s719_s28 = sphi %s777_s28, %s942_s28   ;;  %s715_s27 = sphi %s775_s27, %s941_s27   ;;  %s711_s26 = sphi %s773_s26, %s940_s26  }
   0x7   : > { %s798_s8 = sadd.s32 1, %s723_s29   ;;  %s181_s9 = sadd.s32 1, %s719_s28 }
   0x8   : > { %s178_s10 = ssub.s32 %s723_s29, %s798_s8  ;;  %p191_p0 = scmp.ne.s32.totalorder %s719_s28, %s715_s27 }
   0x9   : > { %p179_p1 = scmp.eq.s32.totalorder %s178_s10, 0  ;;  %p192_p2 = scmp.eq.s32.totalorder %s794_s4, 1 }
   0xa   : > { %p197_p3 = scmp.ne.s32.totalorder %s715_s27, %s711_s26  ;;  %p198_p4 = scmp.eq.s32.totalorder %s551_s30, 1 }
   0xb   : > { %s809_s11 = scalar_select %p179_p1, %s719_s28, %s181_s9  }
   0xc   : > { %p811_p5 = por %p192_p2, %p191_p0  ;;  %p815_p6 = por %p198_p4, %p197_p3 }
   0xd   : > { %p554_p7 = scmp.ge.s32.totalorder %s723_s29, 1  ;;  %p242_p8 = scmp.lt.s32.totalorder %s723_s29, 3 }
   0xf   : > { %p243_p9 = pnand %p554_p7, %p242_p8 }
  0x10   : > { %p273_p10 = scmp.lt.s32.totalorder (!%p243_p9), %s794_s4, 1  ;;  %vm282_vm0 = vcmask (!%p243_p9), 523264   ;;  %v557_v22 = vld [vmem:[%s931_s1] ss:$0 sm:$0xff] (!%p243_p9)  ;;  %v725_v36 = vmov (!%p243_p9), 0   ;;  %vm350_vm1 = vcmask (!%p243_p9), 7168  }
  0x11   : > { %246 = sbr.rel (%p243_p9) target bundleno = 925 (0x39d), region = 48  ;;  %v558_v24 = vld [vmem:[%s932_s2] ss:$0 sm:$0xff] (!%p243_p9)  ;;  %650 = vset.pattern.permute.xlu1 (!%p243_p9), %v725_v36  ;;  %649 = vset.pattern.permute.xlu0 (!%p243_p9), %v725_v36  ;;  %vm727_vm2 = vmmov (!%p243_p9), 0   ;;  %s271_s30 = sand.u32 (!%p243_p9), 1, %s715_s27   ;;  %vm481_vm3 = vcmask (!%p243_p9), 131072  }
  0x12   : > { %v559_v27 = vld [vmem:[%s933_s3] ss:$0 sm:$0xff] (!%p243_p9)  ;;  %s484_s20 = scalar_lea.sflag (!%p243_p9), [#allocation4], %s271_s30 }
  0x13   : > { %v560_v37 = vld [vmem:[#allocation2] ss:$0 sm:$0xff] (!%p243_p9) }
  0x18   : > { %s274_s14 = scalar_select %p273_p10, %s794_s4, 1 }
  0x1a   : > { %s565_s15 = sshll.u32 %s274_s14, 4  ;;  %s562_s14 = sshll.u32 %s794_s4, 4 }
  0x1b   : > { %s277_s18 = scalar_lea.vmem %s930_s0, %s565_s15  ;;  %s272_s15 = scalar_lea.vmem [#allocation3], %s271_s30 }
  0x1c   : > { %v278_v1 = vld [vmem:[%s277_s18] sm:$0xff]  ;;  %v279_v2 = vld [vmem:[%s277_s18 + $0x8] sm:$0xff]  ;;  %s496_s16 = sshll.u32 %s272_s15, 4  ;;  %s888_s19 = scalar_lea.hbm %s937_s7, %s562_s14  ;;  %s890_s16 = int_to_ptr.vmem [resolvable:$true] %s496_s16 }
  0x1d   : > { %v283_v3 = vsel %vm282_vm0, %v278_v1, 0.0  ;;  %v286_v4 = vsel %vm282_vm0, %v279_v2, 0.0  ;;  %s661_s21 = scalar_lea.vmem %s890_s16, 16  ;;  %s729_s4 = smov [#allocation3]  }
  0x1e   : > { %284 = vadd.xlane.f32.xlu0 %v283_v3  ;;  %p662_p11 = scmp.ne.s32.totalorder %s890_s16, %s661_s21  ;;  %s665_s22 = sshll.u32 %s729_s4, 4  ;;  %s666_s22 = int_to_ptr.vmem [resolvable:$false] %s665_s22 }
  0x1f   : > { %s667_s23 = scalar_lea.vmem %s666_s22, 32  ;;  %p668_p0 = scmp.lt.s32.totalorder %s890_s16, %s666_s22 }
  0x20   : > { %p663_p12 = pnand %p662_p11, %p811_p5  ;;  %p669_p1 = scmp.lt.s32.totalorder %s667_s23, %s661_s21 }
  0x22   : > { %287 = vadd.xlane.f32.xlu0 %v286_v4  ;;  %p664_p13 = pneg %p663_p12  ;;  %p670_p2 = por %p669_p1, %p668_p0 }
  0x24   : > { %p671_p3 = pnand %p670_p2, %p664_p13 }
  0xab   : > { %v285_v5 = vpop.xlane.xlu0 %284 }
  0xac   : > { %v290_v6 = vmul.f32 0.015625, %v285_v5  ;;  %v399_v5 = vld [vmem:[%s935_s5] sm:$0xff] }
  0xae   : > { %v292_v7 = vsub.f32 %v278_v1, %v290_v6  ;;  %v400_v6 = vld [vmem:[%s935_s5 + $0x8] sm:$0xff] }
  0xaf   : > { %v288_v8 = vpop.xlane.xlu0 %287 }
  0xb0   : > { %v291_v9 = vmul.f32 0.015625, %v288_v8  ;;  %v294_v10 = vmul.f32 %v292_v7, %v292_v7  ;;  %v726_v8 = vmov 0.0|0.0  }
  0xb1   : > { %594 = vmatprep.subr.bf16.mxu0 %v726_v8 }
  0xb2   : > { %v293_v11 = vsub.f32 %v279_v2, %v291_v9  ;;  %v296_v12 = vsel %vm282_vm0, %v294_v10, 0.0  ;;  %v401_v9 = vld [vmem:[%s935_s5 + $0x10] sm:$0xff]  ;;  %v402_v10 = vld [vmem:[%s935_s5 + $0x18] sm:$0xff] }
  0xb3   : > { %297 = vadd.xlane.f32.xlu1 %v296_v12  ;;  %v403_v12 = vld [vmem:[%s935_s5 + $0x20] sm:$0xff] }
  0xb4   : > { %v295_v13 = vmul.f32 %v293_v11, %v293_v11 }
  0xb6   : > { %v299_v14 = vsel %vm282_vm0, %v295_v13, 0.0  ;;  %v404_v13 = vld [vmem:[%s935_s5 + $0x28] sm:$0xff] }
  0xb7   : > { %300 = vadd.xlane.f32.xlu1 %v299_v14  ;;  %v601_v14 = vpack.c.bf16 %v404_v13, %v403_v12 }
 0x140   : > { %v298_v15 = vpop.xlane.xlu1 %297 }
 0x141   : > { %v302_v16 = vmul.f32 0.015625, %v298_v15  ;;  %v405_v15 = vld [vmem:[%s935_s5 + $0x30] sm:$0xff] }
 0x143   : > { %v304_v17 = vadd.f32 1e-05, %v302_v16  ;;  %v406_v16 = vld [vmem:[%s935_s5 + $0x38] sm:$0xff] }
 0x144   : > { %v301_v18 = vpop.xlane.xlu1 %300 }
 0x145   : > { %651 = vrsqrt.f32 %v304_v17  ;;  %v303_v19 = vmul.f32 0.015625, %v301_v18  ;;  %v604_v17 = vpack.c.bf16 %v406_v16, %v405_v15  ;;  %v728_v18 = vmov 0.0  }
 0x146   : > { %591 = vmatprep.mubr.msk.f32.mxu0 %vm727_vm2, %v728_v18 }
 0x147   : > { %v305_v20 = vadd.f32 1e-05, %v303_v19 }
 0x149   : > { %653 = vrsqrt.f32 %v305_v20 }
 0x14f   : > { %v652_v21 = vpop.eup %651 }
 0x150   : > { %v308_v23 = vmul.f32 %v652_v21, %v292_v7  ;;  %v595_v7 = vpack.c.bf16 %v400_v6, %v399_v5 }
 0x152   : > { %v316_v25 = vmul.f32 %v557_v22, %v308_v23  ;;  %596 = vmatpush3.bf16.msra.mxu0 %v595_v7 }
 0x153   : > { %v654_v26 = vpop.eup %653  ;;  %597 = vmatprep.subr.bf16.mxu0 %v726_v8 }
 0x154   : > { %v839_v28 = vadd.f32 %v558_v24, %v316_v25  ;;  %v309_v29 = vmul.f32 %v654_v26, %v293_v11  ;;  %v598_v11 = vpack.c.bf16 %v402_v10, %v401_v9 }
 0x156   : > { %v333_v30 = vmul.f32 %v559_v27, %v839_v28  ;;  %v317_v31 = vmul.f32 %v557_v22, %v309_v29  ;;  %599 = vmatpush3.bf16.msra.mxu0 %v598_v11 }
 0x157   : > { %600 = vmatprep.subr.bf16.mxu0 %v726_v8 }
 0x158   : > { %v335_v32 = vsel %vm282_vm0, %v333_v30, 0.0  ;;  %v843_v33 = vadd.f32 %v558_v24, %v317_v31 }
 0x159   : > { %336 = vadd.xlane.f32.xlu0 %v335_v32 }
 0x15a   : > { %v334_v34 = vmul.f32 %v559_v27, %v843_v33  ;;  %602 = vmatpush3.bf16.msra.mxu0 %v601_v14 }
 0x15b   : > { %603 = vmatprep.subr.bf16.mxu0 %v726_v8 }
 0x15c   : > { %v338_v35 = vsel %vm282_vm0, %v334_v34, 0.0 }
 0x15d   : > { %339 = vadd.xlane.f32.xlu1 %v338_v35 }
 0x15e   : > { %605 = vmatpush3.bf16.msra.mxu0 %v604_v17 }
 0x1e6   : > { %v337_v38 = vpop.xlane.xlu0 %336 }
 0x1e7   : > { %v348_v39 = vadd.f32 %v560_v37, %v337_v38 }
 0x1e9   : > { %v351_v42 = vsel %vm350_vm1, %v348_v39, -inf }
 0x1ea   : > { %v340_v40 = vpop.xlane.xlu1 %339 }
 0x1eb   : > { %v349_v41 = vadd.f32 %v560_v37, %v340_v40 }
 0x1ed   : > { %v352_v43 = vsel %vm350_vm1, %v349_v41, -inf }
 0x1ee   : > { %v353_v44 = vmax.f32 %v351_v42, %v352_v43 }
 0x1f0   : > { %v354_v45 = vrot.slane %v353_v44, 4 }
 0x1f2   : > { %v355_v46 = vmax.f32 %v353_v44, %v354_v45 }
 0x1f4   : > { %v356_v47 = vrot.slane %v355_v46, 2 }
 0x1f6   : > { %v357_v48 = vmax.f32 %v355_v46, %v356_v47 }
 0x1f8   : > { %v358_v49 = vrot.slane %v357_v48, 1 }
 0x1fa   : > { %v359_v50 = vmax.f32 %v357_v48, %v358_v49 }
 0x1fc   : > { %v360_v51 = vsub.f32 %v348_v39, %v359_v50  ;;  %v361_v52 = vsub.f32 %v349_v41, %v359_v50 }
 0x1fe   : > { %v362_v53 = vmul.f32 1.442695, %v360_v51  ;;  %v364_v54 = vmul.f32 1.442695, %v361_v52 }
 0x200   : > { %655 = vpow2.f32 %v362_v53 }
 0x201   : > { %657 = vpow2.f32 %v364_v54 }
 0x20a   : > { %v656_v55 = vpop.eup %655 }
 0x20b   : > { %v658_v56 = vpop.eup %657  ;;  %v366_v57 = vsel %vm350_vm1, %v656_v55, 0.0 }
 0x20c   : > { %v367_v58 = vsel %vm350_vm1, %v658_v56, 0.0 }
 0x20d   : > { %v368_v59 = vadd.f32 %v367_v58, %v366_v57 }
 0x20f   : > { %v369_v60 = vrot.slane %v368_v59, 4 }
 0x211   : > { %v370_v61 = vadd.f32 %v369_v60, %v368_v59 }
 0x213   : > { %v371_v62 = vrot.slane %v370_v61, 2 }
 0x215   : > { %v372_v63 = vadd.f32 %v371_v62, %v370_v61 }
 0x217   : > { %v373_v0 = vrot.slane %v372_v63, 1 }
 0x219   : > { %v374_v1 = vadd.f32 %v373_v0, %v372_v63 }
 0x21b   : > { %659 = vrcp.f32 %v374_v1 }
 0x225   : > { %v660_v2 = vpop.eup %659 }
 0x226   : > { %v377_v3 = vmul.f32 %v660_v2, %v658_v56  ;;  %v376_v4 = vmul.f32 %v660_v2, %v656_v55 }
 0x228   : > { %385 = vperm.xlu1 %650, %v377_v3   ;;  %380 = vperm.xlu0 %649, %v376_v4  }
 0x2a7   : > { %v386_v19 = vpop.permute.xlu1 %385  ;;  %v381_v20 = vpop.permute.xlu0 %380 }
 0x2a8   : > { %v389_v21 = vmul.f32 %v386_v19, %v843_v33  ;;  %v388_v22 = vmul.f32 %v381_v20, %v839_v28  ;;  %v407_v33 = vld [vmem:[%s936_s6] sm:$0x1] }
 0x2aa   : > { %v391_v23 = vsel %vm282_vm0, %v389_v21, 0.0  ;;  %v390_v24 = vsel %vm282_vm0, %v388_v22, 0.0 }
 0x2ab   : > { %v392_v25 = vadd.f32 %v391_v23, %v390_v24 }
 0x2ad   : > { %v393_v26 = vrot.slane %v392_v25, 4 }
 0x2af   : > { %v394_v27 = vadd.f32 %v393_v26, %v392_v25 }
 0x2b1   : > { %v395_v29 = vrot.slane %v394_v27, 2 }
 0x2b3   : > { %v396_v30 = vadd.f32 %v395_v29, %v394_v27 }
 0x2b5   : > { %v397_v31 = vrot.slane %v396_v30, 1 }
 0x2b7   : > { %v398_v32 = vadd.f32 %v397_v31, %v396_v30 }
 0x2b9   : > { %592 = vmatmul.mubr.msk.f32.vlgmr.msra.gmra.mrb[0].mxu0 %vm282_vm0, %v398_v32 }
 0x38c   : > { %v477_v28 = vpop.f32.mrb[0].mxu0 }
 0x38d   : > { %v478_v34 = vadd.f32 %v477_v28, %v407_v33  ;;  %v593_v35 = vpop.f32.mrb[1].mxu0 }
 0x38f   : > { %482 = vst.msk [vmem:[%s272_s15] sm:$0x1] %vm481_vm3, %v478_v34 }
 0x390   : > { %674 = shalt.err (!%p671_p3)
}
 0x391   : > { %s675_s24 = scalar_lea.hbm %s888_s19, 16  ;;  %s679_s9 = scalar_lea.hbm %s937_s7, 32 }
 0x392   : > { %p676_p4 = scmp.ne.s32.totalorder %s888_s19, %s675_s24  ;;  %p680_p9 = scmp.lt.u32.totalorder %s888_s19, %s937_s7 }
 0x393   : > { %p681_p10 = scmp.lt.u32.totalorder %s679_s9, %s675_s24  ;;  %p683_p12 = scmp.lt.u32.totalorder %s675_s24, %s888_s19 }
 0x394   : > { %p677_p7 = pnand %p676_p4, %p811_p5 }
 0x395   : > { %p682_p11 = por %p681_p10, %p680_p9 }
 0x396   : > { %p678_p8 = pneg %p677_p7 }
 0x397   : > { %p684_p13 = por %p683_p12, %p682_p11 }
 0x399   : > { %p685_p0 = pnand %p684_p13, %p678_p8 }
 0x39b   : > { %688 = shalt.err (!%p685_p0)
}
 0x39c   : > { %606 = dma.vmem_to_hbm [thread:$0]  (%p811_p5), %s890_s16, 16, %s888_s19, %s484_s20  }
 0x39d PF: > { %p612_p1 = scmp.ge.s32.totalorder %s723_s29, 2  ;;  %s508_s15 = sand.u32 1, %s711_s26  }
 0x39e   : > { %s509_s17 = scalar_lea.sflag [#allocation4], %s508_s15 }
 0x39f   : > { %p609_p2 = pnand %p612_p1, %p815_p6 }
 0x3a1   : > { %706 = dma.done.wait (!%p609_p2), %s509_s17, 16  }
 0x3a2   : > { %708 = vsyncadd (!%p609_p2), %s509_s17, 4294967280  ;;  %p19_p3 = scmp.ge.s32.totalorder %s798_s8, 4   ;;  %s940_s26 = smov %s715_s27 }
 0x3a3   : > { %s941_s27 = smov %s719_s28  ;;  %s942_s28 = smov %s809_s11 }
 0x3a4   : > { %s943_s29 = smov %s798_s8  ;;  %21 = sbr.rel (!%p19_p3) target bundleno = 6 (0x6), region = 83 }
 0x3ab   :  { %513 = vsyncpa [#allocation4], 1 }
 0x3ac   :  { %515 = vsyncpa [#allocation4 + $0x1], 1 }

</bundles_post_ra>
